<compile_context>
chip_gen: v7x
topology: tpu7x:2x2x1
jax: 0.10.0
libtpu: 0.0.40
codegen_flags: <defaults>
</compile_context>

<pallas_src>
import jax
import jax.numpy as jnp
from jax.experimental import pallas as pl
from jax.experimental.pallas import tpu as pltpu


LRELU_SLOPE = 0.2
IN_EPS = 1e-5


def _round_up(n, m=128):
    return ((n + m - 1) // m) * m


# ---------------------------------------------------------------------------
# Pallas kernels (one grid step == one batch element; channels on lanes)
# ---------------------------------------------------------------------------
def _conv_lrelu_kernel(p_ref, w_ref, b_ref, o_ref):
    """out = LeakyReLU(patches @ W + b).  p:(1,M,K) w:(K,C) b:(1,C) o:(1,M,C)."""
    y = jnp.dot(p_ref[0], w_ref[...], preferred_element_type=jnp.float32)
    y = y + b_ref[...]
    o_ref[0] = jnp.where(y >= 0.0, y, LRELU_SLOPE * y).astype(o_ref.dtype)


def _conv_in_lrelu_kernel(p_ref, w_ref, b_ref, g_ref, be_ref, o_ref):
    """Conv matmul + InstanceNorm2d(affine, eps=1e-5, biased var) + LeakyReLU(0.2).

    The grid step owns one batch element's full spatial extent, so per-(b, c)
    mean/var is a sublane (XLU) reduction over the M (position) axis.
    """
    y = jnp.dot(p_ref[0], w_ref[...], preferred_element_type=jnp.float32)
    y = y + b_ref[...]
    mean = jnp.mean(y, axis=0, keepdims=True)
    c = y - mean
    var = jnp.mean(c * c, axis=0, keepdims=True)
    yn = c * jax.lax.rsqrt(var + IN_EPS)
    yn = yn * g_ref[...] + be_ref[...]
    o_ref[0] = jnp.where(yn >= 0.0, yn, LRELU_SLOPE * yn).astype(o_ref.dtype)


def _conv_in_lrelu_head_kernel(p_ref, w_ref, b_ref, g_ref, be_ref, w4_ref, o_ref):
    """Block 3 (conv + InstanceNorm + LeakyReLU) with the final Conv(8D->1, 4x4 valid)
    folded in.  After the epilogue the per-batch activation is [16, Cp] (positions on
    sublanes, channels on lanes); the single-output-channel 4x4 conv is sum(act * w4).
    We store lane-dense per-channel partial sums; the cross-lane sum + bias finishes
    outside (padded channels contribute exactly zero)."""
    y = jnp.dot(p_ref[0], w_ref[...], preferred_element_type=jnp.float32)
    y = y + b_ref[...]
    mean = jnp.mean(y, axis=0, keepdims=True)
    c = y - mean
    var = jnp.mean(c * c, axis=0, keepdims=True)
    yn = c * jax.lax.rsqrt(var + IN_EPS)
    yn = yn * g_ref[...] + be_ref[...]
    act = jnp.where(yn >= 0.0, yn, LRELU_SLOPE * yn)                 # [M, Cp] f32
    o_ref[0] = jnp.sum(act * w4_ref[...], axis=0, keepdims=True)     # [1, Cp]


# ---------------------------------------------------------------------------
# pallas_call wrappers
# ---------------------------------------------------------------------------
_PARALLEL = pltpu.CompilerParams(dimension_semantics=("parallel",))


def _conv_lrelu(patches, wm, b):
    B, M, K = patches.shape
    Cp = wm.shape[1]
    return pl.pallas_call(
        _conv_lrelu_kernel,
        grid=(B,),
        in_specs=[
            pl.BlockSpec((1, M, K), lambda i: (i, 0, 0)),
            pl.BlockSpec((K, Cp), lambda i: (0, 0)),
            pl.BlockSpec((1, Cp), lambda i: (0, 0)),
        ],
        out_specs=pl.BlockSpec((1, M, Cp), lambda i: (i, 0, 0)),
        out_shape=jax.ShapeDtypeStruct((B, M, Cp), jnp.bfloat16),
        compiler_params=_PARALLEL,
    )(patches, wm, b)


def _conv_in_lrelu(patches, wm, b, g, be):
    B, M, K = patches.shape
    Cp = wm.shape[1]
    return pl.pallas_call(
        _conv_in_lrelu_kernel,
        grid=(B,),
        in_specs=[
            pl.BlockSpec((1, M, K), lambda i: (i, 0, 0)),
            pl.BlockSpec((K, Cp), lambda i: (0, 0)),
            pl.BlockSpec((1, Cp), lambda i: (0, 0)),
            pl.BlockSpec((1, Cp), lambda i: (0, 0)),
            pl.BlockSpec((1, Cp), lambda i: (0, 0)),
        ],
        out_specs=pl.BlockSpec((1, M, Cp), lambda i: (i, 0, 0)),
        out_shape=jax.ShapeDtypeStruct((B, M, Cp), jnp.bfloat16),
        compiler_params=_PARALLEL,
    )(patches, wm, b, g, be)


def _conv_in_lrelu_head(patches, wm, b, g, be, w4m):
    B, M, K = patches.shape
    Cp = wm.shape[1]
    return pl.pallas_call(
        _conv_in_lrelu_head_kernel,
        grid=(B,),
        in_specs=[
            pl.BlockSpec((1, M, K), lambda i: (i, 0, 0)),
            pl.BlockSpec((K, Cp), lambda i: (0, 0)),
            pl.BlockSpec((1, Cp), lambda i: (0, 0)),
            pl.BlockSpec((1, Cp), lambda i: (0, 0)),
            pl.BlockSpec((1, Cp), lambda i: (0, 0)),
            pl.BlockSpec((M, Cp), lambda i: (0, 0)),
        ],
        out_specs=pl.BlockSpec((1, 1, Cp), lambda i: (i, 0, 0)),
        out_shape=jax.ShapeDtypeStruct((B, 1, Cp), jnp.float32),
        compiler_params=_PARALLEL,
    )(patches, wm, b, g, be, w4m)


# ---------------------------------------------------------------------------
# Glue: NHWC im2col patch extraction (pure slicing / concat, no transposes)
# ---------------------------------------------------------------------------
def _extract_patches_nhwc(x, k, stride, pad):
    """x: [B, H, W, C] -> ([B, Hout*Wout, k*k*C], Hout, Wout).

    Column order is (di, dj, c), matching weights flattened as [kh, kw, Cin, Cout].
    """
    B, H, W, C = x.shape
    if pad:
        x = jnp.pad(x, ((0, 0), (pad, pad), (pad, pad), (0, 0)))
    Hout = (H + 2 * pad - k) // stride + 1
    Wout = (W + 2 * pad - k) // stride + 1
    cols = []
    for di in range(k):
        for dj in range(k):
            cols.append(x[:, di:di + stride * Hout:stride,
                          dj:dj + stride * Wout:stride, :])
    patches = jnp.concatenate(cols, axis=-1)          # [B, Hout, Wout, k*k*C]
    return patches.reshape(B, Hout * Wout, k * k * C), Hout, Wout


# ---------------------------------------------------------------------------
# Parameter preparation (done once, outside the per-call forward)
# ---------------------------------------------------------------------------
def _prep_conv_weight(w, cin_pad, cout_pad):
    """[Cout, Cin, k, k] -> [k*k*cin_pad, cout_pad] bf16, zero padded."""
    cout, cin, kh, kw = w.shape
    wt = jnp.transpose(w, (2, 3, 1, 0))                                  # [kh,kw,Cin,Cout]
    wt = jnp.pad(wt, ((0, 0), (0, 0), (0, cin_pad - cin), (0, cout_pad - cout)))
    return wt.reshape(kh * kw * cin_pad, cout_pad).astype(jnp.bfloat16)


def _pad_vec(v, cp):
    return jnp.pad(v, (0, cp - v.shape[0])).reshape(1, cp).astype(jnp.float32)


def prepare_params(p):
    """Pack PyTorch-layout parameters into padded, lane-dense matmul operands."""
    w1, w2, w3, w4 = p["w1"], p["w2"], p["w3"], p["w4"]
    c1, c2, c3 = w1.shape[0], w2.shape[0], w3.shape[0]
    cp1, cp2, cp3 = _round_up(c1), _round_up(c2), _round_up(c3)

    cin, k1 = w1.shape[1], w1.shape[2]
    k_raw = k1 * k1 * cin
    kp1 = _round_up(k_raw)
    w1m = jnp.transpose(w1, (2, 3, 1, 0)).reshape(k_raw, c1)
    w1m = jnp.pad(w1m, ((0, kp1 - k_raw), (0, cp1 - c1))).astype(jnp.bfloat16)

    k4 = w4.shape[2]
    w4m = jnp.transpose(w4[0], (1, 2, 0))                                # [k4, k4, c3]
    w4m = jnp.pad(w4m, ((0, 0), (0, 0), (0, cp3 - c3)))
    w4m = w4m.reshape(k4 * k4, cp3).astype(jnp.float32)

    return {
        "w1m": w1m, "b1": _pad_vec(p["b1"], cp1),
        "w2m": _prep_conv_weight(w2, cp1, cp2), "b2": _pad_vec(p["b2"], cp2),
        "g2": _pad_vec(p["g2"], cp2), "be2": _pad_vec(p["be2"], cp2),
        "w3m": _prep_conv_weight(w3, cp2, cp3), "b3": _pad_vec(p["b3"], cp3),
        "g3": _pad_vec(p["g3"], cp3), "be3": _pad_vec(p["be3"], cp3),
        "w4m": w4m, "b4": p["b4"].astype(jnp.float32),
    }


# ---------------------------------------------------------------------------
# Parameter init (deterministic, PyTorch Conv2d-style uniform bounds)
# ---------------------------------------------------------------------------
def init_params(key, in_dim=3, dim=8):
    def conv_init(k, cout, cin, ksz):
        k1, k2 = jax.random.split(k)
        fan_in = cin * ksz * ksz
        bound = 1.0 / jnp.sqrt(jnp.float32(fan_in))
        w = jax.random.uniform(k1, (cout, cin, ksz, ksz), jnp.float32, -bound, bound)
        b = jax.random.uniform(k2, (cout,), jnp.float32, -bound, bound)
        return w, b

    keys = jax.random.split(key, 4)
    p = {}
    p["w1"], p["b1"] = conv_init(keys[0], dim, in_dim, 5)
    p["w2"], p["b2"] = conv_init(keys[1], dim * 4, dim, 5)
    p["g2"], p["be2"] = jnp.ones((dim * 4,), jnp.float32), jnp.zeros((dim * 4,), jnp.float32)
    p["w3"], p["b3"] = conv_init(keys[2], dim * 8, dim * 4, 5)
    p["g3"], p["be3"] = jnp.ones((dim * 8,), jnp.float32), jnp.zeros((dim * 8,), jnp.float32)
    p["w4"], p["b4"] = conv_init(keys[3], 1, dim * 8, 4)
    return p


# ---------------------------------------------------------------------------
# Full forward pass (matches DGWGANCIFAR10.forward)
# ---------------------------------------------------------------------------
@jax.jit
def dgwgan_forward(x, prep):
    """x: [B, Cin, H, W] (NCHW, PyTorch convention); H == W == 32 (CIFAR10)."""
    B = x.shape[0]
    xh = jnp.transpose(x, (0, 2, 3, 1)).astype(jnp.bfloat16)        # NHWC, once

    # Block 1: Conv(3->D, 5, s2, p2) + LeakyReLU(0.2)
    p1, h1, w1 = _extract_patches_nhwc(xh, 5, 2, 2)                 # [B, 256, 75]
    kp1 = prep["w1m"].shape[0]
    p1 = jnp.pad(p1, ((0, 0), (0, 0), (0, kp1 - p1.shape[-1])))     # K -> 128
    y1 = _conv_lrelu(p1, prep["w1m"], prep["b1"])                   # [B, 256, cp1]
    y1 = y1.reshape(B, h1, w1, -1)

    # Block 2: Conv(D->4D) + InstanceNorm(affine) + LeakyReLU (fused epilogue)
    p2, h2, w2 = _extract_patches_nhwc(y1, 5, 2, 2)                 # [B, 64, 25*cp1]
    y2 = _conv_in_lrelu(p2, prep["w2m"], prep["b2"], prep["g2"], prep["be2"])
    y2 = y2.reshape(B, h2, w2, -1)

    # Block 3: Conv(4D->8D) + InstanceNorm + LeakyReLU, with the final
    # Conv(8D->1, 4x4, valid) folded in as a per-batch dot reduction.
    p3, h3, w3 = _extract_patches_nhwc(y2, 5, 2, 2)                 # [B, 16, 25*cp2]
    assert h3 * w3 == prep["w4m"].shape[0], (
        "final 4x4 valid-conv fold requires 32x32 inputs (CIFAR10)")
    partial = _conv_in_lrelu_head(p3, prep["w3m"], prep["b3"],
                                  prep["g3"], prep["be3"], prep["w4m"])  # [B, 1, cp3]
    # Cross-lane finish: padded channels hold exact zeros, so the sum is exact.
    return jnp.sum(partial.reshape(B, -1), axis=-1) + prep["b4"][0]


if __name__ == "__main__":
    key = jax.random.PRNGKey(0)
    kx, kp = jax.random.split(key)

    # Small config: batch=2, in_dim=3, dim=8; spatial must be 32 (CIFAR10) so the
    # final 4x4 valid conv reduces to 1x1.
    B, C_IN, H, W = 2, 3, 32, 32
    DIM = 8
    x = jax.random.normal(kx, (B, C_IN, H, W), dtype=jnp.float32)
    params = init_params(kp, in_dim=C_IN, dim=DIM)
    prep = prepare_params(params)

    y = dgwgan_forward(x, prep)
    y = jax.block_until_ready(y)
    assert y.shape == (B,), y.shape
    assert jnp.all(jnp.isfinite(y))
    print("KERNEL_OK")
</pallas_src>

<mosaic_0001>
module attributes {stable_mosaic.version = 11 : i64} {
  func.func @_conv_lrelu_kernel(%arg0: i32, %arg1: memref<1x256x128xbf16, #tpu.memory_space<vmem>>, %arg2: memref<128x128xbf16, #tpu.memory_space<vmem>>, %arg3: memref<1x128xf32, #tpu.memory_space<vmem>>, %arg4: memref<1x256x128xbf16, #tpu.memory_space<vmem>>) attributes {dimension_semantics = [#tpu.dimension_semantics<parallel>], iteration_bounds = array<i64: 2>, scalar_prefetch = 0 : i64, scratch_operands = 0 : i64, tpu.core_type = #tpu.core_type<tc>, window_params = [{transform_indices = @transform_0, window_bounds = array<i64: 1, 256, 128>}, {pipeline_mode = #tpu.pipeline_mode<synchronous>, transform_indices = @transform_1, window_bounds = array<i64: 128, 128>}, {pipeline_mode = #tpu.pipeline_mode<synchronous>, transform_indices = @transform_2, window_bounds = array<i64: 1, 128>}, {transform_indices = @transform_3, window_bounds = array<i64: 1, 256, 128>}]} {
    %c0 = arith.constant 0 : index
    %c0_0 = arith.constant 0 : index
    %c0_1 = arith.constant 0 : index
    %0 = vector.load %arg1[%c0, %c0_0, %c0_1] : memref<1x256x128xbf16, #tpu.memory_space<vmem>>, vector<1x256x128xbf16>
    %1 = vector.shape_cast %0 : vector<1x256x128xbf16> to vector<256x128xbf16>
    %c0_2 = arith.constant 0 : index
    %c0_3 = arith.constant 0 : index
    %2 = vector.load %arg2[%c0_2, %c0_3] : memref<128x128xbf16, #tpu.memory_space<vmem>>, vector<128x128xbf16>
    %cst = arith.constant dense<0.000000e+00> : vector<256x128xf32>
    %3 = tpu.matmul %1, %2, %cst {dimension_numbers = #tpu.dot_dimension_numbers<[1], [0], [0], [1], [0, 0, 1, 1], [], []>} : vector<256x128xbf16>, vector<128x128xbf16>, vector<256x128xf32> -> vector<256x128xf32>
    %c0_4 = arith.constant 0 : index
    %c0_5 = arith.constant 0 : index
    %4 = vector.load %arg3[%c0_4, %c0_5] : memref<1x128xf32, #tpu.memory_space<vmem>>, vector<1x128xf32>
    %5 = vector.broadcast %4 : vector<1x128xf32> to vector<256x128xf32>
    %6 = arith.addf %3, %5 : vector<256x128xf32>
    %cst_6 = arith.constant 0.000000e+00 : f32
    %7 = vector.broadcast %cst_6 : f32 to vector<256x128xf32>
    %8 = arith.cmpf oge, %6, %7 : vector<256x128xf32>
    %cst_7 = arith.constant 2.000000e-01 : f32
    %9 = vector.broadcast %cst_7 : f32 to vector<256x128xf32>
    %10 = arith.mulf %9, %6 : vector<256x128xf32>
    %11 = arith.select %8, %6, %10 : vector<256x128xi1>, vector<256x128xf32>
    %12 = arith.truncf %11 : vector<256x128xf32> to vector<256x128xbf16>
    %c0_8 = arith.constant 0 : index
    %c0_9 = arith.constant 0 : index
    %c0_10 = arith.constant 0 : index
    %13 = vector.load %arg4[%c0_8, %c0_9, %c0_10] : memref<1x256x128xbf16, #tpu.memory_space<vmem>>, vector<1x256x128xbf16>
    %14 = vector.shape_cast %13 : vector<1x256x128xbf16> to vector<256x128xbf16>
    %15 = vector.shape_cast %12 : vector<256x128xbf16> to vector<1x256x128xbf16>
    tpu.vector_store %arg4[%c0_8, %c0_9, %c0_10], %15 {strides = array<i32>} : memref<1x256x128xbf16, #tpu.memory_space<vmem>>, vector<1x256x128xbf16>,
    return
  }
  func.func @transform_0(%arg0: i32) -> (i32, i32, i32) {
    %c0_i32 = arith.constant 0 : i32
    %c0_i32_0 = arith.constant 0 : i32
    %c0_i32_1 = arith.constant 0 : i32
    return %arg0, %c0_i32, %c0_i32_0 : i32, i32, i32
  }
  func.func @transform_1(%arg0: i32) -> (i32, i32) {
    %c0_i32 = arith.constant 0 : i32
    %c0_i32_0 = arith.constant 0 : i32
    %c0_i32_1 = arith.constant 0 : i32
    return %c0_i32, %c0_i32_0 : i32, i32
  }
  func.func @transform_2(%arg0: i32) -> (i32, i32) {
    %c0_i32 = arith.constant 0 : i32
    %c0_i32_0 = arith.constant 0 : i32
    %c0_i32_1 = arith.constant 0 : i32
    return %c0_i32, %c0_i32_0 : i32, i32
  }
  func.func @transform_3(%arg0: i32) -> (i32, i32, i32) {
    %c0_i32 = arith.constant 0 : i32
    %c0_i32_0 = arith.constant 0 : i32
    %c0_i32_1 = arith.constant 0 : i32
    return %arg0, %c0_i32, %c0_i32_0 : i32, i32, i32
  }
}

module attributes {stable_mosaic.version = 11 : i64} {
  func.func @_conv_in_lrelu_kernel(%arg0: i32, %arg1: memref<1x64x3200xbf16, #tpu.memory_space<vmem>>, %arg2: memref<3200x128xbf16, #tpu.memory_space<vmem>>, %arg3: memref<1x128xf32, #tpu.memory_space<vmem>>, %arg4: memref<1x128xf32, #tpu.memory_space<vmem>>, %arg5: memref<1x128xf32, #tpu.memory_space<vmem>>, %arg6: memref<1x64x128xbf16, #tpu.memory_space<vmem>>) attributes {dimension_semantics = [#tpu.dimension_semantics<parallel>], iteration_bounds = array<i64: 2>, scalar_prefetch = 0 : i64, scratch_operands = 0 : i64, tpu.core_type = #tpu.core_type<tc>, window_params = [{transform_indices = @transform_0, window_bounds = array<i64: 1, 64, 3200>}, {pipeline_mode = #tpu.pipeline_mode<synchronous>, transform_indices = @transform_1, window_bounds = array<i64: 3200, 128>}, {pipeline_mode = #tpu.pipeline_mode<synchronous>, transform_indices = @transform_2, window_bounds = array<i64: 1, 128>}, {pipeline_mode = #tpu.pipeline_mode<synchronous>, transform_indices = @transform_3, window_bounds = array<i64: 1, 128>}, {pipeline_mode = #tpu.pipeline_mode<synchronous>, transform_indices = @transform_4, window_bounds = array<i64: 1, 128>}, {transform_indices = @transform_5, window_bounds = array<i64: 1, 64, 128>}]} {
    %c0 = arith.constant 0 : index
    %c0_0 = arith.constant 0 : index
    %c0_1 = arith.constant 0 : index
    %0 = vector.load %arg1[%c0, %c0_0, %c0_1] : memref<1x64x3200xbf16, #tpu.memory_space<vmem>>, vector<1x64x3200xbf16>
    %1 = vector.shape_cast %0 : vector<1x64x3200xbf16> to vector<64x3200xbf16>
    %c0_2 = arith.constant 0 : index
    %c0_3 = arith.constant 0 : index
    %2 = vector.load %arg2[%c0_2, %c0_3] : memref<3200x128xbf16, #tpu.memory_space<vmem>>, vector<3200x128xbf16>
    %cst = arith.constant dense<0.000000e+00> : vector<64x128xf32>
    %3 = tpu.matmul %1, %2, %cst {dimension_numbers = #tpu.dot_dimension_numbers<[1], [0], [0], [1], [0, 0, 1, 1], [], []>} : vector<64x3200xbf16>, vector<3200x128xbf16>, vector<64x128xf32> -> vector<64x128xf32>
    %c0_4 = arith.constant 0 : index
    %c0_5 = arith.constant 0 : index
    %4 = vector.load %arg3[%c0_4, %c0_5] : memref<1x128xf32, #tpu.memory_space<vmem>>, vector<1x128xf32>
    %5 = vector.broadcast %4 : vector<1x128xf32> to vector<64x128xf32>
    %6 = arith.addf %3, %5 : vector<64x128xf32>
    %cst_6 = arith.constant dense<0.000000e+00> : vector<128xf32>
    %7 = vector.multi_reduction <add>, %6, %cst_6 [0] : vector<64x128xf32> to vector<128xf32>
    %8 = vector.shape_cast %7 : vector<128xf32> to vector<1x128xf32>
    %cst_7 = arith.constant 6.400000e+01 : f32
    %9 = vector.broadcast %cst_7 : f32 to vector<1x128xf32>
    %10 = arith.divf %8, %9 : vector<1x128xf32>
    %11 = vector.broadcast %10 : vector<1x128xf32> to vector<64x128xf32>
    %12 = arith.subf %6, %11 : vector<64x128xf32>
    %13 = arith.mulf %12, %12 : vector<64x128xf32>
    %cst_8 = arith.constant dense<0.000000e+00> : vector<128xf32>
    %14 = vector.multi_reduction <add>, %13, %cst_8 [0] : vector<64x128xf32> to vector<128xf32>
    %15 = vector.shape_cast %14 : vector<128xf32> to vector<1x128xf32>
    %cst_9 = arith.constant 6.400000e+01 : f32
    %16 = vector.broadcast %cst_9 : f32 to vector<1x128xf32>
    %17 = arith.divf %15, %16 : vector<1x128xf32>
    %cst_10 = arith.constant 9.99999974E-6 : f32
    %18 = vector.broadcast %cst_10 : f32 to vector<1x128xf32>
    %19 = arith.addf %17, %18 : vector<1x128xf32>
    %20 = math.rsqrt %19 : vector<1x128xf32>
    %21 = vector.broadcast %20 : vector<1x128xf32> to vector<64x128xf32>
    %22 = arith.mulf %12, %21 : vector<64x128xf32>
    %c0_11 = arith.constant 0 : index
    %c0_12 = arith.constant 0 : index
    %23 = vector.load %arg4[%c0_11, %c0_12] : memref<1x128xf32, #tpu.memory_space<vmem>>, vector<1x128xf32>
    %24 = vector.broadcast %23 : vector<1x128xf32> to vector<64x128xf32>
    %25 = arith.mulf %22, %24 : vector<64x128xf32>
    %c0_13 = arith.constant 0 : index
    %c0_14 = arith.constant 0 : index
    %26 = vector.load %arg5[%c0_13, %c0_14] : memref<1x128xf32, #tpu.memory_space<vmem>>, vector<1x128xf32>
    %27 = vector.broadcast %26 : vector<1x128xf32> to vector<64x128xf32>
    %28 = arith.addf %25, %27 : vector<64x128xf32>
    %cst_15 = arith.constant 0.000000e+00 : f32
    %29 = vector.broadcast %cst_15 : f32 to vector<64x128xf32>
    %30 = arith.cmpf oge, %28, %29 : vector<64x128xf32>
    %cst_16 = arith.constant 2.000000e-01 : f32
    %31 = vector.broadcast %cst_16 : f32 to vector<64x128xf32>
    %32 = arith.mulf %31, %28 : vector<64x128xf32>
    %33 = arith.select %30, %28, %32 : vector<64x128xi1>, vector<64x128xf32>
    %34 = arith.truncf %33 : vector<64x128xf32> to vector<64x128xbf16>
    %c0_17 = arith.constant 0 : index
    %c0_18 = arith.constant 0 : index
    %c0_19 = arith.constant 0 : index
    %35 = vector.load %arg6[%c0_17, %c0_18, %c0_19] : memref<1x64x128xbf16, #tpu.memory_space<vmem>>, vector<1x64x128xbf16>
    %36 = vector.shape_cast %35 : vector<1x64x128xbf16> to vector<64x128xbf16>
    %37 = vector.shape_cast %34 : vector<64x128xbf16> to vector<1x64x128xbf16>
    tpu.vector_store %arg6[%c0_17, %c0_18, %c0_19], %37 {strides = array<i32>} : memref<1x64x128xbf16, #tpu.memory_space<vmem>>, vector<1x64x128xbf16>,
    return
  }
  func.func @transform_0(%arg0: i32) -> (i32, i32, i32) {
    %c0_i32 = arith.constant 0 : i32
    %c0_i32_0 = arith.constant 0 : i32
    %c0_i32_1 = arith.constant 0 : i32
    return %arg0, %c0_i32, %c0_i32_0 : i32, i32, i32
  }
  func.func @transform_1(%arg0: i32) -> (i32, i32) {
    %c0_i32 = arith.constant 0 : i32
    %c0_i32_0 = arith.constant 0 : i32
    %c0_i32_1 = arith.constant 0 : i32
    return %c0_i32, %c0_i32_0 : i32, i32
  }
  func.func @transform_2(%arg0: i32) -> (i32, i32) {
    %c0_i32 = arith.constant 0 : i32
    %c0_i32_0 = arith.constant 0 : i32
    %c0_i32_1 = arith.constant 0 : i32
    return %c0_i32, %c0_i32_0 : i32, i32
  }
  func.func @transform_3(%arg0: i32) -> (i32, i32) {
    %c0_i32 = arith.constant 0 : i32
    %c0_i32_0 = arith.constant 0 : i32
    %c0_i32_1 = arith.constant 0 : i32
    return %c0_i32, %c0_i32_0 : i32, i32
  }
  func.func @transform_4(%arg0: i32) -> (i32, i32) {
    %c0_i32 = arith.constant 0 : i32
    %c0_i32_0 = arith.constant 0 : i32
    %c0_i32_1 = arith.constant 0 : i32
    return %c0_i32, %c0_i32_0 : i32, i32
  }
  func.func @transform_5(%arg0: i32) -> (i32, i32, i32) {
    %c0_i32 = arith.constant 0 : i32
    %c0_i32_0 = arith.constant 0 : i32
    %c0_i32_1 = arith.constant 0 : i32
    return %arg0, %c0_i32, %c0_i32_0 : i32, i32, i32
  }
}

module attributes {stable_mosaic.version = 11 : i64} {
  func.func @_conv_in_lrelu_head_kernel(%arg0: i32, %arg1: memref<1x16x3200xbf16, #tpu.memory_space<vmem>>, %arg2: memref<3200x128xbf16, #tpu.memory_space<vmem>>, %arg3: memref<1x128xf32, #tpu.memory_space<vmem>>, %arg4: memref<1x128xf32, #tpu.memory_space<vmem>>, %arg5: memref<1x128xf32, #tpu.memory_space<vmem>>, %arg6: memref<16x128xf32, #tpu.memory_space<vmem>>, %arg7: memref<1x1x128xf32, #tpu.memory_space<vmem>>) attributes {dimension_semantics = [#tpu.dimension_semantics<parallel>], iteration_bounds = array<i64: 2>, scalar_prefetch = 0 : i64, scratch_operands = 0 : i64, tpu.core_type = #tpu.core_type<tc>, window_params = [{transform_indices = @transform_0, window_bounds = array<i64: 1, 16, 3200>}, {pipeline_mode = #tpu.pipeline_mode<synchronous>, transform_indices = @transform_1, window_bounds = array<i64: 3200, 128>}, {pipeline_mode = #tpu.pipeline_mode<synchronous>, transform_indices = @transform_2, window_bounds = array<i64: 1, 128>}, {pipeline_mode = #tpu.pipeline_mode<synchronous>, transform_indices = @transform_3, window_bounds = array<i64: 1, 128>}, {pipeline_mode = #tpu.pipeline_mode<synchronous>, transform_indices = @transform_4, window_bounds = array<i64: 1, 128>}, {pipeline_mode = #tpu.pipeline_mode<synchronous>, transform_indices = @transform_5, window_bounds = array<i64: 16, 128>}, {transform_indices = @transform_6, window_bounds = array<i64: 1, 1, 128>}]} {
    %c0 = arith.constant 0 : index
    %c0_0 = arith.constant 0 : index
    %c0_1 = arith.constant 0 : index
    %0 = vector.load %arg1[%c0, %c0_0, %c0_1] : memref<1x16x3200xbf16, #tpu.memory_space<vmem>>, vector<1x16x3200xbf16>
    %1 = vector.shape_cast %0 : vector<1x16x3200xbf16> to vector<16x3200xbf16>
    %c0_2 = arith.constant 0 : index
    %c0_3 = arith.constant 0 : index
    %2 = vector.load %arg2[%c0_2, %c0_3] : memref<3200x128xbf16, #tpu.memory_space<vmem>>, vector<3200x128xbf16>
    %cst = arith.constant dense<0.000000e+00> : vector<16x128xf32>
    %3 = tpu.matmul %1, %2, %cst {dimension_numbers = #tpu.dot_dimension_numbers<[1], [0], [0], [1], [0, 0, 1, 1], [], []>} : vector<16x3200xbf16>, vector<3200x128xbf16>, vector<16x128xf32> -> vector<16x128xf32>
    %c0_4 = arith.constant 0 : index
    %c0_5 = arith.constant 0 : index
    %4 = vector.load %arg3[%c0_4, %c0_5] : memref<1x128xf32, #tpu.memory_space<vmem>>, vector<1x128xf32>
    %5 = vector.broadcast %4 : vector<1x128xf32> to vector<16x128xf32>
    %6 = arith.addf %3, %5 : vector<16x128xf32>
    %cst_6 = arith.constant dense<0.000000e+00> : vector<128xf32>
    %7 = vector.multi_reduction <add>, %6, %cst_6 [0] : vector<16x128xf32> to vector<128xf32>
    %8 = vector.shape_cast %7 : vector<128xf32> to vector<1x128xf32>
    %cst_7 = arith.constant 1.600000e+01 : f32
    %9 = vector.broadcast %cst_7 : f32 to vector<1x128xf32>
    %10 = arith.divf %8, %9 : vector<1x128xf32>
    %11 = vector.broadcast %10 : vector<1x128xf32> to vector<16x128xf32>
    %12 = arith.subf %6, %11 : vector<16x128xf32>
    %13 = arith.mulf %12, %12 : vector<16x128xf32>
    %cst_8 = arith.constant dense<0.000000e+00> : vector<128xf32>
    %14 = vector.multi_reduction <add>, %13, %cst_8 [0] : vector<16x128xf32> to vector<128xf32>
    %15 = vector.shape_cast %14 : vector<128xf32> to vector<1x128xf32>
    %cst_9 = arith.constant 1.600000e+01 : f32
    %16 = vector.broadcast %cst_9 : f32 to vector<1x128xf32>
    %17 = arith.divf %15, %16 : vector<1x128xf32>
    %cst_10 = arith.constant 9.99999974E-6 : f32
    %18 = vector.broadcast %cst_10 : f32 to vector<1x128xf32>
    %19 = arith.addf %17, %18 : vector<1x128xf32>
    %20 = math.rsqrt %19 : vector<1x128xf32>
    %21 = vector.broadcast %20 : vector<1x128xf32> to vector<16x128xf32>
    %22 = arith.mulf %12, %21 : vector<16x128xf32>
    %c0_11 = arith.constant 0 : index
    %c0_12 = arith.constant 0 : index
    %23 = vector.load %arg4[%c0_11, %c0_12] : memref<1x128xf32, #tpu.memory_space<vmem>>, vector<1x128xf32>
    %24 = vector.broadcast %23 : vector<1x128xf32> to vector<16x128xf32>
    %25 = arith.mulf %22, %24 : vector<16x128xf32>
    %c0_13 = arith.constant 0 : index
    %c0_14 = arith.constant 0 : index
    %26 = vector.load %arg5[%c0_13, %c0_14] : memref<1x128xf32, #tpu.memory_space<vmem>>, vector<1x128xf32>
    %27 = vector.broadcast %26 : vector<1x128xf32> to vector<16x128xf32>
    %28 = arith.addf %25, %27 : vector<16x128xf32>
    %cst_15 = arith.constant 0.000000e+00 : f32
    %29 = vector.broadcast %cst_15 : f32 to vector<16x128xf32>
    %30 = arith.cmpf oge, %28, %29 : vector<16x128xf32>
    %cst_16 = arith.constant 2.000000e-01 : f32
    %31 = vector.broadcast %cst_16 : f32 to vector<16x128xf32>
    %32 = arith.mulf %31, %28 : vector<16x128xf32>
    %33 = arith.select %30, %28, %32 : vector<16x128xi1>, vector<16x128xf32>
    %c0_17 = arith.constant 0 : index
    %c0_18 = arith.constant 0 : index
    %34 = vector.load %arg6[%c0_17, %c0_18] : memref<16x128xf32, #tpu.memory_space<vmem>>, vector<16x128xf32>
    %35 = arith.mulf %33, %34 : vector<16x128xf32>
    %cst_19 = arith.constant dense<0.000000e+00> : vector<128xf32>
    %36 = vector.multi_reduction <add>, %35, %cst_19 [0] : vector<16x128xf32> to vector<128xf32>
    %37 = vector.shape_cast %36 : vector<128xf32> to vector<1x128xf32>
    %c0_20 = arith.constant 0 : index
    %c0_21 = arith.constant 0 : index
    %c0_22 = arith.constant 0 : index
    %38 = vector.load %arg7[%c0_20, %c0_21, %c0_22] : memref<1x1x128xf32, #tpu.memory_space<vmem>>, vector<1x1x128xf32>
    %39 = vector.shape_cast %38 : vector<1x1x128xf32> to vector<1x128xf32>
    %40 = vector.shape_cast %37 : vector<1x128xf32> to vector<1x1x128xf32>
    tpu.vector_store %arg7[%c0_20, %c0_21, %c0_22], %40 {strides = array<i32>} : memref<1x1x128xf32, #tpu.memory_space<vmem>>, vector<1x1x128xf32>,
    return
  }
  func.func @transform_0(%arg0: i32) -> (i32, i32, i32) {
    %c0_i32 = arith.constant 0 : i32
    %c0_i32_0 = arith.constant 0 : i32
    %c0_i32_1 = arith.constant 0 : i32
    return %arg0, %c0_i32, %c0_i32_0 : i32, i32, i32
  }
  func.func @transform_1(%arg0: i32) -> (i32, i32) {
    %c0_i32 = arith.constant 0 : i32
    %c0_i32_0 = arith.constant 0 : i32
    %c0_i32_1 = arith.constant 0 : i32
    return %c0_i32, %c0_i32_0 : i32, i32
  }
  func.func @transform_2(%arg0: i32) -> (i32, i32) {
    %c0_i32 = arith.constant 0 : i32
    %c0_i32_0 = arith.constant 0 : i32
    %c0_i32_1 = arith.constant 0 : i32
    return %c0_i32, %c0_i32_0 : i32, i32
  }
  func.func @transform_3(%arg0: i32) -> (i32, i32) {
    %c0_i32 = arith.constant 0 : i32
    %c0_i32_0 = arith.constant 0 : i32
    %c0_i32_1 = arith.constant 0 : i32
    return %c0_i32, %c0_i32_0 : i32, i32
  }
  func.func @transform_4(%arg0: i32) -> (i32, i32) {
    %c0_i32 = arith.constant 0 : i32
    %c0_i32_0 = arith.constant 0 : i32
    %c0_i32_1 = arith.constant 0 : i32
    return %c0_i32, %c0_i32_0 : i32, i32
  }
  func.func @transform_5(%arg0: i32) -> (i32, i32) {
    %c0_i32 = arith.constant 0 : i32
    %c0_i32_0 = arith.constant 0 : i32
    %c0_i32_1 = arith.constant 0 : i32
    return %c0_i32, %c0_i32_0 : i32, i32
  }
  func.func @transform_6(%arg0: i32) -> (i32, i32, i32) {
    %c0_i32 = arith.constant 0 : i32
    %c0_i32_0 = arith.constant 0 : i32
    %c0_i32_1 = arith.constant 0 : i32
    return %arg0, %c0_i32, %c0_i32_0 : i32, i32, i32
  }
}

</mosaic_0001>

<bundles_post_ra>
// kernel: dgwgan_forward.3
= control target key start
LH: loop header
LB: loop body
LE: loop exit
PB: predicated region body
PF: predicated region fallthrough
CT: control target
= control target key end

     0   :  { %s1188_s12 = smov 0   ;;  %s1315_s0 = inlined_call_operand.vmem [shape: bf16[2,256,128], index: 0, kind: input, shape index: {}]   ;;  %s1316_s1 = inlined_call_operand.vmem [shape: bf16[128,128], index: 1, kind: input, shape index: {}]   ;;  %s1317_s2 = inlined_call_operand.vmem [shape: f32[1,128], index: 2, kind: input, shape index: {}]   ;;  %s1318_s3 = inlined_call_operand.vmem [shape: bf16[2,256,128], index: 3, kind: output, shape index: {}]  }
   0x1 LB: > { %s843_s13 = sadd.s32 4294967295, %s1166_s12   ;;  %p847_p0 = scmp.ge.s32.totalorder %s1166_s12, 1  ;;  %s1166_s12 = sphi %s1188_s12, %s13_s12  }
   0x2   : > { %p137_p1 = scmp.lt.s32.totalorder %s1166_s12, 3 }
   0x4   : > { %p138_p2 = pnand %p847_p0, %p137_p1 }
   0x5   : > { %v1136_v0 = vld [vmem:[%s1316_s1] sm:$0xff] (!%p138_p2)   ;;  %p161_p3 = scmp.lt.s32.totalorder (!%p138_p2), %s843_s13, 1  ;;  %v1137_v1 = vld [vmem:[%s1316_s1 + $0x8] sm:$0xff] (!%p138_p2)   ;;  %v1138_v2 = vld [vmem:[%s1316_s1 + $0x10] sm:$0xff] (!%p138_p2)  }
   0x6   : > { %141 = sbr.rel (%p138_p2) target bundleno = 293 (0x125), region = 32  ;;  %1064 = vmatprep.subr.bf16.mxu0 (!%p138_p2), %v1136_v0  ;;  %1112 = vmatprep.subr.bf16.mxu1 (!%p138_p2), %v1136_v0  ;;  %v1139_v3 = vld [vmem:[%s1316_s1 + $0x18] sm:$0xff] (!%p138_p2)   ;;  %v1140_v6 = vld [vmem:[%s1316_s1 + $0x20] sm:$0xff] (!%p138_p2)   ;;  %v1141_v7 = vld [vmem:[%s1316_s1 + $0x28] sm:$0xff] (!%p138_p2)  }
   0x7   : > { %1065 = vmatpush3.bf16.msra.mxu0 (!%p138_p2), %v1136_v0  ;;  %1120 = vmatpush3.bf16.msra.mxu1 (!%p138_p2), %v1136_v0  ;;  %v1142_v8 = vld [vmem:[%s1316_s1 + $0x30] sm:$0xff] (!%p138_p2)   ;;  %v1143_v9 = vld [vmem:[%s1316_s1 + $0x38] sm:$0xff] (!%p138_p2)   ;;  %v1249_v24 = vld [vmem:[%s1317_s2] ss:$0 sm:$0xff] (!%p138_p2) }
   0x8   : > { %1066 = vmatprep.subr.bf16.mxu0 (!%p138_p2), %v1137_v1  ;;  %1113 = vmatprep.subr.bf16.mxu1 (!%p138_p2), %v1137_v1 }
   0xb   : > { %1067 = vmatpush3.bf16.msra.mxu0 (!%p138_p2), %v1137_v1  ;;  %1121 = vmatpush3.bf16.msra.mxu1 (!%p138_p2), %v1137_v1 }
   0xc   : > { %1068 = vmatprep.subr.bf16.mxu0 (!%p138_p2), %v1138_v2  ;;  %1114 = vmatprep.subr.bf16.mxu1 (!%p138_p2), %v1138_v2 }
   0xd   : > { %s1320_s13 = smov (!%p161_p3, %s843_s13), 1 }
   0xe   : > { %s911_s20 = sshll.u32 %s1320_s13, 7 }
   0xf   : > { %s1213_s23 = scalar_lea.vmem %s1315_s0, %s911_s20  ;;  %1069 = vmatpush3.bf16.msra.mxu0 %v1138_v2  ;;  %1122 = vmatpush3.bf16.msra.mxu1 %v1138_v2  ;;  %s1266_s11 = scalar_lea.vmem %s1318_s3, %s911_s20 }
  0x10   : > { %v1144_v4 = vld [vmem:[%s1213_s23] sm:$0xff]   ;;  %1070 = vmatprep.subr.bf16.mxu0 %v1139_v3  ;;  %1115 = vmatprep.subr.bf16.mxu1 %v1139_v3  ;;  %v1146_v10 = vld [vmem:[%s1213_s23 + $0x8] sm:$0xff]   ;;  %v1148_v12 = vld [vmem:[%s1213_s23 + $0x10] sm:$0xff]  }
  0x11   : > { %v1145_v5 = vld [vmem:[%s1213_s23 + $0x40] sm:$0xff]   ;;  %1080 = vmatprep.mubr.bf16.mxu0 %v1144_v4  ;;  %v1147_v11 = vld [vmem:[%s1213_s23 + $0x48] sm:$0xff]   ;;  %v1149_v13 = vld [vmem:[%s1213_s23 + $0x50] sm:$0xff]  }
  0x12   : > { %1096 = vmatprep.mubr.bf16.mxu1 %v1145_v5  ;;  %v1150_v14 = vld [vmem:[%s1213_s23 + $0x18] sm:$0xff]   ;;  %v1152_v16 = vld [vmem:[%s1213_s23 + $0x20] sm:$0xff]   ;;  %v1154_v18 = vld [vmem:[%s1213_s23 + $0x28] sm:$0xff]  }
  0x13   : > { %1071 = vmatpush3.bf16.msra.mxu0 %v1139_v3  ;;  %1123 = vmatpush3.bf16.msra.mxu1 %v1139_v3  ;;  %v1151_v15 = vld [vmem:[%s1213_s23 + $0x58] sm:$0xff]   ;;  %v1153_v17 = vld [vmem:[%s1213_s23 + $0x60] sm:$0xff]   ;;  %v1155_v19 = vld [vmem:[%s1213_s23 + $0x68] sm:$0xff]  }
  0x14   : > { %1072 = vmatprep.subr.bf16.mxu0 %v1140_v6  ;;  %1116 = vmatprep.subr.bf16.mxu1 %v1140_v6  ;;  %v1156_v20 = vld [vmem:[%s1213_s23 + $0x30] sm:$0xff]   ;;  %v1158_v22 = vld [vmem:[%s1213_s23 + $0x38] sm:$0xff]  }
  0x15   : > { %v1157_v21 = vld [vmem:[%s1213_s23 + $0x70] sm:$0xff]   ;;  %v1159_v23 = vld [vmem:[%s1213_s23 + $0x78] sm:$0xff]  }
  0x17   : > { %1073 = vmatpush3.bf16.msra.mxu0 %v1140_v6  ;;  %1124 = vmatpush3.bf16.msra.mxu1 %v1140_v6 }
  0x18   : > { %1074 = vmatprep.subr.bf16.mxu0 %v1141_v7  ;;  %1117 = vmatprep.subr.bf16.mxu1 %v1141_v7 }
  0x1b   : > { %1075 = vmatpush3.bf16.msra.mxu0 %v1141_v7  ;;  %1125 = vmatpush3.bf16.msra.mxu1 %v1141_v7 }
  0x1c   : > { %1076 = vmatprep.subr.bf16.mxu0 %v1142_v8  ;;  %1118 = vmatprep.subr.bf16.mxu1 %v1142_v8 }
  0x1f   : > { %1077 = vmatpush3.bf16.msra.mxu0 %v1142_v8  ;;  %1126 = vmatpush3.bf16.msra.mxu1 %v1142_v8 }
  0x20   : > { %1078 = vmatprep.subr.bf16.mxu0 %v1143_v9  ;;  %1119 = vmatprep.subr.bf16.mxu1 %v1143_v9 }
  0x23   : > { %1079 = vmatpush3.bf16.msra.mxu0 %v1143_v9  ;;  %1127 = vmatpush3.bf16.msra.mxu1 %v1143_v9 }
  0x26   : > { %1081 = vmatmul.mubr.bf16.vlgmr.msra.gmra.mrb[0].mxu0 %v1146_v10  ;;  %1097 = vmatmul.mubr.bf16.vlgmr.msra.gmra.mrb[0].mxu1 %v1147_v11 }
  0x27   : > { %1084 = vmatprep.mubr.bf16.mxu0 %v1148_v12  ;;  %1100 = vmatprep.mubr.bf16.mxu1 %v1149_v13 }
  0x2e   : > { %1085 = vmatmul.mubr.bf16.gmra.mrb[4].mxu0 %v1150_v14  ;;  %1101 = vmatmul.mubr.bf16.gmra.mrb[4].mxu1 %v1151_v15 }
  0x2f   : > { %1088 = vmatprep.mubr.bf16.mxu0 %v1152_v16  ;;  %1104 = vmatprep.mubr.bf16.mxu1 %v1153_v17 }
  0x36   : > { %1089 = vmatmul.mubr.bf16.gmra.mrb[8].mxu0 %v1154_v18  ;;  %1105 = vmatmul.mubr.bf16.gmra.mrb[8].mxu1 %v1155_v19 }
  0x37   : > { %1092 = vmatprep.mubr.bf16.mxu0 %v1156_v20  ;;  %1108 = vmatprep.mubr.bf16.mxu1 %v1157_v21 }
  0x3e   : > { %1093 = vmatmul.mubr.bf16.gmra.mrb[12].mxu0 %v1158_v22  ;;  %1109 = vmatmul.mubr.bf16.gmra.mrb[12].mxu1 %v1159_v23 }
  0xf9   : > { %v1082_v25 = vpop.f32.mrb[0].mxu0  ;;  %v1098_v26 = vpop.f32.mrb[0].mxu1 }
  0xfa   : > { %v414_v27 = vadd.f32 %v1082_v25, %v1249_v24  ;;  %v478_v28 = vadd.f32 %v1098_v26, %v1249_v24  ;;  %v405_v29 = vpop.f32.mrb[1].mxu0  ;;  %v469_v30 = vpop.f32.mrb[1].mxu1 }
  0xfb   : > { %v406_v31 = vadd.f32 %v1249_v24, %v405_v29  ;;  %v470_v32 = vadd.f32 %v1249_v24, %v469_v30  ;;  %v1083_v33 = vpop.f32.mrb[2].mxu0  ;;  %v1099_v34 = vpop.f32.mrb[2].mxu1 }
  0xfc   : > { %vm534_vm0 = vcmp.ge.f32.partialorder %v414_v27, 0.0  ;;  %v566_v35 = vmul.f32 0.2, %v414_v27  ;;  %vm550_vm1 = vcmp.ge.f32.partialorder %v478_v28, 0.0  ;;  %v582_v36 = vmul.f32 0.2, %v478_v28 }
  0xfd   : > { %vm532_vm2 = vcmp.ge.f32.partialorder %v406_v31, 0.0  ;;  %v564_v37 = vmul.f32 0.2, %v406_v31  ;;  %vm548_vm3 = vcmp.ge.f32.partialorder %v470_v32, 0.0  ;;  %v580_v38 = vmul.f32 0.2, %v470_v32 }
  0xfe   : > { %v417_v39 = vadd.f32 %v1083_v33, %v1249_v24  ;;  %v481_v40 = vadd.f32 %v1099_v34, %v1249_v24  ;;  %v408_v41 = vpop.f32.mrb[3].mxu0  ;;  %v472_v42 = vpop.f32.mrb[3].mxu1  ;;  %v598_v43 = vsel %vm534_vm0, %v414_v27, %v566_v35  ;;  %v614_v44 = vsel %vm550_vm1, %v478_v28, %v582_v36 }
  0xff   : > { %v409_v45 = vadd.f32 %v1249_v24, %v408_v41  ;;  %v473_v46 = vadd.f32 %v1249_v24, %v472_v42  ;;  %v596_v51 = vsel %vm532_vm2, %v406_v31, %v564_v37  ;;  %v612_v52 = vsel %vm548_vm3, %v470_v32, %v580_v38 }
 0x100   : > { %vm535_vm4 = vcmp.ge.f32.partialorder %v417_v39, 0.0  ;;  %v567_v47 = vmul.f32 0.2, %v417_v39  ;;  %vm551_vm5 = vcmp.ge.f32.partialorder %v481_v40, 0.0  ;;  %v583_v48 = vmul.f32 0.2, %v481_v40 }
 0x101   : > { %vm533_vm6 = vcmp.ge.f32.partialorder %v409_v45, 0.0  ;;  %v565_v49 = vmul.f32 0.2, %v409_v45  ;;  %vm549_vm7 = vcmp.ge.f32.partialorder %v473_v46, 0.0  ;;  %v581_v50 = vmul.f32 0.2, %v473_v46 }
 0x102   : > { %v599_v53 = vsel %vm535_vm4, %v417_v39, %v567_v47  ;;  %v615_v54 = vsel %vm551_vm5, %v481_v40, %v583_v48  ;;  %v1086_v55 = vpop.f32.mrb[4].mxu0  ;;  %v1102_v56 = vpop.f32.mrb[4].mxu1 }
 0x103   : > { %v953_v57 = vpack.c.bf16 %v599_v53, %v598_v43  ;;  %v993_v58 = vpack.c.bf16 %v615_v54, %v614_v44  ;;  %v597_v59 = vsel %vm533_vm6, %v409_v45, %v565_v49  ;;  %v613_v60 = vsel %vm549_vm7, %v473_v46, %v581_v50  ;;  %v421_v61 = vpop.f32.mrb[5].mxu0  ;;  %v485_v62 = vpop.f32.mrb[5].mxu1 }
 0x104   : > { %v948_v63 = vpack.c.bf16 %v597_v59, %v596_v51  ;;  %v988_v0 = vpack.c.bf16 %v613_v60, %v612_v52  ;;  %v430_v1 = vadd.f32 %v1086_v55, %v1249_v24  ;;  %v494_v2 = vadd.f32 %v1102_v56, %v1249_v24  ;;  %v1087_v3 = vpop.f32.mrb[6].mxu0  ;;  %v1103_v4 = vpop.f32.mrb[6].mxu1 }
 0x105   : > { %1025 = vst [vmem:[%s1266_s11 + $0x8] sm:$0xff] %v953_v57   ;;  %1033 = vst [vmem:[%s1266_s11 + $0x48] sm:$0xff] %v993_v58   ;;  %v422_v5 = vadd.f32 %v1249_v24, %v421_v61  ;;  %v486_v6 = vadd.f32 %v1249_v24, %v485_v62  ;;  %v433_v7 = vadd.f32 %v1087_v3, %v1249_v24  ;;  %v424_v9 = vpop.f32.mrb[7].mxu0  ;;  %v488_v10 = vpop.f32.mrb[7].mxu1 }
 0x106   : > { %v497_v8 = vadd.f32 %v1103_v4, %v1249_v24  ;;  %949 = vst [vmem:[%s1266_s11] sm:$0xff] %v948_v63   ;;  %1032 = vst [vmem:[%s1266_s11 + $0x40] sm:$0xff] %v988_v0   ;;  %vm538_vm8 = vcmp.ge.f32.partialorder %v430_v1, 0.0  ;;  %v570_v11 = vmul.f32 0.2, %v430_v1  ;;  %vm554_vm9 = vcmp.ge.f32.partialorder %v494_v2, 0.0 }
 0x107   : > { %v586_v12 = vmul.f32 0.2, %v494_v2  ;;  %vm536_vm10 = vcmp.ge.f32.partialorder %v422_v5, 0.0  ;;  %v568_v13 = vmul.f32 0.2, %v422_v5  ;;  %vm552_vm11 = vcmp.ge.f32.partialorder %v486_v6, 0.0 }
 0x108   : > { %v602_v14 = vsel %vm538_vm8, %v430_v1, %v570_v11  ;;  %v584_v15 = vmul.f32 0.2, %v486_v6  ;;  %vm539_vm12 = vcmp.ge.f32.partialorder %v433_v7, 0.0  ;;  %v571_v16 = vmul.f32 0.2, %v433_v7 }
 0x109   : > { %v618_v17 = vsel %vm554_vm9, %v494_v2, %v586_v12  ;;  %v600_v18 = vsel %vm536_vm10, %v422_v5, %v568_v13  ;;  %vm555_vm13 = vcmp.ge.f32.partialorder %v497_v8, 0.0  ;;  %v587_v19 = vmul.f32 0.2, %v497_v8  ;;  %v1090_v20 = vpop.f32.mrb[8].mxu0  ;;  %v1106_v21 = vpop.f32.mrb[8].mxu1 }
 0x10a   : > { %v603_v22 = vsel %vm539_vm12, %v433_v7, %v571_v16  ;;  %v425_v23 = vadd.f32 %v1249_v24, %v424_v9  ;;  %v489_v25 = vadd.f32 %v1249_v24, %v488_v10  ;;  %v446_v26 = vadd.f32 %v1090_v20, %v1249_v24  ;;  %v437_v27 = vpop.f32.mrb[9].mxu0  ;;  %v501_v28 = vpop.f32.mrb[9].mxu1 }
 0x10b   : > { %v963_v29 = vpack.c.bf16 %v603_v22, %v602_v14  ;;  %v619_v30 = vsel %vm555_vm13, %v497_v8, %v587_v19  ;;  %v510_v31 = vadd.f32 %v1106_v21, %v1249_v24  ;;  %v438_v32 = vadd.f32 %v1249_v24, %v437_v27  ;;  %v1091_v33 = vpop.f32.mrb[10].mxu0  ;;  %v1107_v34 = vpop.f32.mrb[10].mxu1 }
 0x10c   : > { %v1003_v35 = vpack.c.bf16 %v619_v30, %v618_v17  ;;  %vm537_vm14 = vcmp.ge.f32.partialorder %v425_v23, 0.0  ;;  %v569_v36 = vmul.f32 0.2, %v425_v23  ;;  %vm553_vm15 = vcmp.ge.f32.partialorder %v489_v25, 0.0  ;;  %v440_v37 = vpop.f32.mrb[11].mxu0  ;;  %v504_v38 = vpop.f32.mrb[11].mxu1 }
 0x10d   : > { %1027 = vst [vmem:[%s1266_s11 + $0x18] sm:$0xff] %v963_v29   ;;  %v585_v39 = vmul.f32 0.2, %v489_v25  ;;  %vm542_vm0 = vcmp.ge.f32.partialorder %v446_v26, 0.0  ;;  %v574_v40 = vmul.f32 0.2, %v446_v26  ;;  %v616_v41 = vsel %vm552_vm11, %v486_v6, %v584_v15 }
 0x10e   : > { %vm558_vm1 = vcmp.ge.f32.partialorder %v510_v31, 0.0  ;;  %1035 = vst [vmem:[%s1266_s11 + $0x58] sm:$0xff] %v1003_v35   ;;  %v601_v42 = vsel %vm537_vm14, %v425_v23, %v569_v36  ;;  %v590_v43 = vmul.f32 0.2, %v510_v31  ;;  %vm540_vm2 = vcmp.ge.f32.partialorder %v438_v32, 0.0 }
 0x10f   : > { %v958_v44 = vpack.c.bf16 %v601_v42, %v600_v18  ;;  %v617_v45 = vsel %vm553_vm15, %v489_v25, %v585_v39  ;;  %v572_v46 = vmul.f32 0.2, %v438_v32  ;;  %v502_v47 = vadd.f32 %v1249_v24, %v501_v28 }
 0x110   : > { %v998_v48 = vpack.c.bf16 %v617_v45, %v616_v41  ;;  %v606_v49 = vsel %vm542_vm0, %v446_v26, %v574_v40  ;;  %v622_v50 = vsel %vm558_vm1, %v510_v31, %v590_v43  ;;  %v449_v51 = vadd.f32 %v1091_v33, %v1249_v24 }
 0x111   : > { %1026 = vst [vmem:[%s1266_s11 + $0x10] sm:$0xff] %v958_v44   ;;  %vm556_vm3 = vcmp.ge.f32.partialorder %v502_v47, 0.0  ;;  %v588_v52 = vmul.f32 0.2, %v502_v47  ;;  %v513_v53 = vadd.f32 %v1107_v34, %v1249_v24  ;;  %v441_v54 = vadd.f32 %v1249_v24, %v440_v37  ;;  %v1094_v55 = vpop.f32.mrb[12].mxu0  ;;  %v1110_v56 = vpop.f32.mrb[12].mxu1 }
 0x112   : > { %1034 = vst [vmem:[%s1266_s11 + $0x50] sm:$0xff] %v998_v48   ;;  %vm543_vm4 = vcmp.ge.f32.partialorder %v449_v51, 0.0  ;;  %v575_v57 = vmul.f32 0.2, %v449_v51  ;;  %v505_v58 = vadd.f32 %v1249_v24, %v504_v38  ;;  %v462_v59 = vadd.f32 %v1094_v55, %v1249_v24  ;;  %v453_v60 = vpop.f32.mrb[13].mxu0  ;;  %v517_v61 = vpop.f32.mrb[13].mxu1 }
 0x113   : > { %v604_v62 = vsel %vm540_vm2, %v438_v32, %v572_v46  ;;  %vm559_vm5 = vcmp.ge.f32.partialorder %v513_v53, 0.0  ;;  %v591_v63 = vmul.f32 0.2, %v513_v53  ;;  %vm541_vm6 = vcmp.ge.f32.partialorder %v441_v54, 0.0  ;;  %v1095_v0 = vpop.f32.mrb[14].mxu0  ;;  %v1111_v1 = vpop.f32.mrb[14].mxu1 }
 0x114   : > { %v607_v2 = vsel %vm543_vm4, %v449_v51, %v575_v57  ;;  %v573_v3 = vmul.f32 0.2, %v441_v54  ;;  %vm557_vm7 = vcmp.ge.f32.partialorder %v505_v58, 0.0  ;;  %v589_v4 = vmul.f32 0.2, %v505_v58  ;;  %v456_v5 = vpop.f32.mrb[15].mxu0 }
 0x115   : > { %v620_v6 = vsel %vm556_vm3, %v502_v47, %v588_v52  ;;  %v973_v7 = vpack.c.bf16 %v607_v2, %v606_v49  ;;  %v623_v8 = vsel %vm559_vm5, %v513_v53, %v591_v63  ;;  %v578_v9 = vmul.f32 0.2, %v462_v59  ;;  %v520_v10 = vpop.f32.mrb[15].mxu1 }
 0x116   : > { %v1013_v11 = vpack.c.bf16 %v623_v8, %v622_v50  ;;  %v605_v12 = vsel %vm541_vm6, %v441_v54, %v573_v3  ;;  %v621_v13 = vsel %vm557_vm7, %v505_v58, %v589_v4  ;;  %v526_v14 = vadd.f32 %v1110_v56, %v1249_v24 }
 0x117   : > { %1029 = vst [vmem:[%s1266_s11 + $0x28] sm:$0xff] %v973_v7   ;;  %v968_v15 = vpack.c.bf16 %v605_v12, %v604_v62  ;;  %v1008_v16 = vpack.c.bf16 %v621_v13, %v620_v6  ;;  %vm546_vm8 = vcmp.ge.f32.partialorder %v462_v59, 0.0  ;;  %v454_v17 = vadd.f32 %v1249_v24, %v453_v60 }
 0x118   : > { %1037 = vst [vmem:[%s1266_s11 + $0x68] sm:$0xff] %v1013_v11   ;;  %vm562_vm9 = vcmp.ge.f32.partialorder %v526_v14, 0.0  ;;  %v594_v18 = vmul.f32 0.2, %v526_v14  ;;  %v518_v19 = vadd.f32 %v1249_v24, %v517_v61  ;;  %v465_v20 = vadd.f32 %v1095_v0, %v1249_v24 }
 0x119   : > { %1028 = vst [vmem:[%s1266_s11 + $0x20] sm:$0xff] %v968_v15   ;;  %1036 = vst [vmem:[%s1266_s11 + $0x60] sm:$0xff] %v1008_v16   ;;  %v576_v21 = vmul.f32 0.2, %v454_v17  ;;  %v529_v22 = vadd.f32 %v1111_v1, %v1249_v24  ;;  %v457_v23 = vadd.f32 %v1249_v24, %v456_v5  ;;  %v610_v25 = vsel %vm546_vm8, %v462_v59, %v578_v9 }
 0x11a   : > { %vm544_vm10 = vcmp.ge.f32.partialorder %v454_v17, 0.0  ;;  %vm547_vm11 = vcmp.ge.f32.partialorder %v465_v20, 0.0  ;;  %v626_v26 = vsel %vm562_vm9, %v526_v14, %v594_v18  ;;  %v579_v27 = vmul.f32 0.2, %v465_v20 }
 0x11b   : > { %vm563_vm12 = vcmp.ge.f32.partialorder %v529_v22, 0.0  ;;  %v595_v28 = vmul.f32 0.2, %v529_v22  ;;  %vm560_vm13 = vcmp.ge.f32.partialorder %v518_v19, 0.0  ;;  %vm545_vm14 = vcmp.ge.f32.partialorder %v457_v23, 0.0 }
 0x11c   : > { %v577_v29 = vmul.f32 0.2, %v457_v23  ;;  %v521_v30 = vadd.f32 %v1249_v24, %v520_v10  ;;  %v608_v31 = vsel %vm544_vm10, %v454_v17, %v576_v21  ;;  %v592_v32 = vmul.f32 0.2, %v518_v19 }
 0x11d   : > { %v611_v33 = vsel %vm547_vm11, %v465_v20, %v579_v27  ;;  %v627_v34 = vsel %vm563_vm12, %v529_v22, %v595_v28 }
 0x11e   : > { %v983_v35 = vpack.c.bf16 %v611_v33, %v610_v25  ;;  %v1023_v36 = vpack.c.bf16 %v627_v34, %v626_v26  ;;  %v609_v37 = vsel %vm545_vm14, %v457_v23, %v577_v29  ;;  %vm561_vm15 = vcmp.ge.f32.partialorder %v521_v30, 0.0 }
 0x11f   : > { %v978_v38 = vpack.c.bf16 %v609_v37, %v608_v31  ;;  %v593_v39 = vmul.f32 0.2, %v521_v30  ;;  %v624_v40 = vsel %vm560_vm13, %v518_v19, %v592_v32 }
 0x120   : > { %1031 = vst [vmem:[%s1266_s11 + $0x38] sm:$0xff] %v983_v35   ;;  %1039 = vst [vmem:[%s1266_s11 + $0x78] sm:$0xff] %v1023_v36  }
 0x121   : > { %1030 = vst [vmem:[%s1266_s11 + $0x30] sm:$0xff] %v978_v38   ;;  %v625_v41 = vsel %vm561_vm15, %v521_v30, %v593_v39 }
 0x122   : > { %v1018_v42 = vpack.c.bf16 %v625_v41, %v624_v40 }
 0x124   : > { %1038 = vst [vmem:[%s1266_s11 + $0x70] sm:$0xff] %v1018_v42  }
 0x125 PF: > { %s13_s12 = sadd.s32 1, %s1166_s12  }
 0x126   : > { %p10_p4 = scmp.ge.s32.totalorder %s13_s12, 4  }
 0x128   :  { %12 = sbr.rel (!%p10_p4) target bundleno = 1 (0x1), region = 62 }

// kernel: dgwgan_forward.4
= control target key start
LH: loop header
LB: loop body
LE: loop exit
PB: predicated region body
PF: predicated region fallthrough
CT: control target
= control target key end

     0   :  { %s4772_s18 = smov 0   ;;  %s5547_s0 = inlined_call_operand.vmem [shape: bf16[2,64,3200], index: 0, kind: input, shape index: {}]   ;;  %s5548_s1 = inlined_call_operand.vmem [shape: bf16[3200,128], index: 1, kind: input, shape index: {}]   ;;  %s5549_s2 = inlined_call_operand.vmem [shape: f32[1,128], index: 2, kind: input, shape index: {}]   ;;  %s5550_s3 = inlined_call_operand.vmem [shape: f32[1,128], index: 3, kind: input, shape index: {}]   ;;  %s5551_s4 = inlined_call_operand.vmem [shape: f32[1,128], index: 4, kind: input, shape index: {}]   ;;  %s5552_s5 = inlined_call_operand.vmem [shape: bf16[2,64,128], index: 5, kind: output, shape index: {}]  }
   0x1 LB: > { %s3490_s19 = sadd.s32 4294967295, %s4740_s18   ;;  %p3494_p0 = scmp.ge.s32.totalorder %s4740_s18, 1  ;;  %s4740_s18 = sphi %s4772_s18, %s15_s18  }
   0x2   : > { %p187_p1 = scmp.lt.s32.totalorder %s4740_s18, 3 }
   0x4   : > { %p188_p2 = pnand %p3494_p0, %p187_p1 }
   0x5   : > { %v4384_v0 = vld [vmem:[%s5548_s1 + $0x40] sm:$0xff] (!%p188_p2)   ;;  %v4388_v4 = vld [vmem:[%s5548_s1 + $0x48] sm:$0xff] (!%p188_p2)   ;;  %v4392_v8 = vld [vmem:[%s5548_s1 + $0x50] sm:$0xff] (!%p188_p2)   ;;  %p215_p3 = scmp.lt.s32.totalorder (!%p188_p2), %s3490_s19, 1 }
   0x6   : > { %191 = sbr.rel (%p188_p2) target bundleno = 560 (0x230), region = 40  ;;  %v4385_v1 = vld [vmem:[%s5548_s1 + $0xc0] sm:$0xff] (!%p188_p2)   ;;  %3843 = vmatprep.subr.bf16.mxu0 (!%p188_p2), %v4384_v0  ;;  %v4389_v5 = vld [vmem:[%s5548_s1 + $0xc8] sm:$0xff] (!%p188_p2)   ;;  %v4393_v9 = vld [vmem:[%s5548_s1 + $0xd0] sm:$0xff] (!%p188_p2)  }
   0x7   : > { %v4386_v2 = vld [vmem:[%s5548_s1] sm:$0xff] (!%p188_p2)   ;;  %3883 = vmatprep.subr.bf16.mxu1 (!%p188_p2), %v4385_v1  ;;  %v4390_v6 = vld [vmem:[%s5548_s1 + $0x8] sm:$0xff] (!%p188_p2)   ;;  %v4394_v10 = vld [vmem:[%s5548_s1 + $0x10] sm:$0xff] (!%p188_p2)  }
   0x8   : > { %v4387_v3 = vld [vmem:[%s5548_s1 + $0x80] sm:$0xff] (!%p188_p2)   ;;  %3844 = vmatpush3.bf16.msra.mxu0 (!%p188_p2), %v4386_v2  ;;  %v4391_v7 = vld [vmem:[%s5548_s1 + $0x88] sm:$0xff] (!%p188_p2)   ;;  %v4395_v11 = vld [vmem:[%s5548_s1 + $0x90] sm:$0xff] (!%p188_p2)  }
   0x9   : > { %3884 = vmatpush3.bf16.msra.mxu1 (!%p188_p2), %v4387_v3  ;;  %3845 = vmatprep.subr.bf16.mxu0 (!%p188_p2), %v4388_v4  ;;  %v4396_v12 = vld [vmem:[%s5548_s1 + $0x58] sm:$0xff] (!%p188_p2)   ;;  %v4400_v16 = vld [vmem:[%s5548_s1 + $0x60] sm:$0xff] (!%p188_p2)   ;;  %v4404_v20 = vld [vmem:[%s5548_s1 + $0x68] sm:$0xff] (!%p188_p2)  }
   0xa   : > { %3885 = vmatprep.subr.bf16.mxu1 (!%p188_p2), %v4389_v5  ;;  %v4397_v13 = vld [vmem:[%s5548_s1 + $0xd8] sm:$0xff] (!%p188_p2)   ;;  %v4401_v17 = vld [vmem:[%s5548_s1 + $0xe0] sm:$0xff] (!%p188_p2)   ;;  %v4405_v21 = vld [vmem:[%s5548_s1 + $0xe8] sm:$0xff] (!%p188_p2)  }
   0xb   : > { %v4398_v14 = vld [vmem:[%s5548_s1 + $0x18] sm:$0xff] (!%p188_p2)   ;;  %v4402_v18 = vld [vmem:[%s5548_s1 + $0x20] sm:$0xff] (!%p188_p2)   ;;  %v4406_v22 = vld [vmem:[%s5548_s1 + $0x28] sm:$0xff] (!%p188_p2)  }
   0xc   : > { %3846 = vmatpush3.bf16.msra.mxu0 (!%p188_p2), %v4390_v6  ;;  %v4399_v15 = vld [vmem:[%s5548_s1 + $0x98] sm:$0xff] (!%p188_p2)   ;;  %v4403_v19 = vld [vmem:[%s5548_s1 + $0xa0] sm:$0xff] (!%p188_p2)   ;;  %v4407_v23 = vld [vmem:[%s5548_s1 + $0xa8] sm:$0xff] (!%p188_p2)  }
   0xd   : > { %3886 = vmatpush3.bf16.msra.mxu1 %v4391_v7  ;;  %3847 = vmatprep.subr.bf16.mxu0 %v4392_v8  ;;  %s5554_s19 = smov (!%p215_p3, %s3490_s19), 1  ;;  %v4408_v24 = vld [vmem:[%s5548_s1 + $0x70] sm:$0xff]   ;;  %v4412_v28 = vld [vmem:[%s5548_s1 + $0x78] sm:$0xff]   ;;  %v4422_v36 = vld [vmem:[%s5548_s1 + $0x140] sm:$0xff]  }
   0xe   : > { %3887 = vmatprep.subr.bf16.mxu1 %v4393_v9  ;;  %v4409_v25 = vld [vmem:[%s5548_s1 + $0xf0] sm:$0xff]   ;;  %s4375_s26 = smul.u32 800, %s5554_s19  ;;  %v4413_v29 = vld [vmem:[%s5548_s1 + $0xf8] sm:$0xff]   ;;  %v4423_v37 = vld [vmem:[%s5548_s1 + $0x1c0] sm:$0xff]   ;;  %s3811_s30 = sshll.u32 %s5554_s19, 5 }
   0xf   : > { %v4410_v26 = vld [vmem:[%s5548_s1 + $0x30] sm:$0xff]   ;;  %v4414_v30 = vld [vmem:[%s5548_s1 + $0x38] sm:$0xff]   ;;  %v4424_v38 = vld [vmem:[%s5548_s1 + $0x100] sm:$0xff]   ;;  %s224_s19 = scalar_lea.vmem %s5552_s5, %s3811_s30 }
  0x10   : > { %3848 = vmatpush3.bf16.msra.mxu0 %v4394_v10  ;;  %v4411_v27 = vld [vmem:[%s5548_s1 + $0xb0] sm:$0xff]   ;;  %s4880_s12 = scalar_lea.vmem %s5547_s0, %s4375_s26  ;;  %v4415_v31 = vld [vmem:[%s5548_s1 + $0xb8] sm:$0xff]   ;;  %v4425_v39 = vld [vmem:[%s5548_s1 + $0x180] sm:$0xff]  }
  0x11   : > { %3888 = vmatpush3.bf16.msra.mxu1 %v4395_v11  ;;  %3849 = vmatprep.subr.bf16.mxu0 %v4396_v12  ;;  %v4416_v32 = vld [vmem:[%s4880_s12] ss:$100 sps:$4 sm:$0xff]   ;;  %v4419_v34 = vld [vmem:[%s4880_s12 + $0x8] ss:$100 sps:$4 sm:$0xff]   ;;  %v4432_v45 = vld [vmem:[%s4880_s12 + $0xd4] ss:$100 sps:$4 sm:$0xff]  }
  0x12   : > { %3889 = vmatprep.subr.bf16.mxu1 %v4397_v13  ;;  %v4418_v33 = vld [vmem:[%s4880_s12 + $0x4] ss:$100 sps:$4 sm:$0xff]   ;;  %v4421_v35 = vld [vmem:[%s4880_s12 + $0xc] ss:$100 sps:$4 sm:$0xff]   ;;  %v4440_v52 = vld [vmem:[%s5548_s1 + $0x158] sm:$0xff]  }
  0x13   : > { %2473 = vmatprep.mubr.bf16.mxu0 %v4418_v33  ;;  %2538 = vmatprep.mubr.bf16.mxu1 %v4421_v35  ;;  %v4426_v40 = vld [vmem:[%s5548_s1 + $0x148] sm:$0xff]   ;;  %v4435_v47 = vld [vmem:[%s4880_s12 + $0xd0] ss:$100 sps:$4 sm:$0xff]   ;;  %v4441_v53 = vld [vmem:[%s5548_s1 + $0x1d8] sm:$0xff]  }
  0x14   : > { %3850 = vmatpush3.bf16.msra.mxu0 %v4398_v14  ;;  %v4427_v41 = vld [vmem:[%s5548_s1 + $0x1c8] sm:$0xff]   ;;  %v4436_v48 = vld [vmem:[%s5548_s1 + $0x150] sm:$0xff]   ;;  %v4442_v54 = vld [vmem:[%s5548_s1 + $0x118] sm:$0xff]  }
  0x15   : > { %3890 = vmatpush3.bf16.msra.mxu1 %v4399_v15  ;;  %3851 = vmatprep.subr.bf16.mxu0 %v4400_v16  ;;  %v4428_v42 = vld [vmem:[%s5548_s1 + $0x108] sm:$0xff]   ;;  %v4437_v49 = vld [vmem:[%s5548_s1 + $0x1d0] sm:$0xff]   ;;  %v4443_v55 = vld [vmem:[%s5548_s1 + $0x198] sm:$0xff]  }
  0x16   : > { %3891 = vmatprep.subr.bf16.mxu1 %v4401_v17  ;;  %v4429_v43 = vld [vmem:[%s5548_s1 + $0x188] sm:$0xff]   ;;  %v4438_v50 = vld [vmem:[%s5548_s1 + $0x110] sm:$0xff]   ;;  %v4446_v57 = vld [vmem:[%s4880_s12 + $0x19c] ss:$100 sps:$4 sm:$0xff]  }
  0x17   : > { %v4430_v44 = vld [vmem:[%s4880_s12 + $0xcc] ss:$100 sps:$4 sm:$0xff]   ;;  %v4444_v56 = vld [vmem:[%s4880_s12 + $0x194] ss:$100 sps:$4 sm:$0xff]   ;;  %v4450_v60 = vld [vmem:[%s5548_s1 + $0x160] sm:$0xff]  }
  0x18   : > { %3852 = vmatpush3.bf16.msra.mxu0 %v4402_v18  ;;  %v4434_v46 = vld [vmem:[%s4880_s12 + $0xc8] ss:$100 sps:$4 sm:$0xff]   ;;  %v4439_v51 = vld [vmem:[%s5548_s1 + $0x190] sm:$0xff]   ;;  %v4449_v59 = vld [vmem:[%s4880_s12 + $0x198] ss:$100 sps:$4 sm:$0xff]  }
  0x19   : > { %3892 = vmatpush3.bf16.msra.mxu1 %v4403_v19  ;;  %3853 = vmatprep.subr.bf16.mxu0 %v4404_v20  ;;  %v4448_v58 = vld [vmem:[%s4880_s12 + $0x190] ss:$100 sps:$4 sm:$0xff]   ;;  %v4451_v61 = vld [vmem:[%s5548_s1 + $0x1e0] sm:$0xff]   ;;  %v4454_v0 = vld [vmem:[%s5548_s1 + $0x168] sm:$0xff]  }
  0x1a   : > { %3893 = vmatprep.subr.bf16.mxu1 %v4405_v21  ;;  %v4452_v62 = vld [vmem:[%s5548_s1 + $0x120] sm:$0xff]   ;;  %v4455_v1 = vld [vmem:[%s5548_s1 + $0x1e8] sm:$0xff]   ;;  %v4462_v6 = vld [vmem:[%s4880_s12 + $0x258] ss:$100 sps:$4 sm:$0xff]  }
  0x1b   : > { %v4453_v63 = vld [vmem:[%s5548_s1 + $0x1a0] sm:$0xff]   ;;  %v4456_v2 = vld [vmem:[%s5548_s1 + $0x128] sm:$0xff]   ;;  %v4464_v8 = vld [vmem:[%s5548_s1 + $0x170] sm:$0xff]  }
  0x1c   : > { %3854 = vmatpush3.bf16.msra.mxu0 %v4406_v22  ;;  %v4457_v3 = vld [vmem:[%s5548_s1 + $0x1a8] sm:$0xff]   ;;  %v4458_v4 = vld [vmem:[%s4880_s12 + $0x25c] ss:$100 sps:$4 sm:$0xff]   ;;  %v4465_v9 = vld [vmem:[%s5548_s1 + $0x1f0] sm:$0xff]  }
  0x1d   : > { %3894 = vmatpush3.bf16.msra.mxu1 %v4407_v23  ;;  %3855 = vmatprep.subr.bf16.mxu0 %v4408_v24  ;;  %v4460_v5 = vld [vmem:[%s4880_s12 + $0x264] ss:$100 sps:$4 sm:$0xff]   ;;  %v4466_v10 = vld [vmem:[%s5548_s1 + $0x130] sm:$0xff]   ;;  %v4468_v12 = vld [vmem:[%s5548_s1 + $0x178] sm:$0xff]  }
  0x1e   : > { %3895 = vmatprep.subr.bf16.mxu1 %v4409_v25  ;;  %v4463_v7 = vld [vmem:[%s4880_s12 + $0x260] ss:$100 sps:$4 sm:$0xff]   ;;  %v4467_v11 = vld [vmem:[%s5548_s1 + $0x1b0] sm:$0xff]   ;;  %v4469_v13 = vld [vmem:[%s5548_s1 + $0x1f8] sm:$0xff]  }
  0x1f   : > { %v4470_v14 = vld [vmem:[%s5548_s1 + $0x138] sm:$0xff]   ;;  %v4472_v16 = vld [vmem:[%s4880_s12 + $0x10] ss:$100 sps:$4 sm:$0xff]   ;;  %v4478_v20 = vld [vmem:[%s5548_s1 + $0x240] sm:$0xff]  }
  0x20   : > { %3856 = vmatpush3.bf16.msra.mxu0 %v4410_v26  ;;  %v4471_v15 = vld [vmem:[%s5548_s1 + $0x1b8] sm:$0xff]   ;;  %v4479_v21 = vld [vmem:[%s5548_s1 + $0x2c0] sm:$0xff]   ;;  %v4482_v24 = vld [vmem:[%s5548_s1 + $0x248] sm:$0xff]  }
  0x21   : > { %3896 = vmatpush3.bf16.msra.mxu1 %v4411_v27  ;;  %3857 = vmatprep.subr.bf16.mxu0 %v4412_v28  ;;  %v4474_v17 = vld [vmem:[%s4880_s12 + $0x14] ss:$100 sps:$4 sm:$0xff]   ;;  %v4477_v19 = vld [vmem:[%s4880_s12 + $0x1c] ss:$100 sps:$4 sm:$0xff]   ;;  %v4483_v25 = vld [vmem:[%s5548_s1 + $0x2c8] sm:$0xff]  }
  0x22   : > { %3897 = vmatprep.subr.bf16.mxu1 %v4413_v29  ;;  %v4475_v18 = vld [vmem:[%s4880_s12 + $0x18] ss:$100 sps:$4 sm:$0xff]   ;;  %v4480_v22 = vld [vmem:[%s5548_s1 + $0x200] sm:$0xff]   ;;  %v4484_v26 = vld [vmem:[%s5548_s1 + $0x208] sm:$0xff]  }
  0x23   : > { %v4481_v23 = vld [vmem:[%s5548_s1 + $0x280] sm:$0xff]   ;;  %v4485_v27 = vld [vmem:[%s5548_s1 + $0x288] sm:$0xff]   ;;  %v4493_v33 = vld [vmem:[%s5548_s1 + $0x2d0] sm:$0xff]  }
  0x24   : > { %3858 = vmatpush3.bf16.msra.mxu0 %v4414_v30  ;;  %v4486_v28 = vld [vmem:[%s4880_s12 + $0xdc] ss:$100 sps:$4 sm:$0xff]   ;;  %v4488_v29 = vld [vmem:[%s4880_s12 + $0xe4] ss:$100 sps:$4 sm:$0xff]   ;;  %v4495_v35 = vld [vmem:[%s5548_s1 + $0x290] sm:$0xff]  }
  0x25   : > { %3898 = vmatpush3.bf16.msra.mxu1 %v4415_v31  ;;  %3923 = vmatprep.subr.bf16.mxu0 %v4422_v36  ;;  %v4490_v30 = vld [vmem:[%s4880_s12 + $0xd8] ss:$100 sps:$4 sm:$0xff]   ;;  %v4491_v31 = vld [vmem:[%s4880_s12 + $0xe0] ss:$100 sps:$4 sm:$0xff]  }
  0x26   : > { %3963 = vmatprep.subr.bf16.mxu1 %v4423_v37  ;;  %v4496_v36 = vld [vmem:[%s5548_s1 + $0x258] sm:$0xff]  }
  0x27   : > { %2474 = vmatmul.mubr.bf16.vlgmr.msra.gmra.mrb[0].mxu0 %v4416_v32  ;;  %v4492_v32 = vld [vmem:[%s5548_s1 + $0x250] sm:$0xff]   ;;  %v4497_v37 = vld [vmem:[%s5548_s1 + $0x2d8] sm:$0xff]  }
  0x28   : > { %2539 = vmatmul.mubr.bf16.vlgmr.msra.gmra.mrb[0].mxu1 %v4419_v34  ;;  %3924 = vmatpush3.bf16.msra.mxu0 %v4424_v38  ;;  %v4494_v34 = vld [vmem:[%s5548_s1 + $0x210] sm:$0xff]   ;;  %v4498_v38 = vld [vmem:[%s5548_s1 + $0x218] sm:$0xff]  }
  0x29   : > { %3964 = vmatpush3.bf16.msra.mxu1 %v4425_v39  ;;  %3925 = vmatprep.subr.bf16.mxu0 %v4426_v40  ;;  %v4499_v39 = vld [vmem:[%s5548_s1 + $0x298] sm:$0xff]   ;;  %v4500_v40 = vld [vmem:[%s4880_s12 + $0x1a4] ss:$100 sps:$4 sm:$0xff]  }
  0x2a   : > { %3965 = vmatprep.subr.bf16.mxu1 %v4427_v41  ;;  %2481 = vmatprep.mubr.bf16.mxu0 %v4430_v44  ;;  %v4502_v41 = vld [vmem:[%s4880_s12 + $0x1ac] ss:$100 sps:$4 sm:$0xff]   ;;  %v4506_v44 = vld [vmem:[%s5548_s1 + $0x260] sm:$0xff]  }
  0x2b   : > { %2546 = vmatprep.mubr.bf16.mxu1 %v4432_v45  ;;  %v4507_v45 = vld [vmem:[%s5548_s1 + $0x2e0] sm:$0xff]  }
  0x2c   : > { %3926 = vmatpush3.bf16.msra.mxu0 %v4428_v42  ;;  %v4504_v42 = vld [vmem:[%s4880_s12 + $0x1a0] ss:$100 sps:$4 sm:$0xff]  }
  0x2d   : > { %3966 = vmatpush3.bf16.msra.mxu1 %v4429_v43  ;;  %3927 = vmatprep.subr.bf16.mxu0 %v4436_v48  ;;  %v4505_v43 = vld [vmem:[%s4880_s12 + $0x1a8] ss:$100 sps:$4 sm:$0xff]  }
  0x2e   : > { %3967 = vmatprep.subr.bf16.mxu1 %v4437_v49  ;;  %v4510_v48 = vld [vmem:[%s5548_s1 + $0x268] sm:$0xff]  }
  0x2f   : > { %2482 = vmatmul.mubr.bf16.gmra.mrb[4].mxu0 %v4434_v46  ;;  %v4508_v46 = vld [vmem:[%s5548_s1 + $0x220] sm:$0xff]   ;;  %v4511_v49 = vld [vmem:[%s5548_s1 + $0x2e8] sm:$0xff]  }
  0x30   : > { %2547 = vmatmul.mubr.bf16.gmra.mrb[4].mxu1 %v4435_v47  ;;  %3928 = vmatpush3.bf16.msra.mxu0 %v4438_v50  ;;  %v4509_v47 = vld [vmem:[%s5548_s1 + $0x2a0] sm:$0xff]   ;;  %v4512_v50 = vld [vmem:[%s5548_s1 + $0x228] sm:$0xff]  }
  0x31   : > { %3968 = vmatpush3.bf16.msra.mxu1 %v4439_v51  ;;  %3929 = vmatprep.subr.bf16.mxu0 %v4440_v52  ;;  %v4513_v51 = vld [vmem:[%s5548_s1 + $0x2a8] sm:$0xff]  }
  0x32   : > { %3969 = vmatprep.subr.bf16.mxu1 %v4441_v53  ;;  %2489 = vmatprep.mubr.bf16.mxu0 %v4444_v56  ;;  %v4514_v52 = vld [vmem:[%s4880_s12 + $0x26c] ss:$100 sps:$4 sm:$0xff]   ;;  %v4516_v53 = vld [vmem:[%s4880_s12 + $0x274] ss:$100 sps:$4 sm:$0xff]  }
  0x33   : > { %2554 = vmatprep.mubr.bf16.mxu1 %v4446_v57  ;;  %v4520_v56 = vld [vmem:[%s5548_s1 + $0x270] sm:$0xff]  }
  0x34   : > { %3930 = vmatpush3.bf16.msra.mxu0 %v4442_v54  ;;  %v4518_v54 = vld [vmem:[%s4880_s12 + $0x268] ss:$100 sps:$4 sm:$0xff]   ;;  %v4521_v57 = vld [vmem:[%s5548_s1 + $0x2f0] sm:$0xff]  }
  0x35   : > { %3970 = vmatpush3.bf16.msra.mxu1 %v4443_v55  ;;  %3931 = vmatprep.subr.bf16.mxu0 %v4450_v60  ;;  %v4519_v55 = vld [vmem:[%s4880_s12 + $0x270] ss:$100 sps:$4 sm:$0xff]   ;;  %v4524_v60 = vld [vmem:[%s5548_s1 + $0x278] sm:$0xff]  }
  0x36   : > { %3971 = vmatprep.subr.bf16.mxu1 %v4451_v61  ;;  %v4525_v61 = vld [vmem:[%s5548_s1 + $0x2f8] sm:$0xff]  }
  0x37   : > { %2490 = vmatmul.mubr.bf16.gmra.mrb[8].mxu0 %v4448_v58  ;;  %v4522_v58 = vld [vmem:[%s5548_s1 + $0x230] sm:$0xff]  }
  0x38   : > { %2555 = vmatmul.mubr.bf16.gmra.mrb[8].mxu1 %v4449_v59  ;;  %3932 = vmatpush3.bf16.msra.mxu0 %v4452_v62  ;;  %v4523_v59 = vld [vmem:[%s5548_s1 + $0x2b0] sm:$0xff]   ;;  %v4526_v62 = vld [vmem:[%s5548_s1 + $0x238] sm:$0xff]  }
  0x39   : > { %3972 = vmatpush3.bf16.msra.mxu1 %v4453_v63  ;;  %3933 = vmatprep.subr.bf16.mxu0 %v4454_v0  ;;  %v4527_v63 = vld [vmem:[%s5548_s1 + $0x2b8] sm:$0xff]   ;;  %v4528_v0 = vld [vmem:[%s4880_s12 + $0x20] ss:$100 sps:$4 sm:$0xff]  }
  0x3a   : > { %3973 = vmatprep.subr.bf16.mxu1 %v4455_v1  ;;  %2497 = vmatprep.mubr.bf16.mxu0 %v4458_v4  ;;  %v4530_v1 = vld [vmem:[%s4880_s12 + $0x24] ss:$100 sps:$4 sm:$0xff]  }
  0x3b   : > { %2562 = vmatprep.mubr.bf16.mxu1 %v4460_v5  ;;  %v4534_v4 = vld [vmem:[%s5548_s1 + $0x340] sm:$0xff]  }
  0x3c   : > { %3934 = vmatpush3.bf16.msra.mxu0 %v4456_v2  ;;  %v4531_v2 = vld [vmem:[%s4880_s12 + $0x28] ss:$100 sps:$4 sm:$0xff]   ;;  %v4535_v5 = vld [vmem:[%s5548_s1 + $0x3c0] sm:$0xff]  }
  0x3d   : > { %3974 = vmatpush3.bf16.msra.mxu1 %v4457_v3  ;;  %3935 = vmatprep.subr.bf16.mxu0 %v4464_v8  ;;  %v4533_v3 = vld [vmem:[%s4880_s12 + $0x2c] ss:$100 sps:$4 sm:$0xff]  }
  0x3e   : > { %3975 = vmatprep.subr.bf16.mxu1 %v4465_v9  ;;  %v4538_v8 = vld [vmem:[%s5548_s1 + $0x348] sm:$0xff]  }
  0x3f   : > { %2498 = vmatmul.mubr.bf16.gmra.mrb[12].mxu0 %v4462_v6  ;;  %v4536_v6 = vld [vmem:[%s5548_s1 + $0x300] sm:$0xff]   ;;  %v4539_v9 = vld [vmem:[%s5548_s1 + $0x3c8] sm:$0xff]  }
  0x40   : > { %2563 = vmatmul.mubr.bf16.gmra.mrb[12].mxu1 %v4463_v7  ;;  %3936 = vmatpush3.bf16.msra.mxu0 %v4466_v10  ;;  %v4537_v7 = vld [vmem:[%s5548_s1 + $0x380] sm:$0xff]   ;;  %v4540_v10 = vld [vmem:[%s5548_s1 + $0x308] sm:$0xff]  }
  0x41   : > { %3976 = vmatpush3.bf16.msra.mxu1 %v4467_v11  ;;  %3937 = vmatprep.subr.bf16.mxu0 %v4468_v12  ;;  %v4541_v11 = vld [vmem:[%s5548_s1 + $0x388] sm:$0xff]  }
  0x42   : > { %3977 = vmatprep.subr.bf16.mxu1 %v4469_v13  ;;  %2603 = vmatprep.mubr.bf16.mxu0 %v4474_v17  ;;  %v4542_v12 = vld [vmem:[%s4880_s12 + $0xec] ss:$100 sps:$4 sm:$0xff]   ;;  %v4544_v13 = vld [vmem:[%s4880_s12 + $0xf4] ss:$100 sps:$4 sm:$0xff]  }
  0x43   : > { %2668 = vmatprep.mubr.bf16.mxu1 %v4477_v19  ;;  %v4549_v17 = vld [vmem:[%s5548_s1 + $0x3d0] sm:$0xff]  }
  0x44   : > { %3938 = vmatpush3.bf16.msra.mxu0 %v4470_v14  ;;  %v4546_v14 = vld [vmem:[%s4880_s12 + $0xe8] ss:$100 sps:$4 sm:$0xff]   ;;  %v4551_v19 = vld [vmem:[%s5548_s1 + $0x390] sm:$0xff]  }
  0x45   : > { %3978 = vmatpush3.bf16.msra.mxu1 %v4471_v15  ;;  %4003 = vmatprep.subr.bf16.mxu0 %v4478_v20  ;;  %v4547_v15 = vld [vmem:[%s4880_s12 + $0xf0] ss:$100 sps:$4 sm:$0xff]   ;;  %v4552_v20 = vld [vmem:[%s5548_s1 + $0x358] sm:$0xff]  }
  0x46   : > { %4043 = vmatprep.subr.bf16.mxu1 %v4479_v21  ;;  %v4553_v21 = vld [vmem:[%s5548_s1 + $0x3d8] sm:$0xff]  }
  0x47   : > { %2604 = vmatmul.mubr.bf16.vlgmr.msra.gmra.mrb[16].mxu0 %v4472_v16  ;;  %v4548_v16 = vld [vmem:[%s5548_s1 + $0x350] sm:$0xff]  }
  0x48   : > { %2669 = vmatmul.mubr.bf16.vlgmr.msra.gmra.mrb[16].mxu1 %v4475_v18  ;;  %4004 = vmatpush3.bf16.msra.mxu0 %v4480_v22  ;;  %v4550_v18 = vld [vmem:[%s5548_s1 + $0x310] sm:$0xff]   ;;  %v4554_v22 = vld [vmem:[%s5548_s1 + $0x318] sm:$0xff]  }
  0x49   : > { %4044 = vmatpush3.bf16.msra.mxu1 %v4481_v23  ;;  %4005 = vmatprep.subr.bf16.mxu0 %v4482_v24  ;;  %v4555_v23 = vld [vmem:[%s5548_s1 + $0x398] sm:$0xff]  }
  0x4a   : > { %4045 = vmatprep.subr.bf16.mxu1 %v4483_v25  ;;  %2611 = vmatprep.mubr.bf16.mxu0 %v4486_v28  ;;  %v4556_v24 = vld [vmem:[%s4880_s12 + $0x1b4] ss:$100 sps:$4 sm:$0xff]   ;;  %v4558_v25 = vld [vmem:[%s4880_s12 + $0x1bc] ss:$100 sps:$4 sm:$0xff]  }
  0x4b   : > { %2676 = vmatprep.mubr.bf16.mxu1 %v4488_v29  ;;  %v4562_v28 = vld [vmem:[%s5548_s1 + $0x360] sm:$0xff]  }
  0x4c   : > { %4006 = vmatpush3.bf16.msra.mxu0 %v4484_v26  ;;  %v4560_v26 = vld [vmem:[%s4880_s12 + $0x1b0] ss:$100 sps:$4 sm:$0xff]   ;;  %v4563_v29 = vld [vmem:[%s5548_s1 + $0x3e0] sm:$0xff]  }
  0x4d   : > { %4046 = vmatpush3.bf16.msra.mxu1 %v4485_v27  ;;  %4007 = vmatprep.subr.bf16.mxu0 %v4492_v32  ;;  %v4561_v27 = vld [vmem:[%s4880_s12 + $0x1b8] ss:$100 sps:$4 sm:$0xff]   ;;  %v4566_v32 = vld [vmem:[%s5548_s1 + $0x368] sm:$0xff]  }
  0x4e   : > { %4047 = vmatprep.subr.bf16.mxu1 %v4493_v33  ;;  %v4567_v33 = vld [vmem:[%s5548_s1 + $0x3e8] sm:$0xff]  }
  0x4f   : > { %2612 = vmatmul.mubr.bf16.gmra.mrb[20].mxu0 %v4490_v30  ;;  %v4564_v30 = vld [vmem:[%s5548_s1 + $0x320] sm:$0xff]  }
  0x50   : > { %2677 = vmatmul.mubr.bf16.gmra.mrb[20].mxu1 %v4491_v31  ;;  %4008 = vmatpush3.bf16.msra.mxu0 %v4494_v34  ;;  %v4565_v31 = vld [vmem:[%s5548_s1 + $0x3a0] sm:$0xff]   ;;  %v4568_v34 = vld [vmem:[%s5548_s1 + $0x328] sm:$0xff]  }
  0x51   : > { %4048 = vmatpush3.bf16.msra.mxu1 %v4495_v35  ;;  %4009 = vmatprep.subr.bf16.mxu0 %v4496_v36  ;;  %v4569_v35 = vld [vmem:[%s5548_s1 + $0x3a8] sm:$0xff]   ;;  %v4570_v36 = vld [vmem:[%s4880_s12 + $0x27c] ss:$100 sps:$4 sm:$0xff]  }
  0x52   : > { %4049 = vmatprep.subr.bf16.mxu1 %v4497_v37  ;;  %2619 = vmatprep.mubr.bf16.mxu0 %v4500_v40  ;;  %v4572_v37 = vld [vmem:[%s4880_s12 + $0x284] ss:$100 sps:$4 sm:$0xff]   ;;  %v4576_v40 = vld [vmem:[%s5548_s1 + $0x370] sm:$0xff]  }
  0x53   : > { %2684 = vmatprep.mubr.bf16.mxu1 %v4502_v41  ;;  %v4577_v41 = vld [vmem:[%s5548_s1 + $0x3f0] sm:$0xff]  }
  0x54   : > { %4010 = vmatpush3.bf16.msra.mxu0 %v4498_v38  ;;  %v4574_v38 = vld [vmem:[%s4880_s12 + $0x278] ss:$100 sps:$4 sm:$0xff]  }
  0x55   : > { %4050 = vmatpush3.bf16.msra.mxu1 %v4499_v39  ;;  %4011 = vmatprep.subr.bf16.mxu0 %v4506_v44  ;;  %v4575_v39 = vld [vmem:[%s4880_s12 + $0x280] ss:$100 sps:$4 sm:$0xff]   ;;  %v4580_v44 = vld [vmem:[%s5548_s1 + $0x378] sm:$0xff]  }
  0x56   : > { %4051 = vmatprep.subr.bf16.mxu1 %v4507_v45  ;;  %v4581_v45 = vld [vmem:[%s5548_s1 + $0x3f8] sm:$0xff]  }
  0x57   : > { %2620 = vmatmul.mubr.bf16.gmra.mrb[24].mxu0 %v4504_v42  ;;  %v4578_v42 = vld [vmem:[%s5548_s1 + $0x330] sm:$0xff]  }
  0x58   : > { %2685 = vmatmul.mubr.bf16.gmra.mrb[24].mxu1 %v4505_v43  ;;  %4012 = vmatpush3.bf16.msra.mxu0 %v4508_v46  ;;  %v4579_v43 = vld [vmem:[%s5548_s1 + $0x3b0] sm:$0xff]   ;;  %v4582_v46 = vld [vmem:[%s5548_s1 + $0x338] sm:$0xff]  }
  0x59   : > { %4052 = vmatpush3.bf16.msra.mxu1 %v4509_v47  ;;  %4013 = vmatprep.subr.bf16.mxu0 %v4510_v48  ;;  %v4583_v47 = vld [vmem:[%s5548_s1 + $0x3b8] sm:$0xff]   ;;  %v4584_v48 = vld [vmem:[%s4880_s12 + $0x30] ss:$100 sps:$4 sm:$0xff]  }
  0x5a   : > { %4053 = vmatprep.subr.bf16.mxu1 %v4511_v49  ;;  %2627 = vmatprep.mubr.bf16.mxu0 %v4514_v52  ;;  %v4586_v49 = vld [vmem:[%s4880_s12 + $0x34] ss:$100 sps:$4 sm:$0xff]   ;;  %v4590_v52 = vld [vmem:[%s5548_s1 + $0x440] sm:$0xff]  }
  0x5b   : > { %2692 = vmatprep.mubr.bf16.mxu1 %v4516_v53  ;;  %v4591_v53 = vld [vmem:[%s5548_s1 + $0x4c0] sm:$0xff]  }
  0x5c   : > { %4014 = vmatpush3.bf16.msra.mxu0 %v4512_v50  ;;  %v4587_v50 = vld [vmem:[%s4880_s12 + $0x38] ss:$100 sps:$4 sm:$0xff]  }
  0x5d   : > { %4054 = vmatpush3.bf16.msra.mxu1 %v4513_v51  ;;  %4015 = vmatprep.subr.bf16.mxu0 %v4520_v56  ;;  %v4589_v51 = vld [vmem:[%s4880_s12 + $0x3c] ss:$100 sps:$4 sm:$0xff]   ;;  %v4594_v56 = vld [vmem:[%s5548_s1 + $0x448] sm:$0xff]  }
  0x5e   : > { %4055 = vmatprep.subr.bf16.mxu1 %v4521_v57  ;;  %v4595_v57 = vld [vmem:[%s5548_s1 + $0x4c8] sm:$0xff]  }
  0x5f   : > { %2628 = vmatmul.mubr.bf16.gmra.mrb[28].mxu0 %v4518_v54  ;;  %v4592_v54 = vld [vmem:[%s5548_s1 + $0x400] sm:$0xff]  }
  0x60   : > { %2693 = vmatmul.mubr.bf16.gmra.mrb[28].mxu1 %v4519_v55  ;;  %4016 = vmatpush3.bf16.msra.mxu0 %v4522_v58  ;;  %v4593_v55 = vld [vmem:[%s5548_s1 + $0x480] sm:$0xff]   ;;  %v4596_v58 = vld [vmem:[%s5548_s1 + $0x408] sm:$0xff]  }
  0x61   : > { %4056 = vmatpush3.bf16.msra.mxu1 %v4523_v59  ;;  %4017 = vmatprep.subr.bf16.mxu0 %v4524_v60  ;;  %v4597_v59 = vld [vmem:[%s5548_s1 + $0x488] sm:$0xff]   ;;  %v4598_v60 = vld [vmem:[%s4880_s12 + $0xfc] ss:$100 sps:$4 sm:$0xff]  }
  0x62   : > { %4057 = vmatprep.subr.bf16.mxu1 %v4525_v61  ;;  %2733 = vmatprep.mubr.bf16.mxu0 %v4530_v1  ;;  %v4600_v61 = vld [vmem:[%s4880_s12 + $0x104] ss:$100 sps:$4 sm:$0xff]   ;;  %v4605_v1 = vld [vmem:[%s5548_s1 + $0x4d0] sm:$0xff]  }
  0x63   : > { %2798 = vmatprep.mubr.bf16.mxu1 %v4533_v3  ;;  %v4607_v3 = vld [vmem:[%s5548_s1 + $0x490] sm:$0xff]  }
  0x64   : > { %4018 = vmatpush3.bf16.msra.mxu0 %v4526_v62  ;;  %v4602_v62 = vld [vmem:[%s4880_s12 + $0xf8] ss:$100 sps:$4 sm:$0xff]  }
  0x65   : > { %4058 = vmatpush3.bf16.msra.mxu1 %v4527_v63  ;;  %4083 = vmatprep.subr.bf16.mxu0 %v4534_v4  ;;  %v4603_v63 = vld [vmem:[%s4880_s12 + $0x100] ss:$100 sps:$4 sm:$0xff]   ;;  %v4608_v4 = vld [vmem:[%s5548_s1 + $0x458] sm:$0xff]  }
  0x66   : > { %4123 = vmatprep.subr.bf16.mxu1 %v4535_v5  ;;  %v4609_v5 = vld [vmem:[%s5548_s1 + $0x4d8] sm:$0xff]  }
  0x67   : > { %2734 = vmatmul.mubr.bf16.vlgmr.msra.gmra.mrb[32].mxu0 %v4528_v0  ;;  %v4604_v0 = vld [vmem:[%s5548_s1 + $0x450] sm:$0xff]  }
  0x68   : > { %2799 = vmatmul.mubr.bf16.vlgmr.msra.gmra.mrb[32].mxu1 %v4531_v2  ;;  %4084 = vmatpush3.bf16.msra.mxu0 %v4536_v6  ;;  %v4606_v2 = vld [vmem:[%s5548_s1 + $0x410] sm:$0xff]   ;;  %v4610_v6 = vld [vmem:[%s5548_s1 + $0x418] sm:$0xff]  }
  0x69   : > { %4124 = vmatpush3.bf16.msra.mxu1 %v4537_v7  ;;  %4085 = vmatprep.subr.bf16.mxu0 %v4538_v8  ;;  %v4611_v7 = vld [vmem:[%s5548_s1 + $0x498] sm:$0xff]   ;;  %v4612_v8 = vld [vmem:[%s4880_s12 + $0x1c4] ss:$100 sps:$4 sm:$0xff]  }
  0x6a   : > { %4125 = vmatprep.subr.bf16.mxu1 %v4539_v9  ;;  %2741 = vmatprep.mubr.bf16.mxu0 %v4542_v12  ;;  %v4614_v9 = vld [vmem:[%s4880_s12 + $0x1cc] ss:$100 sps:$4 sm:$0xff]   ;;  %v4618_v12 = vld [vmem:[%s5548_s1 + $0x460] sm:$0xff]  }
  0x6b   : > { %2806 = vmatprep.mubr.bf16.mxu1 %v4544_v13  ;;  %v4619_v13 = vld [vmem:[%s5548_s1 + $0x4e0] sm:$0xff]  }
  0x6c   : > { %4086 = vmatpush3.bf16.msra.mxu0 %v4540_v10  ;;  %v4616_v10 = vld [vmem:[%s4880_s12 + $0x1c0] ss:$100 sps:$4 sm:$0xff]  }
  0x6d   : > { %4126 = vmatpush3.bf16.msra.mxu1 %v4541_v11  ;;  %4087 = vmatprep.subr.bf16.mxu0 %v4548_v16  ;;  %v4617_v11 = vld [vmem:[%s4880_s12 + $0x1c8] ss:$100 sps:$4 sm:$0xff]  }
  0x6e   : > { %4127 = vmatprep.subr.bf16.mxu1 %v4549_v17  ;;  %v4622_v16 = vld [vmem:[%s5548_s1 + $0x468] sm:$0xff]  }
  0x6f   : > { %2742 = vmatmul.mubr.bf16.gmra.mrb[36].mxu0 %v4546_v14  ;;  %v4620_v14 = vld [vmem:[%s5548_s1 + $0x420] sm:$0xff]   ;;  %v4623_v17 = vld [vmem:[%s5548_s1 + $0x4e8] sm:$0xff]  }
  0x70   : > { %2807 = vmatmul.mubr.bf16.gmra.mrb[36].mxu1 %v4547_v15  ;;  %4088 = vmatpush3.bf16.msra.mxu0 %v4550_v18  ;;  %v4621_v15 = vld [vmem:[%s5548_s1 + $0x4a0] sm:$0xff]   ;;  %v4624_v18 = vld [vmem:[%s5548_s1 + $0x428] sm:$0xff]  }
  0x71   : > { %4128 = vmatpush3.bf16.msra.mxu1 %v4551_v19  ;;  %4089 = vmatprep.subr.bf16.mxu0 %v4552_v20  ;;  %v4625_v19 = vld [vmem:[%s5548_s1 + $0x4a8] sm:$0xff]  }
  0x72   : > { %4129 = vmatprep.subr.bf16.mxu1 %v4553_v21  ;;  %2749 = vmatprep.mubr.bf16.mxu0 %v4556_v24  ;;  %v4626_v20 = vld [vmem:[%s4880_s12 + $0x28c] ss:$100 sps:$4 sm:$0xff]   ;;  %v4628_v21 = vld [vmem:[%s4880_s12 + $0x294] ss:$100 sps:$4 sm:$0xff]  }
  0x73   : > { %2814 = vmatprep.mubr.bf16.mxu1 %v4558_v25  ;;  %v4632_v24 = vld [vmem:[%s5548_s1 + $0x470] sm:$0xff]  }
  0x74   : > { %4090 = vmatpush3.bf16.msra.mxu0 %v4554_v22  ;;  %v4630_v22 = vld [vmem:[%s4880_s12 + $0x288] ss:$100 sps:$4 sm:$0xff]   ;;  %v4633_v25 = vld [vmem:[%s5548_s1 + $0x4f0] sm:$0xff]  }
  0x75   : > { %4130 = vmatpush3.bf16.msra.mxu1 %v4555_v23  ;;  %4091 = vmatprep.subr.bf16.mxu0 %v4562_v28  ;;  %v4631_v23 = vld [vmem:[%s4880_s12 + $0x290] ss:$100 sps:$4 sm:$0xff]   ;;  %v4636_v28 = vld [vmem:[%s5548_s1 + $0x478] sm:$0xff]  }
  0x76   : > { %4131 = vmatprep.subr.bf16.mxu1 %v4563_v29  ;;  %v4637_v29 = vld [vmem:[%s5548_s1 + $0x4f8] sm:$0xff]  }
  0x77   : > { %2750 = vmatmul.mubr.bf16.gmra.mrb[40].mxu0 %v4560_v26  ;;  %v4634_v26 = vld [vmem:[%s5548_s1 + $0x430] sm:$0xff]  }
  0x78   : > { %2815 = vmatmul.mubr.bf16.gmra.mrb[40].mxu1 %v4561_v27  ;;  %4092 = vmatpush3.bf16.msra.mxu0 %v4564_v30  ;;  %v4635_v27 = vld [vmem:[%s5548_s1 + $0x4b0] sm:$0xff]   ;;  %v4638_v30 = vld [vmem:[%s5548_s1 + $0x438] sm:$0xff]  }
  0x79   : > { %4132 = vmatpush3.bf16.msra.mxu1 %v4565_v31  ;;  %4093 = vmatprep.subr.bf16.mxu0 %v4566_v32  ;;  %v4639_v31 = vld [vmem:[%s5548_s1 + $0x4b8] sm:$0xff]   ;;  %v4640_v32 = vld [vmem:[%s4880_s12 + $0x40] ss:$100 sps:$4 sm:$0xff]  }
  0x7a   : > { %4133 = vmatprep.subr.bf16.mxu1 %v4567_v33  ;;  %2757 = vmatprep.mubr.bf16.mxu0 %v4570_v36  ;;  %v4642_v33 = vld [vmem:[%s4880_s12 + $0x44] ss:$100 sps:$4 sm:$0xff]  }
  0x7b   : > { %2822 = vmatprep.mubr.bf16.mxu1 %v4572_v37  ;;  %v4646_v36 = vld [vmem:[%s5548_s1 + $0x540] sm:$0xff]  }
  0x7c   : > { %4094 = vmatpush3.bf16.msra.mxu0 %v4568_v34  ;;  %v4643_v34 = vld [vmem:[%s4880_s12 + $0x48] ss:$100 sps:$4 sm:$0xff]   ;;  %v4647_v37 = vld [vmem:[%s5548_s1 + $0x5c0] sm:$0xff]  }
  0x7d   : > { %4134 = vmatpush3.bf16.msra.mxu1 %v4569_v35  ;;  %4095 = vmatprep.subr.bf16.mxu0 %v4576_v40  ;;  %v4645_v35 = vld [vmem:[%s4880_s12 + $0x4c] ss:$100 sps:$4 sm:$0xff]  }
  0x7e   : > { %4135 = vmatprep.subr.bf16.mxu1 %v4577_v41  ;;  %v4650_v40 = vld [vmem:[%s5548_s1 + $0x548] sm:$0xff]  }
  0x7f   : > { %2758 = vmatmul.mubr.bf16.gmra.mrb[44].mxu0 %v4574_v38  ;;  %v4648_v38 = vld [vmem:[%s5548_s1 + $0x500] sm:$0xff]   ;;  %v4651_v41 = vld [vmem:[%s5548_s1 + $0x5c8] sm:$0xff]  }
  0x80   : > { %2823 = vmatmul.mubr.bf16.gmra.mrb[44].mxu1 %v4575_v39  ;;  %4096 = vmatpush3.bf16.msra.mxu0 %v4578_v42  ;;  %v4649_v39 = vld [vmem:[%s5548_s1 + $0x580] sm:$0xff]   ;;  %v4652_v42 = vld [vmem:[%s5548_s1 + $0x508] sm:$0xff]  }
  0x81   : > { %4136 = vmatpush3.bf16.msra.mxu1 %v4579_v43  ;;  %4097 = vmatprep.subr.bf16.mxu0 %v4580_v44  ;;  %v4653_v43 = vld [vmem:[%s5548_s1 + $0x588] sm:$0xff]  }
  0x82   : > { %4137 = vmatprep.subr.bf16.mxu1 %v4581_v45  ;;  %2863 = vmatprep.mubr.bf16.mxu0 %v4586_v49  ;;  %v4654_v44 = vld [vmem:[%s4880_s12 + $0x10c] ss:$100 sps:$4 sm:$0xff]   ;;  %v4656_v45 = vld [vmem:[%s4880_s12 + $0x114] ss:$100 sps:$4 sm:$0xff]  }
  0x83   : > { %2928 = vmatprep.mubr.bf16.mxu1 %v4589_v51  ;;  %v4661_v49 = vld [vmem:[%s5548_s1 + $0x5d0] sm:$0xff]  }
  0x84   : > { %4098 = vmatpush3.bf16.msra.mxu0 %v4582_v46  ;;  %v4658_v46 = vld [vmem:[%s4880_s12 + $0x108] ss:$100 sps:$4 sm:$0xff]   ;;  %v4663_v51 = vld [vmem:[%s5548_s1 + $0x590] sm:$0xff]  }
  0x85   : > { %4138 = vmatpush3.bf16.msra.mxu1 %v4583_v47  ;;  %4163 = vmatprep.subr.bf16.mxu0 %v4590_v52  ;;  %v4659_v47 = vld [vmem:[%s4880_s12 + $0x110] ss:$100 sps:$4 sm:$0xff]   ;;  %v4664_v52 = vld [vmem:[%s5548_s1 + $0x558] sm:$0xff]  }
  0x86   : > { %4203 = vmatprep.subr.bf16.mxu1 %v4591_v53  ;;  %v4665_v53 = vld [vmem:[%s5548_s1 + $0x5d8] sm:$0xff]  }
  0x87   : > { %2864 = vmatmul.mubr.bf16.vlgmr.msra.gmra.mrb[48].mxu0 %v4584_v48  ;;  %v4660_v48 = vld [vmem:[%s5548_s1 + $0x550] sm:$0xff]  }
  0x88   : > { %2929 = vmatmul.mubr.bf16.vlgmr.msra.gmra.mrb[48].mxu1 %v4587_v50  ;;  %4164 = vmatpush3.bf16.msra.mxu0 %v4592_v54  ;;  %v4662_v50 = vld [vmem:[%s5548_s1 + $0x510] sm:$0xff]   ;;  %v4666_v54 = vld [vmem:[%s5548_s1 + $0x518] sm:$0xff]  }
  0x89   : > { %4204 = vmatpush3.bf16.msra.mxu1 %v4593_v55  ;;  %4165 = vmatprep.subr.bf16.mxu0 %v4594_v56  ;;  %v4667_v55 = vld [vmem:[%s5548_s1 + $0x598] sm:$0xff]  }
  0x8a   : > { %4205 = vmatprep.subr.bf16.mxu1 %v4595_v57  ;;  %2871 = vmatprep.mubr.bf16.mxu0 %v4598_v60  ;;  %v4668_v56 = vld [vmem:[%s4880_s12 + $0x1d4] ss:$100 sps:$4 sm:$0xff]   ;;  %v4670_v57 = vld [vmem:[%s4880_s12 + $0x1dc] ss:$100 sps:$4 sm:$0xff]  }
  0x8b   : > { %2936 = vmatprep.mubr.bf16.mxu1 %v4600_v61  ;;  %v4674_v60 = vld [vmem:[%s5548_s1 + $0x560] sm:$0xff]  }
  0x8c   : > { %4166 = vmatpush3.bf16.msra.mxu0 %v4596_v58  ;;  %v4672_v58 = vld [vmem:[%s4880_s12 + $0x1d0] ss:$100 sps:$4 sm:$0xff]   ;;  %v4675_v61 = vld [vmem:[%s5548_s1 + $0x5e0] sm:$0xff]  }
  0x8d   : > { %4206 = vmatpush3.bf16.msra.mxu1 %v4597_v59  ;;  %4167 = vmatprep.subr.bf16.mxu0 %v4604_v0  ;;  %v4673_v59 = vld [vmem:[%s4880_s12 + $0x1d8] ss:$100 sps:$4 sm:$0xff]   ;;  %v4678_v0 = vld [vmem:[%s5548_s1 + $0x568] sm:$0xff]  }
  0x8e   : > { %4207 = vmatprep.subr.bf16.mxu1 %v4605_v1  ;;  %v4679_v1 = vld [vmem:[%s5548_s1 + $0x5e8] sm:$0xff]  }
  0x8f   : > { %2872 = vmatmul.mubr.bf16.gmra.mrb[52].mxu0 %v4602_v62  ;;  %v4676_v62 = vld [vmem:[%s5548_s1 + $0x520] sm:$0xff]  }
  0x90   : > { %2937 = vmatmul.mubr.bf16.gmra.mrb[52].mxu1 %v4603_v63  ;;  %4168 = vmatpush3.bf16.msra.mxu0 %v4606_v2  ;;  %v4677_v63 = vld [vmem:[%s5548_s1 + $0x5a0] sm:$0xff]   ;;  %v4680_v2 = vld [vmem:[%s5548_s1 + $0x528] sm:$0xff]  }
  0x91   : > { %4208 = vmatpush3.bf16.msra.mxu1 %v4607_v3  ;;  %4169 = vmatprep.subr.bf16.mxu0 %v4608_v4  ;;  %v4681_v3 = vld [vmem:[%s5548_s1 + $0x5a8] sm:$0xff]   ;;  %v4682_v4 = vld [vmem:[%s4880_s12 + $0x29c] ss:$100 sps:$4 sm:$0xff]  }
  0x92   : > { %4209 = vmatprep.subr.bf16.mxu1 %v4609_v5  ;;  %2879 = vmatprep.mubr.bf16.mxu0 %v4612_v8  ;;  %v4684_v5 = vld [vmem:[%s4880_s12 + $0x2a4] ss:$100 sps:$4 sm:$0xff]   ;;  %v4688_v8 = vld [vmem:[%s5548_s1 + $0x570] sm:$0xff]  }
  0x93   : > { %2944 = vmatprep.mubr.bf16.mxu1 %v4614_v9  ;;  %v4689_v9 = vld [vmem:[%s5548_s1 + $0x5f0] sm:$0xff]  }
  0x94   : > { %4170 = vmatpush3.bf16.msra.mxu0 %v4610_v6  ;;  %v4686_v6 = vld [vmem:[%s4880_s12 + $0x298] ss:$100 sps:$4 sm:$0xff]  }
  0x95   : > { %4210 = vmatpush3.bf16.msra.mxu1 %v4611_v7  ;;  %4171 = vmatprep.subr.bf16.mxu0 %v4618_v12  ;;  %v4687_v7 = vld [vmem:[%s4880_s12 + $0x2a0] ss:$100 sps:$4 sm:$0xff]   ;;  %v4692_v12 = vld [vmem:[%s5548_s1 + $0x578] sm:$0xff]  }
  0x96   : > { %4211 = vmatprep.subr.bf16.mxu1 %v4619_v13  ;;  %v4693_v13 = vld [vmem:[%s5548_s1 + $0x5f8] sm:$0xff]  }
  0x97   : > { %2880 = vmatmul.mubr.bf16.gmra.mrb[56].mxu0 %v4616_v10  ;;  %v4690_v10 = vld [vmem:[%s5548_s1 + $0x530] sm:$0xff]  }
  0x98   : > { %2945 = vmatmul.mubr.bf16.gmra.mrb[56].mxu1 %v4617_v11  ;;  %4172 = vmatpush3.bf16.msra.mxu0 %v4620_v14  ;;  %v4691_v11 = vld [vmem:[%s5548_s1 + $0x5b0] sm:$0xff]   ;;  %v4694_v14 = vld [vmem:[%s5548_s1 + $0x538] sm:$0xff]  }
  0x99   : > { %4212 = vmatpush3.bf16.msra.mxu1 %v4621_v15  ;;  %4173 = vmatprep.subr.bf16.mxu0 %v4622_v16  ;;  %v4695_v15 = vld [vmem:[%s5548_s1 + $0x5b8] sm:$0xff]   ;;  %v4696_v16 = vld [vmem:[%s4880_s12 + $0x50] ss:$100 sps:$4 sm:$0xff]  }
  0x9a   : > { %4213 = vmatprep.subr.bf16.mxu1 %v4623_v17  ;;  %2887 = vmatprep.mubr.bf16.mxu0 %v4626_v20  ;;  %v4698_v17 = vld [vmem:[%s4880_s12 + $0x54] ss:$100 sps:$4 sm:$0xff]  }
  0x9b   : > { %2952 = vmatprep.mubr.bf16.mxu1 %v4628_v21  ;;  %v4702_v21 = vld [vmem:[%s5548_s1 + $0x600] sm:$0xff]  }
  0x9c   : > { %4174 = vmatpush3.bf16.msra.mxu0 %v4624_v18  ;;  %v4699_v18 = vld [vmem:[%s4880_s12 + $0x58] ss:$100 sps:$4 sm:$0xff]  }
  0x9d   : > { %4214 = vmatpush3.bf16.msra.mxu1 %v4625_v19  ;;  %4175 = vmatprep.subr.bf16.mxu0 %v4632_v24  ;;  %v4701_v19 = vld [vmem:[%s4880_s12 + $0x5c] ss:$100 sps:$4 sm:$0xff]  }
  0x9e   : > { %4215 = vmatprep.subr.bf16.mxu1 %v4633_v25 }
  0x9f   : > { %2888 = vmatmul.mubr.bf16.gmra.mrb[60].mxu0 %v4630_v22 }
  0xa0   : > { %2953 = vmatmul.mubr.bf16.gmra.mrb[60].mxu1 %v4631_v23  ;;  %4176 = vmatpush3.bf16.msra.mxu0 %v4634_v26  ;;  %v4703_v23 = vld [vmem:[%s5548_s1 + $0x608] sm:$0xff]   ;;  %v4704_v26 = vld [vmem:[%s4880_s12 + $0x11c] ss:$100 sps:$4 sm:$0xff]  }
  0xa1   : > { %4216 = vmatpush3.bf16.msra.mxu1 %v4635_v27  ;;  %4177 = vmatprep.subr.bf16.mxu0 %v4636_v28 }
  0xa2   : > { %4217 = vmatprep.subr.bf16.mxu1 %v4637_v29  ;;  %2993 = vmatprep.mubr.bf16.mxu0 %v4642_v33  ;;  %v4706_v29 = vld [vmem:[%s4880_s12 + $0x124] ss:$100 sps:$4 sm:$0xff]  }
  0xa3   : > { %3058 = vmatprep.mubr.bf16.mxu1 %v4645_v35 }
  0xa4   : > { %4178 = vmatpush3.bf16.msra.mxu0 %v4638_v30 }
  0xa5   : > { %4218 = vmatpush3.bf16.msra.mxu1 %v4639_v31  ;;  %4243 = vmatprep.subr.bf16.mxu0 %v4646_v36  ;;  %v4709_v36 = vld [vmem:[%s4880_s12 + $0x120] ss:$100 sps:$4 sm:$0xff]  }
  0xa6   : > { %4283 = vmatprep.subr.bf16.mxu1 %v4647_v37 }
  0xa7   : > { %2994 = vmatmul.mubr.bf16.vlgmr.msra.gmra.mrb[64].mxu0 %v4640_v32  ;;  %v4708_v32 = vld [vmem:[%s4880_s12 + $0x118] ss:$100 sps:$4 sm:$0xff]  }
  0xa8   : > { %3059 = vmatmul.mubr.bf16.vlgmr.msra.gmra.mrb[64].mxu1 %v4643_v34  ;;  %4244 = vmatpush3.bf16.msra.mxu0 %v4648_v38  ;;  %v4710_v34 = vld [vmem:[%s5548_s1 + $0x610] sm:$0xff]   ;;  %v4712_v38 = vld [vmem:[%s4880_s12 + $0x1e4] ss:$100 sps:$4 sm:$0xff]  }
  0xa9   : > { %4284 = vmatpush3.bf16.msra.mxu1 %v4649_v39  ;;  %4245 = vmatprep.subr.bf16.mxu0 %v4650_v40  ;;  %v4711_v40 = vld [vmem:[%s5548_s1 + $0x618] sm:$0xff]  }
  0xaa   : > { %4285 = vmatprep.subr.bf16.mxu1 %v4651_v41  ;;  %3001 = vmatprep.mubr.bf16.mxu0 %v4654_v44  ;;  %v4714_v41 = vld [vmem:[%s4880_s12 + $0x1ec] ss:$100 sps:$4 sm:$0xff]  }
  0xab   : > { %3066 = vmatprep.mubr.bf16.mxu1 %v4656_v45 }
  0xac   : > { %4246 = vmatpush3.bf16.msra.mxu0 %v4652_v42 }
  0xad   : > { %4286 = vmatpush3.bf16.msra.mxu1 %v4653_v43  ;;  %4247 = vmatprep.subr.bf16.mxu0 %v4660_v48  ;;  %v4716_v43 = vld [vmem:[%s4880_s12 + $0x1e0] ss:$100 sps:$4 sm:$0xff]  }
  0xae   : > { %4287 = vmatprep.subr.bf16.mxu1 %v4661_v49 }
  0xaf   : > { %3002 = vmatmul.mubr.bf16.gmra.mrb[68].mxu0 %v4658_v46  ;;  %v4718_v46 = vld [vmem:[%s5548_s1 + $0x620] sm:$0xff]  }
  0xb0   : > { %3067 = vmatmul.mubr.bf16.gmra.mrb[68].mxu1 %v4659_v47  ;;  %4248 = vmatpush3.bf16.msra.mxu0 %v4662_v50  ;;  %v4717_v50 = vld [vmem:[%s4880_s12 + $0x1e8] ss:$100 sps:$4 sm:$0xff]  }
  0xb1   : > { %4288 = vmatpush3.bf16.msra.mxu1 %v4663_v51  ;;  %4249 = vmatprep.subr.bf16.mxu0 %v4664_v52  ;;  %v4720_v51 = vld [vmem:[%s4880_s12 + $0x2ac] ss:$100 sps:$4 sm:$0xff]   ;;  %v4722_v52 = vld [vmem:[%s4880_s12 + $0x2b4] ss:$100 sps:$4 sm:$0xff]  }
  0xb2   : > { %4289 = vmatprep.subr.bf16.mxu1 %v4665_v53  ;;  %3009 = vmatprep.mubr.bf16.mxu0 %v4668_v56 }
  0xb3   : > { %3074 = vmatprep.mubr.bf16.mxu1 %v4670_v57  ;;  %v4719_v57 = vld [vmem:[%s5548_s1 + $0x628] sm:$0xff]  }
  0xb4   : > { %4250 = vmatpush3.bf16.msra.mxu0 %v4666_v54 }
  0xb5   : > { %4290 = vmatpush3.bf16.msra.mxu1 %v4667_v55  ;;  %4251 = vmatprep.subr.bf16.mxu0 %v4674_v60 }
  0xb6   : > { %4291 = vmatprep.subr.bf16.mxu1 %v4675_v61 }
  0xb7   : > { %3010 = vmatmul.mubr.bf16.gmra.mrb[72].mxu0 %v4672_v58  ;;  %v4726_v58 = vld [vmem:[%s5548_s1 + $0x630] sm:$0xff]  }
  0xb8   : > { %3075 = vmatmul.mubr.bf16.gmra.mrb[72].mxu1 %v4673_v59  ;;  %4252 = vmatpush3.bf16.msra.mxu0 %v4676_v62  ;;  %v5492_v59 = vld [vmem:[%s5549_s2] ss:$0 sm:$0xff]  ;;  %v4724_v62 = vld [vmem:[%s4880_s12 + $0x2a8] ss:$100 sps:$4 sm:$0xff]  }
  0xb9   : > { %4292 = vmatpush3.bf16.msra.mxu1 %v4677_v63  ;;  %4253 = vmatprep.subr.bf16.mxu0 %v4678_v0 }
  0xba   : > { %4293 = vmatprep.subr.bf16.mxu1 %v4679_v1  ;;  %3017 = vmatprep.mubr.bf16.mxu0 %v4682_v4 }
  0xbb   : > { %3082 = vmatprep.mubr.bf16.mxu1 %v4684_v5  ;;  %v4725_v5 = vld [vmem:[%s4880_s12 + $0x2b0] ss:$100 sps:$4 sm:$0xff]  }
  0xbc   : > { %4254 = vmatpush3.bf16.msra.mxu0 %v4680_v2 }
  0xbd   : > { %4294 = vmatpush3.bf16.msra.mxu1 %v4681_v3  ;;  %4255 = vmatprep.subr.bf16.mxu0 %v4688_v8 }
  0xbe   : > { %4295 = vmatprep.subr.bf16.mxu1 %v4689_v9 }
  0xbf   : > { %3018 = vmatmul.mubr.bf16.gmra.mrb[76].mxu0 %v4686_v6  ;;  %v4728_v6 = vld [vmem:[%s4880_s12 + $0x60] ss:$100 sps:$4 sm:$0xff]  }
  0xc0   : > { %3083 = vmatmul.mubr.bf16.gmra.mrb[76].mxu1 %v4687_v7  ;;  %4256 = vmatpush3.bf16.msra.mxu0 %v4690_v10 }
  0xc1   : > { %4296 = vmatpush3.bf16.msra.mxu1 %v4691_v11  ;;  %4257 = vmatprep.subr.bf16.mxu0 %v4692_v12  ;;  %v4729_v11 = vld [vmem:[%s4880_s12 + $0x1f0] ss:$100 sps:$4 sm:$0xff]  }
  0xc2   : > { %4297 = vmatprep.subr.bf16.mxu1 %v4693_v13  ;;  %3123 = vmatprep.mubr.bf16.mxu0 %v4698_v17 }
  0xc3   : > { %3188 = vmatprep.mubr.bf16.mxu1 %v4701_v19 }
  0xc4   : > { %4258 = vmatpush3.bf16.msra.mxu0 %v4694_v14 }
  0xc5   : > { %4298 = vmatpush3.bf16.msra.mxu1 %v4695_v15  ;;  %4335 = vmatprep.subr.bf16.mxu0 %v4702_v21 }
  0xc6   : > { %4359 = vmatprep.subr.bf16.mxu1 %v4702_v21 }
  0xc7   : > { %3124 = vmatmul.mubr.bf16.vlgmr.msra.gmra.mrb[80].mxu0 %v4696_v16 }
  0xc8   : > { %3189 = vmatmul.mubr.bf16.vlgmr.msra.gmra.mrb[80].mxu1 %v4699_v18  ;;  %4336 = vmatpush3.bf16.msra.mxu0 %v4702_v21  ;;  %v4727_v18 = vld [vmem:[%s5548_s1 + $0x638] sm:$0xff]  }
  0xc9   : > { %4367 = vmatpush3.bf16.msra.mxu1 %v4702_v21  ;;  %4337 = vmatprep.subr.bf16.mxu0 %v4703_v23 }
  0xca   : > { %4360 = vmatprep.subr.bf16.mxu1 %v4703_v23  ;;  %3131 = vmatprep.mubr.bf16.mxu0 %v4704_v26 }
  0xcb   : > { %3196 = vmatprep.mubr.bf16.mxu1 %v4706_v29 }
  0xcc   : > { %4338 = vmatpush3.bf16.msra.mxu0 %v4703_v23 }
  0xcd   : > { %4368 = vmatpush3.bf16.msra.mxu1 %v4703_v23  ;;  %4339 = vmatprep.subr.bf16.mxu0 %v4710_v34 }
  0xce   : > { %4361 = vmatprep.subr.bf16.mxu1 %v4710_v34 }
  0xcf   : > { %3132 = vmatmul.mubr.bf16.gmra.mrb[84].mxu0 %v4708_v32 }
  0xd0   : > { %3197 = vmatmul.mubr.bf16.gmra.mrb[84].mxu1 %v4709_v36  ;;  %3139 = vmatprep.mubr.bf16.mxu0 %v4712_v38 }
  0xd1   : > { %4340 = vmatpush3.bf16.msra.mxu0 %v4710_v34  ;;  %3204 = vmatprep.mubr.bf16.mxu1 %v4714_v41 }
  0xd2   : > { %4369 = vmatpush3.bf16.msra.mxu1 %v4710_v34  ;;  %4341 = vmatprep.subr.bf16.mxu0 %v4711_v40 }
  0xd3   : > { %4362 = vmatprep.subr.bf16.mxu1 %v4711_v40 }
  0xd5   : > { %4342 = vmatpush3.bf16.msra.mxu0 %v4711_v40 }
  0xd6   : > { %4370 = vmatpush3.bf16.msra.mxu1 %v4711_v40  ;;  %4343 = vmatprep.subr.bf16.mxu0 %v4718_v46 }
  0xd7   : > { %3140 = vmatmul.mubr.bf16.gmra.mrb[88].mxu0 %v4716_v43  ;;  %4363 = vmatprep.subr.bf16.mxu1 %v4718_v46 }
  0xd8   : > { %3205 = vmatmul.mubr.bf16.gmra.mrb[88].mxu1 %v4717_v50  ;;  %3147 = vmatprep.mubr.bf16.mxu0 %v4720_v51 }
  0xd9   : > { %4344 = vmatpush3.bf16.msra.mxu0 %v4718_v46  ;;  %3212 = vmatprep.mubr.bf16.mxu1 %v4722_v52 }
  0xda   : > { %4371 = vmatpush3.bf16.msra.mxu1 %v4718_v46  ;;  %4345 = vmatprep.subr.bf16.mxu0 %v4719_v57 }
  0xdb   : > { %4364 = vmatprep.subr.bf16.mxu1 %v4719_v57 }
  0xdd   : > { %4346 = vmatpush3.bf16.msra.mxu0 %v4719_v57 }
  0xde   : > { %4372 = vmatpush3.bf16.msra.mxu1 %v4719_v57  ;;  %4347 = vmatprep.subr.bf16.mxu0 %v4726_v58 }
  0xdf   : > { %3148 = vmatmul.mubr.bf16.gmra.mrb[92].mxu0 %v4724_v62  ;;  %4365 = vmatprep.subr.bf16.mxu1 %v4726_v58 }
  0xe0   : > { %3213 = vmatmul.mubr.bf16.gmra.mrb[92].mxu1 %v4725_v5  ;;  %4351 = vmatprep.mubr.bf16.mxu0 %v4728_v6 }
  0xe1   : > { %4348 = vmatpush3.bf16.msra.mxu0 %v4726_v58  ;;  %4355 = vmatprep.mubr.bf16.mxu1 %v4729_v11 }
  0xe2   : > { %4373 = vmatpush3.bf16.msra.mxu1 %v4726_v58  ;;  %4349 = vmatprep.subr.bf16.mxu0 %v4727_v18 }
  0xe3   : > { %4366 = vmatprep.subr.bf16.mxu1 %v4727_v18 }
  0xe5   : > { %4350 = vmatpush3.bf16.msra.mxu0 %v4727_v18 }
  0xe6   : > { %4374 = vmatpush3.bf16.msra.mxu1 %v4727_v18 }
  0xfa   : > { %v3859_v20 = vpop.f32.mrb[0].mxu0 }
  0xfb   : > { %v3860_v22 = vpop.f32.mrb[1].mxu0  ;;  %v3899_v27 = vpop.f32.mrb[0].mxu1 }
  0xfc   : > { %v5458_v24 = vadd.f32 %v3860_v22, %v3859_v20  ;;  %v3862_v25 = vpop.f32.mrb[2].mxu0  ;;  %v3900_v31 = vpop.f32.mrb[1].mxu1 }
  0xfd   : > { %v3863_v28 = vpop.f32.mrb[3].mxu0  ;;  %v5465_v33 = vadd.f32 %v3900_v31, %v3899_v27  ;;  %v3902_v35 = vpop.f32.mrb[2].mxu1  ;;  %v4730_v27 = vld [vmem:[%s4880_s12 + $0x128] ss:$100 sps:$4 sm:$0xff]  }
  0xfe   : > { %v5462_v30 = vadd.f32 %v3863_v28, %v3862_v25  ;;  %v3903_v37 = vpop.f32.mrb[3].mxu1  ;;  %v2476_v63 = vadd.f32 %v5458_v24, %v5492_v59  ;;  %v4731_v28 = vld [vmem:[%s4880_s12 + $0x2b8] ss:$100 sps:$4 sm:$0xff]   ;;  %4352 = vmatmul.mubr.bf16.vlgmr.msra.gmra.mrb[96].mxu0 %v4730_v27 }
  0xff   : > { %v3904_v39 = vadd.f32 %v3903_v37, %v3902_v35  ;;  %4356 = vmatmul.mubr.bf16.vlgmr.msra.gmra.mrb[96].mxu1 %v4731_v28 }
 0x100   : > { %v2479_v0 = vadd.f32 %v5462_v30, %v5492_v59  ;;  %v2541_v12 = vadd.f32 %v5465_v33, %v2476_v63 }
 0x102   : > { %v3865_v42 = vpop.f32.mrb[4].mxu0  ;;  %v2544_v13 = vadd.f32 %v3904_v39, %v2479_v0 }
 0x103   : > { %v3866_v44 = vpop.f32.mrb[5].mxu0  ;;  %v3905_v45 = vpop.f32.mrb[4].mxu1 }
 0x104   : > { %v3867_v47 = vadd.f32 %v3866_v44, %v3865_v42  ;;  %v3868_v48 = vpop.f32.mrb[6].mxu0  ;;  %v3906_v49 = vpop.f32.mrb[5].mxu1 }
 0x105   : > { %v3907_v53 = vadd.f32 %v3906_v49, %v3905_v45  ;;  %v3869_v54 = vpop.f32.mrb[7].mxu0  ;;  %v3908_v56 = vpop.f32.mrb[6].mxu1 }
 0x106   : > { %v3870_v55 = vadd.f32 %v3869_v54, %v3868_v48  ;;  %v3909_v60 = vpop.f32.mrb[7].mxu1  ;;  %v2484_v1 = vadd.f32 %v3867_v47, %v5492_v59 }
 0x107   : > { %v3910_v7 = vadd.f32 %v3909_v60, %v3908_v56 }
 0x108   : > { %v2487_v2 = vadd.f32 %v3870_v55, %v5492_v59  ;;  %v5505_v14 = vadd.f32 %v3907_v53, %v2484_v1 }
 0x10a   : > { %v3871_v61 = vpop.f32.mrb[8].mxu0  ;;  %v5510_v19 = vadd.f32 %v3910_v7, %v2487_v2 }
 0x10b   : > { %v3872_v3 = vpop.f32.mrb[9].mxu0  ;;  %v3911_v4 = vpop.f32.mrb[8].mxu1 }
 0x10c   : > { %v3873_v8 = vadd.f32 %v3872_v3, %v3871_v61  ;;  %v3874_v9 = vpop.f32.mrb[10].mxu0  ;;  %v3912_v10 = vpop.f32.mrb[9].mxu1 }
 0x10d   : > { %v3875_v15 = vpop.f32.mrb[11].mxu0  ;;  %v3913_v16 = vadd.f32 %v3912_v10, %v3911_v4  ;;  %v3914_v17 = vpop.f32.mrb[10].mxu1 }
 0x10e   : > { %v2492_v20 = vadd.f32 %v3873_v8, %v5492_v59  ;;  %v3876_v21 = vadd.f32 %v3875_v15, %v3874_v9  ;;  %v3915_v22 = vpop.f32.mrb[11].mxu1 }
 0x10f   : > { %v3916_v23 = vadd.f32 %v3915_v22, %v3914_v17 }
 0x110   : > { %v2495_v24 = vadd.f32 %v3876_v21, %v5492_v59  ;;  %v5514_v25 = vadd.f32 %v3913_v16, %v2492_v20 }
 0x112   : > { %v5516_v26 = vadd.f32 %v3916_v23, %v2495_v24  ;;  %v3877_v29 = vpop.f32.mrb[12].mxu0 }
 0x113   : > { %v3917_v30 = vpop.f32.mrb[12].mxu1  ;;  %v3878_v31 = vpop.f32.mrb[13].mxu0 }
 0x114   : > { %v3918_v32 = vpop.f32.mrb[13].mxu1  ;;  %v3879_v33 = vadd.f32 %v3878_v31, %v3877_v29  ;;  %v3880_v34 = vpop.f32.mrb[14].mxu0 }
 0x115   : > { %v3919_v35 = vadd.f32 %v3918_v32, %v3917_v30  ;;  %v3920_v36 = vpop.f32.mrb[14].mxu1  ;;  %v3881_v37 = vpop.f32.mrb[15].mxu0 }
 0x116   : > { %v3921_v38 = vpop.f32.mrb[15].mxu1  ;;  %v2500_v39 = vadd.f32 %v3879_v33, %v5492_v59  ;;  %v3882_v40 = vadd.f32 %v3881_v37, %v3880_v34 }
 0x117   : > { %v3922_v41 = vadd.f32 %v3921_v38, %v3920_v36 }
 0x118   : > { %v2503_v42 = vadd.f32 %v3882_v40, %v5492_v59  ;;  %v2565_v43 = vadd.f32 %v3919_v35, %v2500_v39 }
 0x11a   : > { %v2568_v44 = vadd.f32 %v3922_v41, %v2503_v42  ;;  %v3939_v45 = vpop.f32.mrb[16].mxu0 }
 0x11b   : > { %v3940_v46 = vpop.f32.mrb[17].mxu0  ;;  %v3979_v49 = vpop.f32.mrb[16].mxu1 }
 0x11c   : > { %v3941_v47 = vadd.f32 %v3940_v46, %v3939_v45  ;;  %v3942_v48 = vpop.f32.mrb[18].mxu0  ;;  %v3980_v51 = vpop.f32.mrb[17].mxu1 }
 0x11d   : > { %v3943_v50 = vpop.f32.mrb[19].mxu0  ;;  %v3981_v54 = vadd.f32 %v3980_v51, %v3979_v49  ;;  %v3982_v55 = vpop.f32.mrb[18].mxu1 }
 0x11e   : > { %v2606_v52 = vadd.f32 %v3941_v47, %v2541_v12  ;;  %v3944_v53 = vadd.f32 %v3943_v50, %v3942_v48  ;;  %v3983_v56 = vpop.f32.mrb[19].mxu1 }
 0x11f   : > { %v3984_v60 = vadd.f32 %v3983_v56, %v3982_v55 }
 0x120   : > { %v2609_v57 = vadd.f32 %v3944_v53, %v2544_v13  ;;  %v2671_v58 = vadd.f32 %v3981_v54, %v2606_v52 }
 0x122   : > { %v2674_v61 = vadd.f32 %v3984_v60, %v2609_v57  ;;  %v3945_v62 = vpop.f32.mrb[20].mxu0 }
 0x123   : > { %v3946_v59 = vpop.f32.mrb[21].mxu0  ;;  %v3985_v63 = vpop.f32.mrb[20].mxu1 }
 0x124   : > { %v3947_v0 = vadd.f32 %v3946_v59, %v3945_v62  ;;  %v3948_v1 = vpop.f32.mrb[22].mxu0  ;;  %v3986_v2 = vpop.f32.mrb[21].mxu1 }
 0x125   : > { %v3949_v3 = vpop.f32.mrb[23].mxu0  ;;  %v3987_v4 = vadd.f32 %v3986_v2, %v3985_v63  ;;  %v3988_v5 = vpop.f32.mrb[22].mxu1 }
 0x126   : > { %v2614_v6 = vadd.f32 %v3947_v0, %v5505_v14  ;;  %v3950_v7 = vadd.f32 %v3949_v3, %v3948_v1  ;;  %v3989_v8 = vpop.f32.mrb[23].mxu1 }
 0x127   : > { %v3990_v9 = vadd.f32 %v3989_v8, %v3988_v5 }
 0x128   : > { %v2617_v10 = vadd.f32 %v3950_v7, %v5510_v19  ;;  %v2679_v11 = vadd.f32 %v3987_v4, %v2614_v6 }
 0x12a   : > { %v2682_v12 = vadd.f32 %v3990_v9, %v2617_v10  ;;  %v3951_v13 = vpop.f32.mrb[24].mxu0 }
 0x12b   : > { %v3991_v15 = vpop.f32.mrb[24].mxu1  ;;  %v3952_v16 = vpop.f32.mrb[25].mxu0 }
 0x12c   : > { %v3992_v17 = vpop.f32.mrb[25].mxu1  ;;  %v3953_v18 = vadd.f32 %v3952_v16, %v3951_v13  ;;  %v3954_v20 = vpop.f32.mrb[26].mxu0 }
 0x12d   : > { %v3993_v21 = vadd.f32 %v3992_v17, %v3991_v15  ;;  %v3994_v22 = vpop.f32.mrb[26].mxu1  ;;  %v3955_v23 = vpop.f32.mrb[27].mxu0 }
 0x12e   : > { %v3995_v24 = vpop.f32.mrb[27].mxu1  ;;  %v2622_v27 = vadd.f32 %v3953_v18, %v5514_v25  ;;  %v3956_v14 = vadd.f32 %v3955_v23, %v3954_v20 }
 0x12f   : > { %v3996_v28 = vadd.f32 %v3995_v24, %v3994_v22 }
 0x130   : > { %v2625_v29 = vadd.f32 %v3956_v14, %v5516_v26  ;;  %v2687_v30 = vadd.f32 %v3993_v21, %v2622_v27 }
 0x132   : > { %v2690_v19 = vadd.f32 %v3996_v28, %v2625_v29  ;;  %v3957_v31 = vpop.f32.mrb[28].mxu0 }
 0x133   : > { %v3958_v32 = vpop.f32.mrb[29].mxu0  ;;  %v3997_v33 = vpop.f32.mrb[28].mxu1 }
 0x134   : > { %v3959_v34 = vadd.f32 %v3958_v32, %v3957_v31  ;;  %v3960_v35 = vpop.f32.mrb[30].mxu0  ;;  %v3998_v36 = vpop.f32.mrb[29].mxu1 }
 0x135   : > { %v3961_v37 = vpop.f32.mrb[31].mxu0  ;;  %v3999_v38 = vadd.f32 %v3998_v36, %v3997_v33  ;;  %v4000_v39 = vpop.f32.mrb[30].mxu1 }
 0x136   : > { %v2630_v40 = vadd.f32 %v3959_v34, %v2565_v43  ;;  %v3962_v41 = vadd.f32 %v3961_v37, %v3960_v35  ;;  %v4001_v42 = vpop.f32.mrb[31].mxu1 }
 0x137   : > { %v4002_v45 = vadd.f32 %v4001_v42, %v4000_v39 }
 0x138   : > { %v2633_v25 = vadd.f32 %v3962_v41, %v2568_v44  ;;  %v2695_v46 = vadd.f32 %v3999_v38, %v2630_v40 }
 0x13a   : > { %v2698_v47 = vadd.f32 %v4002_v45, %v2633_v25  ;;  %v4019_v48 = vpop.f32.mrb[32].mxu0 }
 0x13b   : > { %v4020_v26 = vpop.f32.mrb[33].mxu0  ;;  %v4059_v49 = vpop.f32.mrb[32].mxu1 }
 0x13c   : > { %v4021_v50 = vadd.f32 %v4020_v26, %v4019_v48  ;;  %v4022_v51 = vpop.f32.mrb[34].mxu0  ;;  %v4060_v52 = vpop.f32.mrb[33].mxu1 }
 0x13d   : > { %v4023_v53 = vpop.f32.mrb[35].mxu0  ;;  %v4061_v54 = vadd.f32 %v4060_v52, %v4059_v49  ;;  %v4062_v55 = vpop.f32.mrb[34].mxu1 }
 0x13e   : > { %v2736_v56 = vadd.f32 %v4021_v50, %v2671_v58  ;;  %v4024_v57 = vadd.f32 %v4023_v53, %v4022_v51  ;;  %v4063_v60 = vpop.f32.mrb[35].mxu1 }
 0x13f   : > { %v4064_v62 = vadd.f32 %v4063_v60, %v4062_v55 }
 0x140   : > { %v2739_v43 = vadd.f32 %v4024_v57, %v2674_v61  ;;  %v2801_v59 = vadd.f32 %v4061_v54, %v2736_v56 }
 0x142   : > { %v2804_v63 = vadd.f32 %v4064_v62, %v2739_v43  ;;  %v4025_v0 = vpop.f32.mrb[36].mxu0 }
 0x143   : > { %v4065_v44 = vpop.f32.mrb[36].mxu1  ;;  %v4026_v1 = vpop.f32.mrb[37].mxu0 }
 0x144   : > { %v4066_v2 = vpop.f32.mrb[37].mxu1  ;;  %v4027_v3 = vadd.f32 %v4026_v1, %v4025_v0  ;;  %v4028_v4 = vpop.f32.mrb[38].mxu0 }
 0x145   : > { %v4067_v5 = vadd.f32 %v4066_v2, %v4065_v44  ;;  %v4068_v6 = vpop.f32.mrb[38].mxu1  ;;  %v4029_v7 = vpop.f32.mrb[39].mxu0 }
 0x146   : > { %v4069_v8 = vpop.f32.mrb[39].mxu1  ;;  %v2744_v9 = vadd.f32 %v4027_v3, %v2679_v11  ;;  %v4030_v10 = vadd.f32 %v4029_v7, %v4028_v4 }
 0x147   : > { %v4070_v13 = vadd.f32 %v4069_v8, %v4068_v6 }
 0x148   : > { %v2747_v58 = vadd.f32 %v4030_v10, %v2682_v12  ;;  %v2809_v15 = vadd.f32 %v4067_v5, %v2744_v9 }
 0x14a   : > { %v2812_v16 = vadd.f32 %v4070_v13, %v2747_v58  ;;  %v4031_v17 = vpop.f32.mrb[40].mxu0 }
 0x14b   : > { %v4032_v61 = vpop.f32.mrb[41].mxu0  ;;  %v4071_v18 = vpop.f32.mrb[40].mxu1 }
 0x14c   : > { %v4033_v20 = vadd.f32 %v4032_v61, %v4031_v17  ;;  %v4034_v21 = vpop.f32.mrb[42].mxu0  ;;  %v4072_v22 = vpop.f32.mrb[41].mxu1 }
 0x14d   : > { %v4035_v23 = vpop.f32.mrb[43].mxu0  ;;  %v4073_v24 = vadd.f32 %v4072_v22, %v4071_v18  ;;  %v4074_v27 = vpop.f32.mrb[42].mxu1 }
 0x14e   : > { %v2752_v14 = vadd.f32 %v4033_v20, %v2687_v30  ;;  %v4036_v28 = vadd.f32 %v4035_v23, %v4034_v21  ;;  %v4075_v29 = vpop.f32.mrb[43].mxu1 }
 0x14f   : > { %v4076_v31 = vadd.f32 %v4075_v29, %v4074_v27 }
 0x150   : > { %v2755_v32 = vadd.f32 %v4036_v28, %v2690_v19  ;;  %v2817_v11 = vadd.f32 %v4073_v24, %v2752_v14 }
 0x152   : > { %v2820_v33 = vadd.f32 %v4076_v31, %v2755_v32  ;;  %v4037_v34 = vpop.f32.mrb[44].mxu0 }
 0x153   : > { %v4038_v12 = vpop.f32.mrb[45].mxu0  ;;  %v4077_v35 = vpop.f32.mrb[44].mxu1 }
 0x154   : > { %v4039_v36 = vadd.f32 %v4038_v12, %v4037_v34  ;;  %v4040_v37 = vpop.f32.mrb[46].mxu0  ;;  %v4078_v38 = vpop.f32.mrb[45].mxu1 }
 0x155   : > { %v4041_v39 = vpop.f32.mrb[47].mxu0  ;;  %v4079_v40 = vadd.f32 %v4078_v38, %v4077_v35  ;;  %v4080_v41 = vpop.f32.mrb[46].mxu1 }
 0x156   : > { %v2760_v42 = vadd.f32 %v4039_v36, %v2695_v46  ;;  %v4042_v45 = vadd.f32 %v4041_v39, %v4040_v37  ;;  %v4081_v25 = vpop.f32.mrb[47].mxu1 }
 0x157   : > { %v4082_v48 = vadd.f32 %v4081_v25, %v4080_v41 }
 0x158   : > { %v2763_v30 = vadd.f32 %v4042_v45, %v2698_v47  ;;  %v2825_v26 = vadd.f32 %v4079_v40, %v2760_v42 }
 0x15a   : > { %v2828_v49 = vadd.f32 %v4082_v48, %v2763_v30  ;;  %v4099_v50 = vpop.f32.mrb[48].mxu0 }
 0x15b   : > { %v4100_v19 = vpop.f32.mrb[49].mxu0  ;;  %v4139_v51 = vpop.f32.mrb[48].mxu1 }
 0x15c   : > { %v4101_v52 = vadd.f32 %v4100_v19, %v4099_v50  ;;  %v4102_v53 = vpop.f32.mrb[50].mxu0  ;;  %v4140_v54 = vpop.f32.mrb[49].mxu1 }
 0x15d   : > { %v4103_v55 = vpop.f32.mrb[51].mxu0  ;;  %v4141_v56 = vadd.f32 %v4140_v54, %v4139_v51  ;;  %v4142_v57 = vpop.f32.mrb[50].mxu1 }
 0x15e   : > { %v2866_v60 = vadd.f32 %v4101_v52, %v2801_v59  ;;  %v4104_v62 = vadd.f32 %v4103_v55, %v4102_v53  ;;  %v4143_v43 = vpop.f32.mrb[51].mxu1 }
 0x15f   : > { %v4144_v0 = vadd.f32 %v4143_v43, %v4142_v57 }
 0x160   : > { %v2869_v46 = vadd.f32 %v4104_v62, %v2804_v63  ;;  %v2931_v44 = vadd.f32 %v4141_v56, %v2866_v60 }
 0x162   : > { %v2934_v1 = vadd.f32 %v4144_v0, %v2869_v46  ;;  %v4105_v2 = vpop.f32.mrb[52].mxu0 }
 0x163   : > { %v4106_v47 = vpop.f32.mrb[53].mxu0  ;;  %v4145_v3 = vpop.f32.mrb[52].mxu1 }
 0x164   : > { %v4107_v4 = vadd.f32 %v4106_v47, %v4105_v2  ;;  %v4108_v5 = vpop.f32.mrb[54].mxu0  ;;  %v4146_v6 = vpop.f32.mrb[53].mxu1 }
 0x165   : > { %v4109_v7 = vpop.f32.mrb[55].mxu0  ;;  %v4147_v8 = vadd.f32 %v4146_v6, %v4145_v3  ;;  %v4148_v9 = vpop.f32.mrb[54].mxu1 }
 0x166   : > { %v2874_v10 = vadd.f32 %v4107_v4, %v2809_v15  ;;  %v4110_v13 = vadd.f32 %v4109_v7, %v4108_v5  ;;  %v4149_v58 = vpop.f32.mrb[55].mxu1 }
 0x167   : > { %v4150_v17 = vadd.f32 %v4149_v58, %v4148_v9 }
 0x168   : > { %v2877_v59 = vadd.f32 %v4110_v13, %v2812_v16  ;;  %v2939_v61 = vadd.f32 %v4147_v8, %v2874_v10 }
 0x16a   : > { %v2942_v18 = vadd.f32 %v4150_v17, %v2877_v59  ;;  %v4111_v20 = vpop.f32.mrb[56].mxu0 }
 0x16b   : > { %v4112_v63 = vpop.f32.mrb[57].mxu0  ;;  %v4151_v21 = vpop.f32.mrb[56].mxu1 }
 0x16c   : > { %v4113_v22 = vadd.f32 %v4112_v63, %v4111_v20  ;;  %v4114_v23 = vpop.f32.mrb[58].mxu0  ;;  %v4152_v24 = vpop.f32.mrb[57].mxu1 }
 0x16d   : > { %v4115_v27 = vpop.f32.mrb[59].mxu0  ;;  %v4153_v14 = vadd.f32 %v4152_v24, %v4151_v21  ;;  %v4154_v28 = vpop.f32.mrb[58].mxu1 }
 0x16e   : > { %v2882_v29 = vadd.f32 %v4113_v22, %v2817_v11  ;;  %v4116_v31 = vadd.f32 %v4115_v27, %v4114_v23  ;;  %v4155_v32 = vpop.f32.mrb[59].mxu1 }
 0x16f   : > { %v4156_v34 = vadd.f32 %v4155_v32, %v4154_v28 }
 0x170   : > { %v2885_v15 = vadd.f32 %v4116_v31, %v2820_v33  ;;  %v2947_v12 = vadd.f32 %v4153_v14, %v2882_v29 }
 0x172   : > { %v2950_v35 = vadd.f32 %v4156_v34, %v2885_v15  ;;  %v4117_v36 = vpop.f32.mrb[60].mxu0 }
 0x173   : > { %v4157_v16 = vpop.f32.mrb[60].mxu1  ;;  %v4118_v37 = vpop.f32.mrb[61].mxu0 }
 0x174   : > { %v4158_v38 = vpop.f32.mrb[61].mxu1  ;;  %v4119_v39 = vadd.f32 %v4118_v37, %v4117_v36  ;;  %v4120_v40 = vpop.f32.mrb[62].mxu0 }
 0x175   : > { %v4159_v41 = vadd.f32 %v4158_v38, %v4157_v16  ;;  %v4160_v42 = vpop.f32.mrb[62].mxu1  ;;  %v4121_v45 = vpop.f32.mrb[63].mxu0 }
 0x176   : > { %v4161_v25 = vpop.f32.mrb[63].mxu1  ;;  %v2890_v48 = vadd.f32 %v4119_v39, %v2825_v26  ;;  %v4122_v30 = vadd.f32 %v4121_v45, %v4120_v40 }
 0x177   : > { %v4162_v50 = vadd.f32 %v4161_v25, %v4160_v42 }
 0x178   : > { %v2893_v11 = vadd.f32 %v4122_v30, %v2828_v49  ;;  %v2955_v19 = vadd.f32 %v4159_v41, %v2890_v48 }
 0x17a   : > { %v2958_v51 = vadd.f32 %v4162_v50, %v2893_v11  ;;  %v4179_v52 = vpop.f32.mrb[64].mxu0 }
 0x17b   : > { %v4180_v33 = vpop.f32.mrb[65].mxu0  ;;  %v4219_v55 = vpop.f32.mrb[64].mxu1 }
 0x17c   : > { %v4181_v53 = vadd.f32 %v4180_v33, %v4179_v52  ;;  %v4182_v54 = vpop.f32.mrb[66].mxu0  ;;  %v4220_v57 = vpop.f32.mrb[65].mxu1 }
 0x17d   : > { %v4183_v56 = vpop.f32.mrb[67].mxu0  ;;  %v4221_v43 = vadd.f32 %v4220_v57, %v4219_v55  ;;  %v4222_v0 = vpop.f32.mrb[66].mxu1 }
 0x17e   : > { %v2996_v60 = vadd.f32 %v4181_v53, %v2931_v44  ;;  %v4184_v62 = vadd.f32 %v4183_v56, %v4182_v54  ;;  %v4223_v46 = vpop.f32.mrb[67].mxu1 }
 0x17f   : > { %v4224_v26 = vadd.f32 %v4223_v46, %v4222_v0 }
 0x180   : > { %v2999_v2 = vadd.f32 %v4184_v62, %v2934_v1  ;;  %v3061_v47 = vadd.f32 %v4221_v43, %v2996_v60 }
 0x182   : > { %v3064_v3 = vadd.f32 %v4224_v26, %v2999_v2  ;;  %v4185_v4 = vpop.f32.mrb[68].mxu0 }
 0x183   : > { %v4186_v49 = vpop.f32.mrb[69].mxu0  ;;  %v4225_v5 = vpop.f32.mrb[68].mxu1 }
 0x184   : > { %v4187_v6 = vadd.f32 %v4186_v49, %v4185_v4  ;;  %v4188_v7 = vpop.f32.mrb[70].mxu0  ;;  %v4226_v8 = vpop.f32.mrb[69].mxu1 }
 0x185   : > { %v4189_v9 = vpop.f32.mrb[71].mxu0  ;;  %v4227_v10 = vadd.f32 %v4226_v8, %v4225_v5  ;;  %v4228_v13 = vpop.f32.mrb[70].mxu1 }
 0x186   : > { %v3004_v58 = vadd.f32 %v4187_v6, %v2939_v61  ;;  %v4190_v17 = vadd.f32 %v4189_v9, %v4188_v7  ;;  %v4229_v44 = vpop.f32.mrb[71].mxu1 }
 0x187   : > { %v4230_v59 = vadd.f32 %v4229_v44, %v4228_v13 }
 0x188   : > { %v3007_v20 = vadd.f32 %v4190_v17, %v2942_v18  ;;  %v3069_v63 = vadd.f32 %v4227_v10, %v3004_v58 }
 0x18a   : > { %v3072_v21 = vadd.f32 %v4230_v59, %v3007_v20  ;;  %v4191_v1 = vpop.f32.mrb[72].mxu0 }
 0x18b   : > { %v4231_v22 = vpop.f32.mrb[72].mxu1  ;;  %v4192_v23 = vpop.f32.mrb[73].mxu0 }
 0x18c   : > { %v4232_v24 = vpop.f32.mrb[73].mxu1  ;;  %v4193_v27 = vadd.f32 %v4192_v23, %v4191_v1  ;;  %v4194_v14 = vpop.f32.mrb[74].mxu0 }
 0x18d   : > { %v4233_v28 = vadd.f32 %v4232_v24, %v4231_v22  ;;  %v4234_v29 = vpop.f32.mrb[74].mxu1  ;;  %v4195_v31 = vpop.f32.mrb[75].mxu0 }
 0x18e   : > { %v4235_v32 = vpop.f32.mrb[75].mxu1  ;;  %v3012_v34 = vadd.f32 %v4193_v27, %v2947_v12  ;;  %v4196_v15 = vadd.f32 %v4195_v31, %v4194_v14 }
 0x18f   : > { %v4236_v36 = vadd.f32 %v4235_v32, %v4234_v29 }
 0x190   : > { %v3015_v61 = vadd.f32 %v4196_v15, %v2950_v35  ;;  %v3077_v16 = vadd.f32 %v4233_v28, %v3012_v34 }
 0x192   : > { %v3080_v37 = vadd.f32 %v4236_v36, %v3015_v61  ;;  %v4197_v38 = vpop.f32.mrb[76].mxu0 }
 0x193   : > { %v4198_v18 = vpop.f32.mrb[77].mxu0  ;;  %v4237_v39 = vpop.f32.mrb[76].mxu1 }
 0x194   : > { %v4199_v40 = vadd.f32 %v4198_v18, %v4197_v38  ;;  %v4200_v41 = vpop.f32.mrb[78].mxu0  ;;  %v4238_v42 = vpop.f32.mrb[77].mxu1 }
 0x195   : > { %v4201_v45 = vpop.f32.mrb[79].mxu0  ;;  %v4239_v25 = vadd.f32 %v4238_v42, %v4237_v39  ;;  %v4240_v48 = vpop.f32.mrb[78].mxu1 }
 0x196   : > { %v3020_v30 = vadd.f32 %v4199_v40, %v2955_v19  ;;  %v4202_v50 = vadd.f32 %v4201_v45, %v4200_v41  ;;  %v4241_v11 = vpop.f32.mrb[79].mxu1 }
 0x197   : > { %v4242_v52 = vadd.f32 %v4241_v11, %v4240_v48 }
 0x198   : > { %v3023_v33 = vadd.f32 %v4202_v50, %v2958_v51  ;;  %v3085_v12 = vadd.f32 %v4239_v25, %v3020_v30 }
 0x19a   : > { %v3088_v53 = vadd.f32 %v4242_v52, %v3023_v33  ;;  %v4259_v54 = vpop.f32.mrb[80].mxu0 }
 0x19b   : > { %v4260_v35 = vpop.f32.mrb[81].mxu0  ;;  %v4299_v55 = vpop.f32.mrb[80].mxu1 }
 0x19c   : > { %v4261_v56 = vadd.f32 %v4260_v35, %v4259_v54  ;;  %v4262_v57 = vpop.f32.mrb[82].mxu0  ;;  %v4300_v60 = vpop.f32.mrb[81].mxu1 }
 0x19d   : > { %v4263_v62 = vpop.f32.mrb[83].mxu0  ;;  %v4301_v43 = vadd.f32 %v4300_v60, %v4299_v55  ;;  %v4302_v0 = vpop.f32.mrb[82].mxu1 }
 0x19e   : > { %v3126_v46 = vadd.f32 %v4261_v56, %v3061_v47  ;;  %v4264_v2 = vadd.f32 %v4263_v62, %v4262_v57  ;;  %v4303_v26 = vpop.f32.mrb[83].mxu1 }
 0x19f   : > { %v4304_v4 = vadd.f32 %v4303_v26, %v4302_v0 }
 0x1a0   : > { %v3129_v19 = vadd.f32 %v4264_v2, %v3064_v3  ;;  %v3191_v49 = vadd.f32 %v4301_v43, %v3126_v46 }
 0x1a2   : > { %v4265_v5 = vpop.f32.mrb[84].mxu0  ;;  %v3194_v6 = vadd.f32 %v4304_v4, %v3129_v19 }
 0x1a3   : > { %v4266_v51 = vpop.f32.mrb[85].mxu0  ;;  %v4305_v7 = vpop.f32.mrb[84].mxu1 }
 0x1a4   : > { %v4267_v8 = vadd.f32 %v4266_v51, %v4265_v5  ;;  %v4268_v9 = vpop.f32.mrb[86].mxu0  ;;  %v4306_v10 = vpop.f32.mrb[85].mxu1 }
 0x1a5   : > { %v4269_v13 = vpop.f32.mrb[87].mxu0  ;;  %v4307_v58 = vadd.f32 %v4306_v10, %v4305_v7  ;;  %v4308_v17 = vpop.f32.mrb[86].mxu1 }
 0x1a6   : > { %v3134_v44 = vadd.f32 %v4267_v8, %v3069_v63  ;;  %v4270_v59 = vadd.f32 %v4269_v13, %v4268_v9  ;;  %v4309_v20 = vpop.f32.mrb[87].mxu1 }
 0x1a7   : > { %v4310_v1 = vadd.f32 %v4309_v20, %v4308_v17 }
 0x1a8   : > { %v3137_v47 = vadd.f32 %v4270_v59, %v3072_v21  ;;  %v3199_v22 = vadd.f32 %v4307_v58, %v3134_v44 }
 0x1aa   : > { %v4271_v23 = vpop.f32.mrb[88].mxu0  ;;  %v3202_v24 = vadd.f32 %v4310_v1, %v3137_v47 }
 0x1ab   : > { %v4272_v3 = vpop.f32.mrb[89].mxu0  ;;  %v4311_v27 = vpop.f32.mrb[88].mxu1 }
 0x1ac   : > { %v4273_v14 = vadd.f32 %v4272_v3, %v4271_v23  ;;  %v4274_v28 = vpop.f32.mrb[90].mxu0  ;;  %v4312_v29 = vpop.f32.mrb[89].mxu1 }
 0x1ad   : > { %v4275_v31 = vpop.f32.mrb[91].mxu0  ;;  %v4313_v32 = vadd.f32 %v4312_v29, %v4311_v27  ;;  %v4314_v34 = vpop.f32.mrb[90].mxu1 }
 0x1ae   : > { %v3142_v15 = vadd.f32 %v4273_v14, %v3077_v16  ;;  %v4276_v36 = vadd.f32 %v4275_v31, %v4274_v28  ;;  %v4315_v61 = vpop.f32.mrb[91].mxu1 }
 0x1af   : > { %v4316_v38 = vadd.f32 %v4315_v61, %v4314_v34 }
 0x1b0   : > { %v3145_v63 = vadd.f32 %v4276_v36, %v3080_v37  ;;  %v3207_v18 = vadd.f32 %v4313_v32, %v3142_v15 }
 0x1b2   : > { %v4277_v39 = vpop.f32.mrb[92].mxu0  ;;  %v3210_v40 = vadd.f32 %v4316_v38, %v3145_v63 }
 0x1b3   : > { %v4278_v21 = vpop.f32.mrb[93].mxu0  ;;  %v4317_v41 = vpop.f32.mrb[92].mxu1 }
 0x1b4   : > { %v4279_v42 = vadd.f32 %v4278_v21, %v4277_v39  ;;  %v4280_v45 = vpop.f32.mrb[94].mxu0  ;;  %v4318_v25 = vpop.f32.mrb[93].mxu1 }
 0x1b5   : > { %v4281_v48 = vpop.f32.mrb[95].mxu0  ;;  %v4319_v30 = vadd.f32 %v4318_v25, %v4317_v41  ;;  %v4320_v50 = vpop.f32.mrb[94].mxu1 }
 0x1b6   : > { %v3150_v11 = vadd.f32 %v4279_v42, %v3085_v12  ;;  %v4282_v52 = vadd.f32 %v4281_v48, %v4280_v45  ;;  %v4321_v33 = vpop.f32.mrb[95].mxu1 }
 0x1b7   : > { %v4322_v54 = vadd.f32 %v4321_v33, %v4320_v50 }
 0x1b8   : > { %v3153_v16 = vadd.f32 %v4282_v52, %v3088_v53  ;;  %v3215_v35 = vadd.f32 %v4319_v30, %v3150_v11 }
 0x1ba   : > { %v3218_v55 = vadd.f32 %v4322_v54, %v3153_v16 }
 0x1d1   : > { %v4353_v56 = vpop.f32.mrb[96].mxu0 }
 0x1d2   : > { %v3264_v37 = vadd.f32 %v4353_v56, %v3199_v22  ;;  %v4357_v57 = vpop.f32.mrb[96].mxu1  ;;  %v3255_v60 = vpop.f32.mrb[97].mxu0 }
 0x1d3   : > { %v3280_v62 = vadd.f32 %v4357_v57, %v3215_v35  ;;  %v3256_v43 = vadd.f32 %v3255_v60, %v3191_v49  ;;  %v3271_v0 = vpop.f32.mrb[97].mxu1  ;;  %v4354_v46 = vpop.f32.mrb[98].mxu0  ;;  %v3799_v35 = vld [vmem:[%s5550_s3] ss:$0 sm:$0xff] }
 0x1d4   : > { %v3272_v2 = vadd.f32 %v3271_v0, %v3207_v18  ;;  %v3267_v26 = vadd.f32 %v4354_v46, %v3202_v24  ;;  %v4358_v4 = vpop.f32.mrb[98].mxu1  ;;  %v3258_v19 = vpop.f32.mrb[99].mxu0  ;;  %v3800_v46 = vld [vmem:[%s5551_s4] ss:$0 sm:$0xff] }
 0x1d5   : > { %v3283_v5 = vadd.f32 %v4358_v4, %v3218_v55  ;;  %v3259_v12 = vadd.f32 %v3258_v19, %v3194_v6  ;;  %v3274_v51 = vpop.f32.mrb[99].mxu1 }
 0x1d6   : > { %v3275_v7 = vadd.f32 %v3274_v51, %v3210_v40 }
 0x1d7   : > { %v3286_v8 = vadd.f32 %v3259_v12, %v3256_v43 }
 0x1d9   : > { %v3287_v53 = vadd.f32 %v3286_v8, %v3264_v37 }
 0x1db   : > { %v3288_v9 = vadd.f32 %v3287_v53, %v3267_v26 }
 0x1dd   : > { %v3289_v10 = vadd.f32 %v3288_v9, %v3272_v2 }
 0x1df   : > { %v3290_v13 = vadd.f32 %v3289_v10, %v3275_v7 }
 0x1e1   : > { %v3291_v58 = vadd.f32 %v3290_v13, %v3280_v62 }
 0x1e3   : > { %v3292_v17 = vadd.f32 %v3291_v58, %v3283_v5 }
 0x1e5   : > { %v3293_v44 = vrot.slane %v3292_v17, 4 }
 0x1e7   : > { %v3294_v59 = vadd.f32 %v3293_v44, %v3292_v17 }
 0x1e9   : > { %v3295_v49 = vrot.slane %v3294_v59, 2 }
 0x1eb   : > { %v3296_v20 = vadd.f32 %v3295_v49, %v3294_v59 }
 0x1ed   : > { %v3297_v1 = vrot.slane %v3296_v20, 1 }
 0x1ef   : > { %v3298_v47 = vadd.f32 %v3297_v1, %v3296_v20 }
 0x1f1   : > { %v3300_v22 = vmul.f32 0.015625, %v3298_v47 }
 0x1f3   : > { %v3301_v23 = vsub.f32 %v3256_v43, %v3300_v22  ;;  %v3302_v24 = vsub.f32 %v3259_v12, %v3300_v22  ;;  %v3303_v3 = vsub.f32 %v3264_v37, %v3300_v22  ;;  %v3304_v6 = vsub.f32 %v3267_v26, %v3300_v22 }
 0x1f4   : > { %v3305_v27 = vsub.f32 %v3272_v2, %v3300_v22  ;;  %v3306_v14 = vsub.f32 %v3275_v7, %v3300_v22  ;;  %v3307_v28 = vsub.f32 %v3280_v62, %v3300_v22  ;;  %v3308_v29 = vsub.f32 %v3283_v5, %v3300_v22 }
 0x1f5   : > { %v3309_v31 = vmul.f32 %v3301_v23, %v3301_v23  ;;  %v3310_v32 = vmul.f32 %v3302_v24, %v3302_v24  ;;  %v3311_v34 = vmul.f32 %v3303_v3, %v3303_v3  ;;  %v3312_v36 = vmul.f32 %v3304_v6, %v3304_v6 }
 0x1f6   : > { %v3313_v38 = vmul.f32 %v3305_v27, %v3305_v27  ;;  %v3314_v18 = vmul.f32 %v3306_v14, %v3306_v14  ;;  %v3315_v40 = vmul.f32 %v3307_v28, %v3307_v28  ;;  %v3316_v41 = vmul.f32 %v3308_v29, %v3308_v29 }
 0x1f7   : > { %v3317_v15 = vadd.f32 %v3310_v32, %v3309_v31 }
 0x1f9   : > { %v3318_v61 = vadd.f32 %v3317_v15, %v3311_v34 }
 0x1fb   : > { %v3319_v63 = vadd.f32 %v3318_v61, %v3312_v36 }
 0x1fd   : > { %v3320_v39 = vadd.f32 %v3319_v63, %v3313_v38 }
 0x1ff   : > { %v3321_v21 = vadd.f32 %v3320_v39, %v3314_v18 }
 0x201   : > { %v3322_v42 = vadd.f32 %v3321_v21, %v3315_v40 }
 0x203   : > { %v3323_v45 = vadd.f32 %v3322_v42, %v3316_v41 }
 0x205   : > { %v3324_v25 = vrot.slane %v3323_v45, 4 }
 0x207   : > { %v3325_v48 = vadd.f32 %v3324_v25, %v3323_v45 }
 0x209   : > { %v3326_v30 = vrot.slane %v3325_v48, 2 }
 0x20b   : > { %v3327_v50 = vadd.f32 %v3326_v30, %v3325_v48 }
 0x20d   : > { %v3328_v11 = vrot.slane %v3327_v50, 1 }
 0x20f   : > { %v3329_v52 = vadd.f32 %v3328_v11, %v3327_v50 }
 0x211   : > { %v3330_v33 = vmul.f32 0.015625, %v3329_v52 }
 0x213   : > { %v3331_v54 = vadd.f32 1e-05, %v3330_v33 }
 0x215   : > { %4732 = vrsqrt.f32 %v3331_v54 }
 0x21f   : > { %v4733_v16 = vpop.eup %4732 }
 0x220   : > { %v3333_v55 = vmul.f32 %v4733_v16, %v3301_v23  ;;  %v3334_v56 = vmul.f32 %v4733_v16, %v3302_v24  ;;  %v3335_v37 = vmul.f32 %v4733_v16, %v3303_v3  ;;  %v3336_v57 = vmul.f32 %v4733_v16, %v3304_v6 }
 0x221   : > { %v3337_v60 = vmul.f32 %v4733_v16, %v3305_v27  ;;  %v3338_v62 = vmul.f32 %v4733_v16, %v3306_v14  ;;  %v3339_v43 = vmul.f32 %v4733_v16, %v3307_v28  ;;  %v3340_v0 = vmul.f32 %v4733_v16, %v3308_v29 }
 0x222   : > { %v3348_v2 = vmul.f32 %v3799_v35, %v3333_v55  ;;  %v3349_v26 = vmul.f32 %v3799_v35, %v3334_v56  ;;  %v3350_v4 = vmul.f32 %v3799_v35, %v3335_v37  ;;  %v3351_v19 = vmul.f32 %v3799_v35, %v3336_v57 }
 0x223   : > { %v3352_v5 = vmul.f32 %v3799_v35, %v3337_v60  ;;  %v3353_v12 = vmul.f32 %v3799_v35, %v3338_v62  ;;  %v3354_v51 = vmul.f32 %v3799_v35, %v3339_v43  ;;  %v3355_v7 = vmul.f32 %v3799_v35, %v3340_v0 }
 0x224   : > { %v3363_v8 = vadd.f32 %v3800_v46, %v3348_v2  ;;  %v3364_v53 = vadd.f32 %v3800_v46, %v3349_v26  ;;  %v3365_v9 = vadd.f32 %v3800_v46, %v3350_v4  ;;  %v3366_v10 = vadd.f32 %v3800_v46, %v3351_v19 }
 0x225   : > { %v3367_v13 = vadd.f32 %v3800_v46, %v3352_v5  ;;  %v3368_v58 = vadd.f32 %v3800_v46, %v3353_v12  ;;  %v3369_v17 = vadd.f32 %v3800_v46, %v3354_v51  ;;  %v3370_v44 = vadd.f32 %v3800_v46, %v3355_v7 }
 0x226   : > { %vm3371_vm0 = vcmp.ge.f32.partialorder %v3363_v8, 0.0  ;;  %vm3372_vm1 = vcmp.ge.f32.partialorder %v3364_v53, 0.0  ;;  %vm3373_vm2 = vcmp.ge.f32.partialorder %v3365_v9, 0.0  ;;  %vm3374_vm3 = vcmp.ge.f32.partialorder %v3366_v10, 0.0 }
 0x227   : > { %vm3375_vm4 = vcmp.ge.f32.partialorder %v3367_v13, 0.0  ;;  %vm3376_vm5 = vcmp.ge.f32.partialorder %v3368_v58, 0.0  ;;  %vm3377_vm6 = vcmp.ge.f32.partialorder %v3369_v17, 0.0  ;;  %vm3378_vm7 = vcmp.ge.f32.partialorder %v3370_v44, 0.0 }
 0x228   : > { %v3379_v59 = vmul.f32 0.2, %v3363_v8  ;;  %v3380_v49 = vmul.f32 0.2, %v3364_v53  ;;  %v3381_v20 = vmul.f32 0.2, %v3365_v9 }
 0x229   : > { %v3382_v1 = vmul.f32 0.2, %v3366_v10  ;;  %v3383_v47 = vmul.f32 0.2, %v3367_v13  ;;  %v3384_v22 = vmul.f32 0.2, %v3368_v58 }
 0x22a   : > { %v3385_v23 = vmul.f32 0.2, %v3369_v17  ;;  %v3386_v24 = vmul.f32 0.2, %v3370_v44  ;;  %v3387_v3 = vsel %vm3371_vm0, %v3363_v8, %v3379_v59  ;;  %v3388_v6 = vsel %vm3372_vm1, %v3364_v53, %v3380_v49 }
 0x22b   : > { %v3389_v27 = vsel %vm3373_vm2, %v3365_v9, %v3381_v20  ;;  %v3390_v14 = vsel %vm3374_vm3, %v3366_v10, %v3382_v1  ;;  %v3391_v28 = vsel %vm3375_vm4, %v3367_v13, %v3383_v47  ;;  %v3392_v29 = vsel %vm3376_vm5, %v3368_v58, %v3384_v22 }
 0x22c   : > { %v3393_v31 = vsel %vm3377_vm6, %v3369_v17, %v3385_v23  ;;  %v3394_v32 = vsel %vm3378_vm7, %v3370_v44, %v3386_v24  ;;  %v3823_v34 = vpack.c.bf16 %v3388_v6, %v3387_v3  ;;  %v3828_v15 = vpack.c.bf16 %v3390_v14, %v3389_v27 }
 0x22d   : > { %v3833_v36 = vpack.c.bf16 %v3392_v29, %v3391_v28  ;;  %v3838_v61 = vpack.c.bf16 %v3394_v32, %v3393_v31 }
 0x22e   : > { %3824 = vst [vmem:[%s224_s19] sm:$0xff] %v3823_v34   ;;  %3840 = vst [vmem:[%s224_s19 + $0x8] sm:$0xff] %v3828_v15  }
 0x22f   : > { %3841 = vst [vmem:[%s224_s19 + $0x10] sm:$0xff] %v3833_v36   ;;  %3842 = vst [vmem:[%s224_s19 + $0x18] sm:$0xff] %v3838_v61  }
 0x230 PF: > { %s15_s18 = sadd.s32 1, %s4740_s18  }
 0x231   : > { %p12_p4 = scmp.ge.s32.totalorder %s15_s18, 4  }
 0x233   :  { %14 = sbr.rel (!%p12_p4) target bundleno = 1 (0x1), region = 70 }

// kernel: dgwgan_forward.5
= control target key start
LH: loop header
LB: loop body
LE: loop exit
PB: predicated region body
PF: predicated region fallthrough
CT: control target
= control target key end

     0   :  { %s3473_s21 = smov 0   ;;  %s4140_s0 = inlined_call_operand.vmem [shape: bf16[2,16,3200], index: 0, kind: input, shape index: {}]   ;;  %s4141_s1 = inlined_call_operand.vmem [shape: bf16[3200,128], index: 1, kind: input, shape index: {}]   ;;  %s4142_s2 = inlined_call_operand.vmem [shape: f32[1,128], index: 2, kind: input, shape index: {}]   ;;  %s4143_s3 = inlined_call_operand.vmem [shape: f32[1,128], index: 3, kind: input, shape index: {}]   ;;  %s4144_s4 = inlined_call_operand.vmem [shape: f32[1,128], index: 4, kind: input, shape index: {}]   ;;  %s4145_s5 = inlined_call_operand.vmem [shape: f32[16,128], index: 5, kind: input, shape index: {}]   ;;  %s4146_s6 = inlined_call_operand.vmem [shape: f32[2,1,128], index: 6, kind: output, shape index: {}]  }
   0x1 LB: > { %s2649_s22 = sadd.s32 4294967295, %s3434_s21   ;;  %p2653_p0 = scmp.ge.s32.totalorder %s3434_s21, 1  ;;  %s3434_s21 = sphi %s3473_s21, %s16_s21  }
   0x2   : > { %p212_p1 = scmp.lt.s32.totalorder %s3434_s21, 3 }
   0x4   : > { %p213_p2 = pnand %p2653_p0, %p212_p1 }
   0x5   : > { %v3189_v0 = vld [vmem:[%s4141_s1 + $0x40] sm:$0xff] (!%p213_p2)   ;;  %v3193_v4 = vld [vmem:[%s4141_s1 + $0x48] sm:$0xff] (!%p213_p2)   ;;  %v3197_v8 = vld [vmem:[%s4141_s1 + $0x50] sm:$0xff] (!%p213_p2)   ;;  %p240_p3 = scmp.lt.s32.totalorder (!%p213_p2), %s2649_s22, 1  ;;  %vm3437_vm0 = vmmov (!%p213_p2), 0  }
   0x6   : > { %216 = sbr.rel (%p213_p2) target bundleno = 521 (0x209), region = 44  ;;  %v3190_v1 = vld [vmem:[%s4141_s1] sm:$0xff] (!%p213_p2)   ;;  %2885 = vmatprep.subr.bf16.mxu0 (!%p213_p2), %v3189_v0  ;;  %v3194_v5 = vld [vmem:[%s4141_s1 + $0x8] sm:$0xff] (!%p213_p2)   ;;  %v3198_v9 = vld [vmem:[%s4141_s1 + $0x10] sm:$0xff] (!%p213_p2)  }
   0x7   : > { %v3191_v2 = vld [vmem:[%s4141_s1 + $0xc0] sm:$0xff] (!%p213_p2)   ;;  %2886 = vmatpush3.bf16.msra.mxu0 (!%p213_p2), %v3190_v1  ;;  %v3195_v6 = vld [vmem:[%s4141_s1 + $0xc8] sm:$0xff] (!%p213_p2)   ;;  %v3199_v10 = vld [vmem:[%s4141_s1 + $0xd0] sm:$0xff] (!%p213_p2)  }
   0x8   : > { %v3192_v3 = vld [vmem:[%s4141_s1 + $0x80] sm:$0xff] (!%p213_p2)   ;;  %2907 = vmatprep.subr.bf16.mxu1 (!%p213_p2), %v3191_v2  ;;  %2887 = vmatprep.subr.bf16.mxu0 (!%p213_p2), %v3193_v4  ;;  %v3196_v7 = vld [vmem:[%s4141_s1 + $0x88] sm:$0xff] (!%p213_p2)   ;;  %v3200_v11 = vld [vmem:[%s4141_s1 + $0x90] sm:$0xff] (!%p213_p2)  }
   0x9   : > { %2908 = vmatpush3.bf16.msra.mxu1 (!%p213_p2), %v3192_v3  ;;  %v3201_v12 = vld [vmem:[%s4141_s1 + $0x58] sm:$0xff] (!%p213_p2)   ;;  %v3205_v16 = vld [vmem:[%s4141_s1 + $0x60] sm:$0xff] (!%p213_p2)   ;;  %v3209_v20 = vld [vmem:[%s4141_s1 + $0x68] sm:$0xff] (!%p213_p2)  }
   0xa   : > { %2909 = vmatprep.subr.bf16.mxu1 (!%p213_p2), %v3195_v6  ;;  %v3202_v13 = vld [vmem:[%s4141_s1 + $0x18] sm:$0xff] (!%p213_p2)   ;;  %v3206_v17 = vld [vmem:[%s4141_s1 + $0x20] sm:$0xff] (!%p213_p2)   ;;  %v3210_v21 = vld [vmem:[%s4141_s1 + $0x28] sm:$0xff] (!%p213_p2)  }
   0xb   : > { %2888 = vmatpush3.bf16.msra.mxu0 (!%p213_p2), %v3194_v5  ;;  %v3203_v14 = vld [vmem:[%s4141_s1 + $0xd8] sm:$0xff] (!%p213_p2)   ;;  %v3207_v18 = vld [vmem:[%s4141_s1 + $0xe0] sm:$0xff] (!%p213_p2)   ;;  %v3211_v22 = vld [vmem:[%s4141_s1 + $0xe8] sm:$0xff] (!%p213_p2)  }
   0xc   : > { %2889 = vmatprep.subr.bf16.mxu0 (!%p213_p2), %v3197_v8  ;;  %v3204_v15 = vld [vmem:[%s4141_s1 + $0x98] sm:$0xff] (!%p213_p2)   ;;  %v3208_v19 = vld [vmem:[%s4141_s1 + $0xa0] sm:$0xff] (!%p213_p2)   ;;  %v3212_v23 = vld [vmem:[%s4141_s1 + $0xa8] sm:$0xff] (!%p213_p2)  }
   0xd   : > { %2910 = vmatpush3.bf16.msra.mxu1 %v3196_v7  ;;  %s4148_s22 = smov (!%p240_p3, %s2649_s22), 1  ;;  %v3213_v24 = vld [vmem:[%s4141_s1 + $0x70] sm:$0xff]   ;;  %v3217_v28 = vld [vmem:[%s4141_s1 + $0x78] sm:$0xff]   ;;  %v3224_v34 = vld [vmem:[%s4141_s1 + $0x140] sm:$0xff]  }
   0xe   : > { %2911 = vmatprep.subr.bf16.mxu1 %v3199_v10  ;;  %s3178_s29 = smul.u32 200, %s4148_s22  ;;  %v3214_v25 = vld [vmem:[%s4141_s1 + $0x30] sm:$0xff]   ;;  %v3218_v29 = vld [vmem:[%s4141_s1 + $0x38] sm:$0xff]   ;;  %v3228_v37 = vld [vmem:[%s4141_s1 + $0x100] sm:$0xff]   ;;  %s247_s12 = scalar_lea.vmem %s4146_s6, %s4148_s22 }
   0xf   : > { %2890 = vmatpush3.bf16.msra.mxu0 %v3198_v9  ;;  %v3215_v26 = vld [vmem:[%s4141_s1 + $0xf0] sm:$0xff]   ;;  %v3219_v30 = vld [vmem:[%s4141_s1 + $0xf8] sm:$0xff]   ;;  %v3229_v38 = vld [vmem:[%s4141_s1 + $0x1c0] sm:$0xff]  }
  0x10   : > { %2891 = vmatprep.subr.bf16.mxu0 %v3201_v12  ;;  %v3216_v27 = vld [vmem:[%s4141_s1 + $0xb0] sm:$0xff]   ;;  %s3578_s16 = scalar_lea.vmem %s4140_s0, %s3178_s29  ;;  %v3223_v33 = vld [vmem:[%s4141_s1 + $0xb8] sm:$0xff]   ;;  %v3230_v39 = vld [vmem:[%s4141_s1 + $0x180] sm:$0xff]  }
  0x11   : > { %2912 = vmatpush3.bf16.msra.mxu1 %v3200_v11  ;;  %v3220_v31 = vld [vmem:[%s3578_s16] ss:$100 sps:$4 sm:$0xff]   ;;  %v3225_v35 = vld [vmem:[%s3578_s16 + $0x8] ss:$100 sps:$4 sm:$0xff]   ;;  %v3235_v44 = vld [vmem:[%s4141_s1 + $0x150] sm:$0xff]  }
  0x12   : > { %2913 = vmatprep.subr.bf16.mxu1 %v3203_v14  ;;  %v3222_v32 = vld [vmem:[%s3578_s16 + $0x4] ss:$100 sps:$4 sm:$0xff]   ;;  %v3227_v36 = vld [vmem:[%s3578_s16 + $0xc] ss:$100 sps:$4 sm:$0xff]   ;;  %v3239_v48 = vld [vmem:[%s4141_s1 + $0x158] sm:$0xff]  }
  0x13   : > { %2892 = vmatpush3.bf16.msra.mxu0 %v3202_v13  ;;  %2040 = vmatprep.mubr.bf16.mxu0 %v3222_v32  ;;  %v3231_v40 = vld [vmem:[%s4141_s1 + $0x148] sm:$0xff]   ;;  %v3236_v45 = vld [vmem:[%s4141_s1 + $0x110] sm:$0xff]   ;;  %v3240_v49 = vld [vmem:[%s4141_s1 + $0x118] sm:$0xff]  }
  0x14   : > { %2893 = vmatprep.subr.bf16.mxu0 %v3205_v16  ;;  %2081 = vmatprep.mubr.bf16.mxu1 %v3227_v36  ;;  %v3232_v41 = vld [vmem:[%s4141_s1 + $0x108] sm:$0xff]   ;;  %v3237_v46 = vld [vmem:[%s4141_s1 + $0x1d0] sm:$0xff]   ;;  %v3241_v50 = vld [vmem:[%s4141_s1 + $0x1d8] sm:$0xff]  }
  0x15   : > { %2914 = vmatpush3.bf16.msra.mxu1 %v3204_v15  ;;  %v3233_v42 = vld [vmem:[%s4141_s1 + $0x1c8] sm:$0xff]   ;;  %v3238_v47 = vld [vmem:[%s4141_s1 + $0x190] sm:$0xff]   ;;  %v3242_v51 = vld [vmem:[%s4141_s1 + $0x198] sm:$0xff]  }
  0x16   : > { %2915 = vmatprep.subr.bf16.mxu1 %v3207_v18  ;;  %v3234_v43 = vld [vmem:[%s4141_s1 + $0x188] sm:$0xff]   ;;  %v3243_v52 = vld [vmem:[%s4141_s1 + $0x160] sm:$0xff]   ;;  %v3251_v60 = vld [vmem:[%s4141_s1 + $0x170] sm:$0xff]  }
  0x17   : > { %2894 = vmatpush3.bf16.msra.mxu0 %v3206_v17  ;;  %v3244_v53 = vld [vmem:[%s4141_s1 + $0x120] sm:$0xff]   ;;  %v3247_v56 = vld [vmem:[%s4141_s1 + $0x168] sm:$0xff]   ;;  %v3252_v61 = vld [vmem:[%s4141_s1 + $0x130] sm:$0xff]  }
  0x18   : > { %2895 = vmatprep.subr.bf16.mxu0 %v3209_v20  ;;  %v3245_v54 = vld [vmem:[%s4141_s1 + $0x1e0] sm:$0xff]   ;;  %v3248_v57 = vld [vmem:[%s4141_s1 + $0x128] sm:$0xff]   ;;  %v3253_v62 = vld [vmem:[%s4141_s1 + $0x1f0] sm:$0xff]  }
  0x19   : > { %2916 = vmatpush3.bf16.msra.mxu1 %v3208_v19  ;;  %v3246_v55 = vld [vmem:[%s4141_s1 + $0x1a0] sm:$0xff]   ;;  %v3249_v58 = vld [vmem:[%s4141_s1 + $0x1e8] sm:$0xff]   ;;  %v3254_v63 = vld [vmem:[%s4141_s1 + $0x1b0] sm:$0xff]  }
  0x1a   : > { %2917 = vmatprep.subr.bf16.mxu1 %v3211_v22  ;;  %v3250_v59 = vld [vmem:[%s4141_s1 + $0x1a8] sm:$0xff]   ;;  %v3255_v0 = vld [vmem:[%s4141_s1 + $0x178] sm:$0xff]   ;;  %v3258_v3 = vld [vmem:[%s3578_s16 + $0x10] ss:$100 sps:$4 sm:$0xff]  }
  0x1b   : > { %2896 = vmatpush3.bf16.msra.mxu0 %v3210_v21  ;;  %v3256_v1 = vld [vmem:[%s4141_s1 + $0x138] sm:$0xff]   ;;  %v3262_v6 = vld [vmem:[%s4141_s1 + $0x240] sm:$0xff]   ;;  %v3269_v12 = vld [vmem:[%s4141_s1 + $0x248] sm:$0xff]  }
  0x1c   : > { %2897 = vmatprep.subr.bf16.mxu0 %v3213_v24  ;;  %v3257_v2 = vld [vmem:[%s4141_s1 + $0x1f8] sm:$0xff]   ;;  %v3266_v9 = vld [vmem:[%s4141_s1 + $0x200] sm:$0xff]   ;;  %v3270_v13 = vld [vmem:[%s4141_s1 + $0x208] sm:$0xff]  }
  0x1d   : > { %2918 = vmatpush3.bf16.msra.mxu1 %v3212_v23  ;;  %v3260_v4 = vld [vmem:[%s3578_s16 + $0x14] ss:$100 sps:$4 sm:$0xff]   ;;  %v3265_v8 = vld [vmem:[%s3578_s16 + $0x1c] ss:$100 sps:$4 sm:$0xff]   ;;  %v3271_v14 = vld [vmem:[%s4141_s1 + $0x2c8] sm:$0xff]  }
  0x1e   : > { %2919 = vmatprep.subr.bf16.mxu1 %v3215_v26  ;;  %v3261_v5 = vld [vmem:[%s4141_s1 + $0x1b8] sm:$0xff]   ;;  %v3267_v10 = vld [vmem:[%s4141_s1 + $0x2c0] sm:$0xff]   ;;  %v3272_v15 = vld [vmem:[%s4141_s1 + $0x288] sm:$0xff]  }
  0x1f   : > { %2898 = vmatpush3.bf16.msra.mxu0 %v3214_v25  ;;  %v3263_v7 = vld [vmem:[%s3578_s16 + $0x18] ss:$100 sps:$4 sm:$0xff]   ;;  %v3268_v11 = vld [vmem:[%s4141_s1 + $0x280] sm:$0xff]   ;;  %v3273_v16 = vld [vmem:[%s4141_s1 + $0x250] sm:$0xff]  }
  0x20   : > { %2899 = vmatprep.subr.bf16.mxu0 %v3217_v28  ;;  %v3274_v17 = vld [vmem:[%s4141_s1 + $0x210] sm:$0xff]   ;;  %v3277_v20 = vld [vmem:[%s4141_s1 + $0x258] sm:$0xff]   ;;  %v3281_v24 = vld [vmem:[%s4141_s1 + $0x260] sm:$0xff]  }
  0x21   : > { %2920 = vmatpush3.bf16.msra.mxu1 %v3216_v27  ;;  %v3275_v18 = vld [vmem:[%s4141_s1 + $0x2d0] sm:$0xff]   ;;  %v3278_v21 = vld [vmem:[%s4141_s1 + $0x218] sm:$0xff]   ;;  %v3282_v25 = vld [vmem:[%s4141_s1 + $0x220] sm:$0xff]  }
  0x22   : > { %2921 = vmatprep.subr.bf16.mxu1 %v3219_v30  ;;  %v3276_v19 = vld [vmem:[%s4141_s1 + $0x290] sm:$0xff]   ;;  %v3279_v22 = vld [vmem:[%s4141_s1 + $0x2d8] sm:$0xff]   ;;  %v3283_v26 = vld [vmem:[%s4141_s1 + $0x2e0] sm:$0xff]  }
  0x23   : > { %2900 = vmatpush3.bf16.msra.mxu0 %v3218_v29  ;;  %v3280_v23 = vld [vmem:[%s4141_s1 + $0x298] sm:$0xff]   ;;  %v3284_v27 = vld [vmem:[%s4141_s1 + $0x2a0] sm:$0xff]   ;;  %v3285_v28 = vld [vmem:[%s4141_s1 + $0x268] sm:$0xff]  }
  0x24   : > { %2929 = vmatprep.subr.bf16.mxu0 %v3224_v34  ;;  %v3286_v29 = vld [vmem:[%s4141_s1 + $0x228] sm:$0xff]   ;;  %v3289_v32 = vld [vmem:[%s4141_s1 + $0x270] sm:$0xff]   ;;  %v3293_v36 = vld [vmem:[%s4141_s1 + $0x278] sm:$0xff]  }
  0x25   : > { %2922 = vmatpush3.bf16.msra.mxu1 %v3223_v33  ;;  %v3287_v30 = vld [vmem:[%s4141_s1 + $0x2e8] sm:$0xff]   ;;  %v3290_v33 = vld [vmem:[%s4141_s1 + $0x230] sm:$0xff]  }
  0x26   : > { %2041 = vmatmul.mubr.bf16.vlgmr.msra.gmra.mrb[0].mxu0 %v3220_v31  ;;  %2951 = vmatprep.subr.bf16.mxu1 %v3229_v38  ;;  %v3288_v31 = vld [vmem:[%s4141_s1 + $0x2a8] sm:$0xff]   ;;  %v3291_v34 = vld [vmem:[%s4141_s1 + $0x2f0] sm:$0xff]   ;;  %v3295_v38 = vld [vmem:[%s4141_s1 + $0x2f8] sm:$0xff]  }
  0x27   : > { %2930 = vmatpush3.bf16.msra.mxu0 %v3228_v37  ;;  %2122 = vmatprep.mubr.bf16.mxu0 %v3260_v4  ;;  %v3294_v37 = vld [vmem:[%s4141_s1 + $0x238] sm:$0xff]   ;;  %v3327_v4 = vld [vmem:[%s4141_s1 + $0x370] sm:$0xff]  }
  0x28   : > { %2082 = vmatmul.mubr.bf16.vlgmr.msra.gmra.mrb[0].mxu1 %v3225_v35  ;;  %2931 = vmatprep.subr.bf16.mxu0 %v3231_v40  ;;  %v3292_v35 = vld [vmem:[%s4141_s1 + $0x2b0] sm:$0xff]   ;;  %v3298_v40 = vld [vmem:[%s3578_s16 + $0x24] ss:$100 sps:$4 sm:$0xff]  }
  0x29   : > { %2952 = vmatpush3.bf16.msra.mxu1 %v3230_v39  ;;  %2163 = vmatprep.mubr.bf16.mxu1 %v3265_v8  ;;  %v3296_v39 = vld [vmem:[%s3578_s16 + $0x20] ss:$100 sps:$4 sm:$0xff]   ;;  %v3331_v8 = vld [vmem:[%s4141_s1 + $0x378] sm:$0xff]  }
  0x2a   : > { %2953 = vmatprep.subr.bf16.mxu1 %v3233_v42  ;;  %v3300_v42 = vld [vmem:[%s4141_s1 + $0x340] sm:$0xff]  }
  0x2b   : > { %2932 = vmatpush3.bf16.msra.mxu0 %v3232_v41  ;;  %v3299_v41 = vld [vmem:[%s4141_s1 + $0x2b8] sm:$0xff]  }
  0x2c   : > { %2933 = vmatprep.subr.bf16.mxu0 %v3235_v44  ;;  %v3303_v44 = vld [vmem:[%s3578_s16 + $0x2c] ss:$100 sps:$4 sm:$0xff]  }
  0x2d   : > { %2954 = vmatpush3.bf16.msra.mxu1 %v3234_v43  ;;  %v3301_v43 = vld [vmem:[%s3578_s16 + $0x28] ss:$100 sps:$4 sm:$0xff]  }
  0x2e   : > { %2955 = vmatprep.subr.bf16.mxu1 %v3237_v46  ;;  %v3305_v46 = vld [vmem:[%s4141_s1 + $0x3c0] sm:$0xff]  }
  0x2f   : > { %2934 = vmatpush3.bf16.msra.mxu0 %v3236_v45  ;;  %v3304_v45 = vld [vmem:[%s4141_s1 + $0x300] sm:$0xff]  }
  0x30   : > { %2935 = vmatprep.subr.bf16.mxu0 %v3239_v48  ;;  %v3307_v48 = vld [vmem:[%s4141_s1 + $0x348] sm:$0xff]  }
  0x31   : > { %2956 = vmatpush3.bf16.msra.mxu1 %v3238_v47  ;;  %v3306_v47 = vld [vmem:[%s4141_s1 + $0x380] sm:$0xff]  }
  0x32   : > { %2957 = vmatprep.subr.bf16.mxu1 %v3241_v50  ;;  %v3309_v50 = vld [vmem:[%s4141_s1 + $0x3c8] sm:$0xff]  }
  0x33   : > { %2936 = vmatpush3.bf16.msra.mxu0 %v3240_v49  ;;  %v3308_v49 = vld [vmem:[%s4141_s1 + $0x308] sm:$0xff]  }
  0x34   : > { %2937 = vmatprep.subr.bf16.mxu0 %v3243_v52  ;;  %v3311_v52 = vld [vmem:[%s4141_s1 + $0x350] sm:$0xff]  }
  0x35   : > { %2958 = vmatpush3.bf16.msra.mxu1 %v3242_v51  ;;  %v3310_v51 = vld [vmem:[%s4141_s1 + $0x388] sm:$0xff]  }
  0x36   : > { %2959 = vmatprep.subr.bf16.mxu1 %v3245_v54  ;;  %v3313_v54 = vld [vmem:[%s4141_s1 + $0x3d0] sm:$0xff]  }
  0x37   : > { %2938 = vmatpush3.bf16.msra.mxu0 %v3244_v53  ;;  %v3312_v53 = vld [vmem:[%s4141_s1 + $0x310] sm:$0xff]  }
  0x38   : > { %2939 = vmatprep.subr.bf16.mxu0 %v3247_v56  ;;  %v3315_v56 = vld [vmem:[%s4141_s1 + $0x358] sm:$0xff]  }
  0x39   : > { %2960 = vmatpush3.bf16.msra.mxu1 %v3246_v55  ;;  %v3314_v55 = vld [vmem:[%s4141_s1 + $0x390] sm:$0xff]  }
  0x3a   : > { %2961 = vmatprep.subr.bf16.mxu1 %v3249_v58  ;;  %v3317_v58 = vld [vmem:[%s4141_s1 + $0x3d8] sm:$0xff]  }
  0x3b   : > { %2940 = vmatpush3.bf16.msra.mxu0 %v3248_v57  ;;  %v3316_v57 = vld [vmem:[%s4141_s1 + $0x318] sm:$0xff]  }
  0x3c   : > { %2941 = vmatprep.subr.bf16.mxu0 %v3251_v60  ;;  %v3319_v60 = vld [vmem:[%s4141_s1 + $0x360] sm:$0xff]  }
  0x3d   : > { %2962 = vmatpush3.bf16.msra.mxu1 %v3250_v59  ;;  %v3318_v59 = vld [vmem:[%s4141_s1 + $0x398] sm:$0xff]  }
  0x3e   : > { %2963 = vmatprep.subr.bf16.mxu1 %v3253_v62  ;;  %v3321_v62 = vld [vmem:[%s4141_s1 + $0x3e0] sm:$0xff]  }
  0x3f   : > { %2942 = vmatpush3.bf16.msra.mxu0 %v3252_v61  ;;  %v3320_v61 = vld [vmem:[%s4141_s1 + $0x320] sm:$0xff]  }
  0x40   : > { %2943 = vmatprep.subr.bf16.mxu0 %v3255_v0  ;;  %v3323_v0 = vld [vmem:[%s4141_s1 + $0x368] sm:$0xff]  }
  0x41   : > { %2964 = vmatpush3.bf16.msra.mxu1 %v3254_v63  ;;  %v3322_v63 = vld [vmem:[%s4141_s1 + $0x3a0] sm:$0xff]  }
  0x42   : > { %2965 = vmatprep.subr.bf16.mxu1 %v3257_v2  ;;  %v3325_v2 = vld [vmem:[%s4141_s1 + $0x3e8] sm:$0xff]  }
  0x43   : > { %2944 = vmatpush3.bf16.msra.mxu0 %v3256_v1  ;;  %v3324_v1 = vld [vmem:[%s4141_s1 + $0x328] sm:$0xff]  }
  0x44   : > { %2973 = vmatprep.subr.bf16.mxu0 %v3262_v6  ;;  %v3329_v6 = vld [vmem:[%s4141_s1 + $0x3f0] sm:$0xff]  }
  0x45   : > { %2966 = vmatpush3.bf16.msra.mxu1 %v3261_v5  ;;  %v3328_v5 = vld [vmem:[%s4141_s1 + $0x330] sm:$0xff]  }
  0x46   : > { %2123 = vmatmul.mubr.bf16.vlgmr.msra.gmra.mrb[4].mxu0 %v3258_v3  ;;  %2995 = vmatprep.subr.bf16.mxu1 %v3267_v10  ;;  %v3326_v3 = vld [vmem:[%s4141_s1 + $0x3a8] sm:$0xff]   ;;  %v3333_v10 = vld [vmem:[%s4141_s1 + $0x3f8] sm:$0xff]  }
  0x47   : > { %2974 = vmatpush3.bf16.msra.mxu0 %v3266_v9  ;;  %2204 = vmatprep.mubr.bf16.mxu0 %v3298_v40  ;;  %v3332_v9 = vld [vmem:[%s4141_s1 + $0x338] sm:$0xff]   ;;  %v3365_v40 = vld [vmem:[%s4141_s1 + $0x470] sm:$0xff]  }
  0x48   : > { %2164 = vmatmul.mubr.bf16.vlgmr.msra.gmra.mrb[4].mxu1 %v3263_v7  ;;  %2975 = vmatprep.subr.bf16.mxu0 %v3269_v12  ;;  %v3330_v7 = vld [vmem:[%s4141_s1 + $0x3b0] sm:$0xff]  }
  0x49   : > { %2996 = vmatpush3.bf16.msra.mxu1 %v3268_v11  ;;  %2245 = vmatprep.mubr.bf16.mxu1 %v3303_v44  ;;  %v3334_v11 = vld [vmem:[%s3578_s16 + $0x30] ss:$100 sps:$4 sm:$0xff]   ;;  %v3369_v44 = vld [vmem:[%s4141_s1 + $0x478] sm:$0xff]  }
  0x4a   : > { %2997 = vmatprep.subr.bf16.mxu1 %v3271_v14  ;;  %v3336_v12 = vld [vmem:[%s3578_s16 + $0x34] ss:$100 sps:$4 sm:$0xff]   ;;  %v3338_v14 = vld [vmem:[%s4141_s1 + $0x440] sm:$0xff]  }
  0x4b   : > { %2976 = vmatpush3.bf16.msra.mxu0 %v3270_v13  ;;  %v3337_v13 = vld [vmem:[%s4141_s1 + $0x3b8] sm:$0xff]  }
  0x4c   : > { %2977 = vmatprep.subr.bf16.mxu0 %v3273_v16  ;;  %v3341_v16 = vld [vmem:[%s3578_s16 + $0x3c] ss:$100 sps:$4 sm:$0xff]  }
  0x4d   : > { %2998 = vmatpush3.bf16.msra.mxu1 %v3272_v15  ;;  %v3339_v15 = vld [vmem:[%s3578_s16 + $0x38] ss:$100 sps:$4 sm:$0xff]  }
  0x4e   : > { %2999 = vmatprep.subr.bf16.mxu1 %v3275_v18  ;;  %v3343_v18 = vld [vmem:[%s4141_s1 + $0x4c0] sm:$0xff]  }
  0x4f   : > { %2978 = vmatpush3.bf16.msra.mxu0 %v3274_v17  ;;  %v3342_v17 = vld [vmem:[%s4141_s1 + $0x400] sm:$0xff]  }
  0x50   : > { %2979 = vmatprep.subr.bf16.mxu0 %v3277_v20  ;;  %v3345_v20 = vld [vmem:[%s4141_s1 + $0x448] sm:$0xff]  }
  0x51   : > { %3000 = vmatpush3.bf16.msra.mxu1 %v3276_v19  ;;  %v3344_v19 = vld [vmem:[%s4141_s1 + $0x480] sm:$0xff]  }
  0x52   : > { %3001 = vmatprep.subr.bf16.mxu1 %v3279_v22  ;;  %v3347_v22 = vld [vmem:[%s4141_s1 + $0x4c8] sm:$0xff]  }
  0x53   : > { %2980 = vmatpush3.bf16.msra.mxu0 %v3278_v21  ;;  %v3346_v21 = vld [vmem:[%s4141_s1 + $0x408] sm:$0xff]  }
  0x54   : > { %2981 = vmatprep.subr.bf16.mxu0 %v3281_v24  ;;  %v3349_v24 = vld [vmem:[%s4141_s1 + $0x450] sm:$0xff]  }
  0x55   : > { %3002 = vmatpush3.bf16.msra.mxu1 %v3280_v23  ;;  %v3348_v23 = vld [vmem:[%s4141_s1 + $0x488] sm:$0xff]  }
  0x56   : > { %3003 = vmatprep.subr.bf16.mxu1 %v3283_v26  ;;  %v3351_v26 = vld [vmem:[%s4141_s1 + $0x4d0] sm:$0xff]  }
  0x57   : > { %2982 = vmatpush3.bf16.msra.mxu0 %v3282_v25  ;;  %v3350_v25 = vld [vmem:[%s4141_s1 + $0x410] sm:$0xff]  }
  0x58   : > { %2983 = vmatprep.subr.bf16.mxu0 %v3285_v28  ;;  %v3353_v28 = vld [vmem:[%s4141_s1 + $0x458] sm:$0xff]  }
  0x59   : > { %3004 = vmatpush3.bf16.msra.mxu1 %v3284_v27  ;;  %v3352_v27 = vld [vmem:[%s4141_s1 + $0x490] sm:$0xff]  }
  0x5a   : > { %3005 = vmatprep.subr.bf16.mxu1 %v3287_v30  ;;  %v3355_v30 = vld [vmem:[%s4141_s1 + $0x4d8] sm:$0xff]  }
  0x5b   : > { %2984 = vmatpush3.bf16.msra.mxu0 %v3286_v29  ;;  %v3354_v29 = vld [vmem:[%s4141_s1 + $0x418] sm:$0xff]  }
  0x5c   : > { %2985 = vmatprep.subr.bf16.mxu0 %v3289_v32  ;;  %v3357_v32 = vld [vmem:[%s4141_s1 + $0x460] sm:$0xff]  }
  0x5d   : > { %3006 = vmatpush3.bf16.msra.mxu1 %v3288_v31  ;;  %v3356_v31 = vld [vmem:[%s4141_s1 + $0x498] sm:$0xff]  }
  0x5e   : > { %3007 = vmatprep.subr.bf16.mxu1 %v3291_v34  ;;  %v3359_v34 = vld [vmem:[%s4141_s1 + $0x4e0] sm:$0xff]  }
  0x5f   : > { %2986 = vmatpush3.bf16.msra.mxu0 %v3290_v33  ;;  %v3358_v33 = vld [vmem:[%s4141_s1 + $0x420] sm:$0xff]  }
  0x60   : > { %2987 = vmatprep.subr.bf16.mxu0 %v3293_v36  ;;  %v3361_v36 = vld [vmem:[%s4141_s1 + $0x468] sm:$0xff]  }
  0x61   : > { %3008 = vmatpush3.bf16.msra.mxu1 %v3292_v35  ;;  %v3360_v35 = vld [vmem:[%s4141_s1 + $0x4a0] sm:$0xff]  }
  0x62   : > { %3009 = vmatprep.subr.bf16.mxu1 %v3295_v38  ;;  %v3363_v38 = vld [vmem:[%s4141_s1 + $0x4e8] sm:$0xff]  }
  0x63   : > { %2988 = vmatpush3.bf16.msra.mxu0 %v3294_v37  ;;  %v3362_v37 = vld [vmem:[%s4141_s1 + $0x428] sm:$0xff]  }
  0x64   : > { %3017 = vmatprep.subr.bf16.mxu0 %v3300_v42  ;;  %v3367_v42 = vld [vmem:[%s4141_s1 + $0x4f0] sm:$0xff]  }
  0x65   : > { %3010 = vmatpush3.bf16.msra.mxu1 %v3299_v41  ;;  %v3366_v41 = vld [vmem:[%s4141_s1 + $0x430] sm:$0xff]  }
  0x66   : > { %2205 = vmatmul.mubr.bf16.vlgmr.msra.gmra.mrb[8].mxu0 %v3296_v39  ;;  %3039 = vmatprep.subr.bf16.mxu1 %v3305_v46  ;;  %v3364_v39 = vld [vmem:[%s4141_s1 + $0x4a8] sm:$0xff]   ;;  %v3371_v46 = vld [vmem:[%s4141_s1 + $0x4f8] sm:$0xff]  }
  0x67   : > { %3018 = vmatpush3.bf16.msra.mxu0 %v3304_v45  ;;  %2286 = vmatprep.mubr.bf16.mxu0 %v3336_v12  ;;  %v3370_v45 = vld [vmem:[%s4141_s1 + $0x438] sm:$0xff]   ;;  %v3403_v12 = vld [vmem:[%s4141_s1 + $0x570] sm:$0xff]  }
  0x68   : > { %2246 = vmatmul.mubr.bf16.vlgmr.msra.gmra.mrb[8].mxu1 %v3301_v43  ;;  %3019 = vmatprep.subr.bf16.mxu0 %v3307_v48  ;;  %v3368_v43 = vld [vmem:[%s4141_s1 + $0x4b0] sm:$0xff]   ;;  %v3374_v48 = vld [vmem:[%s3578_s16 + $0x44] ss:$100 sps:$4 sm:$0xff]  }
  0x69   : > { %3040 = vmatpush3.bf16.msra.mxu1 %v3306_v47  ;;  %2327 = vmatprep.mubr.bf16.mxu1 %v3341_v16  ;;  %v3372_v47 = vld [vmem:[%s3578_s16 + $0x40] ss:$100 sps:$4 sm:$0xff]   ;;  %v3407_v16 = vld [vmem:[%s4141_s1 + $0x578] sm:$0xff]  }
  0x6a   : > { %3041 = vmatprep.subr.bf16.mxu1 %v3309_v50  ;;  %v3376_v50 = vld [vmem:[%s4141_s1 + $0x540] sm:$0xff]  }
  0x6b   : > { %3020 = vmatpush3.bf16.msra.mxu0 %v3308_v49  ;;  %v3375_v49 = vld [vmem:[%s4141_s1 + $0x4b8] sm:$0xff]  }
  0x6c   : > { %3021 = vmatprep.subr.bf16.mxu0 %v3311_v52  ;;  %v3379_v52 = vld [vmem:[%s3578_s16 + $0x4c] ss:$100 sps:$4 sm:$0xff]  }
  0x6d   : > { %3042 = vmatpush3.bf16.msra.mxu1 %v3310_v51  ;;  %v3377_v51 = vld [vmem:[%s3578_s16 + $0x48] ss:$100 sps:$4 sm:$0xff]  }
  0x6e   : > { %3043 = vmatprep.subr.bf16.mxu1 %v3313_v54  ;;  %v3381_v54 = vld [vmem:[%s4141_s1 + $0x5c0] sm:$0xff]  }
  0x6f   : > { %3022 = vmatpush3.bf16.msra.mxu0 %v3312_v53  ;;  %v3380_v53 = vld [vmem:[%s4141_s1 + $0x500] sm:$0xff]  }
  0x70   : > { %3023 = vmatprep.subr.bf16.mxu0 %v3315_v56  ;;  %v3383_v56 = vld [vmem:[%s4141_s1 + $0x548] sm:$0xff]  }
  0x71   : > { %3044 = vmatpush3.bf16.msra.mxu1 %v3314_v55  ;;  %v3382_v55 = vld [vmem:[%s4141_s1 + $0x580] sm:$0xff]  }
  0x72   : > { %3045 = vmatprep.subr.bf16.mxu1 %v3317_v58  ;;  %v3385_v58 = vld [vmem:[%s4141_s1 + $0x5c8] sm:$0xff]  }
  0x73   : > { %3024 = vmatpush3.bf16.msra.mxu0 %v3316_v57  ;;  %v3384_v57 = vld [vmem:[%s4141_s1 + $0x508] sm:$0xff]  }
  0x74   : > { %3025 = vmatprep.subr.bf16.mxu0 %v3319_v60  ;;  %v3387_v60 = vld [vmem:[%s4141_s1 + $0x550] sm:$0xff]  }
  0x75   : > { %3046 = vmatpush3.bf16.msra.mxu1 %v3318_v59  ;;  %v3386_v59 = vld [vmem:[%s4141_s1 + $0x588] sm:$0xff]  }
  0x76   : > { %3047 = vmatprep.subr.bf16.mxu1 %v3321_v62  ;;  %v3389_v62 = vld [vmem:[%s4141_s1 + $0x5d0] sm:$0xff]  }
  0x77   : > { %3026 = vmatpush3.bf16.msra.mxu0 %v3320_v61  ;;  %v3388_v61 = vld [vmem:[%s4141_s1 + $0x510] sm:$0xff]  }
  0x78   : > { %3027 = vmatprep.subr.bf16.mxu0 %v3323_v0  ;;  %v3391_v0 = vld [vmem:[%s4141_s1 + $0x558] sm:$0xff]  }
  0x79   : > { %3048 = vmatpush3.bf16.msra.mxu1 %v3322_v63  ;;  %v3390_v63 = vld [vmem:[%s4141_s1 + $0x590] sm:$0xff]  }
  0x7a   : > { %3049 = vmatprep.subr.bf16.mxu1 %v3325_v2  ;;  %v3393_v2 = vld [vmem:[%s4141_s1 + $0x5d8] sm:$0xff]  }
  0x7b   : > { %3028 = vmatpush3.bf16.msra.mxu0 %v3324_v1  ;;  %v3392_v1 = vld [vmem:[%s4141_s1 + $0x518] sm:$0xff]  }
  0x7c   : > { %3029 = vmatprep.subr.bf16.mxu0 %v3327_v4  ;;  %v3395_v4 = vld [vmem:[%s4141_s1 + $0x560] sm:$0xff]  }
  0x7d   : > { %3050 = vmatpush3.bf16.msra.mxu1 %v3326_v3  ;;  %v3394_v3 = vld [vmem:[%s4141_s1 + $0x598] sm:$0xff]  }
  0x7e   : > { %3051 = vmatprep.subr.bf16.mxu1 %v3329_v6  ;;  %v3397_v6 = vld [vmem:[%s4141_s1 + $0x5e0] sm:$0xff]  }
  0x7f   : > { %3030 = vmatpush3.bf16.msra.mxu0 %v3328_v5  ;;  %v3396_v5 = vld [vmem:[%s4141_s1 + $0x520] sm:$0xff]  }
  0x80   : > { %3031 = vmatprep.subr.bf16.mxu0 %v3331_v8  ;;  %v3399_v8 = vld [vmem:[%s4141_s1 + $0x568] sm:$0xff]  }
  0x81   : > { %3052 = vmatpush3.bf16.msra.mxu1 %v3330_v7  ;;  %v3398_v7 = vld [vmem:[%s4141_s1 + $0x5a0] sm:$0xff]  }
  0x82   : > { %3053 = vmatprep.subr.bf16.mxu1 %v3333_v10  ;;  %v3401_v10 = vld [vmem:[%s4141_s1 + $0x5e8] sm:$0xff]  }
  0x83   : > { %3032 = vmatpush3.bf16.msra.mxu0 %v3332_v9  ;;  %v3400_v9 = vld [vmem:[%s4141_s1 + $0x528] sm:$0xff]  }
  0x84   : > { %3061 = vmatprep.subr.bf16.mxu0 %v3338_v14  ;;  %v3405_v14 = vld [vmem:[%s4141_s1 + $0x5f0] sm:$0xff]  }
  0x85   : > { %3054 = vmatpush3.bf16.msra.mxu1 %v3337_v13  ;;  %v3404_v13 = vld [vmem:[%s4141_s1 + $0x530] sm:$0xff]  }
  0x86   : > { %2287 = vmatmul.mubr.bf16.vlgmr.msra.gmra.mrb[12].mxu0 %v3334_v11  ;;  %3083 = vmatprep.subr.bf16.mxu1 %v3343_v18  ;;  %v3402_v11 = vld [vmem:[%s4141_s1 + $0x5a8] sm:$0xff]   ;;  %v3409_v18 = vld [vmem:[%s4141_s1 + $0x5f8] sm:$0xff]  }
  0x87   : > { %3062 = vmatpush3.bf16.msra.mxu0 %v3342_v17  ;;  %2368 = vmatprep.mubr.bf16.mxu0 %v3374_v48  ;;  %v3408_v17 = vld [vmem:[%s4141_s1 + $0x538] sm:$0xff]  }
  0x88   : > { %2328 = vmatmul.mubr.bf16.vlgmr.msra.gmra.mrb[12].mxu1 %v3339_v15  ;;  %3063 = vmatprep.subr.bf16.mxu0 %v3345_v20  ;;  %v3406_v15 = vld [vmem:[%s4141_s1 + $0x5b0] sm:$0xff]  }
  0x89   : > { %3084 = vmatpush3.bf16.msra.mxu1 %v3344_v19  ;;  %2409 = vmatprep.mubr.bf16.mxu1 %v3379_v52  ;;  %v3410_v19 = vld [vmem:[%s3578_s16 + $0x50] ss:$100 sps:$4 sm:$0xff]  }
  0x8a   : > { %3085 = vmatprep.subr.bf16.mxu1 %v3347_v22  ;;  %v3412_v20 = vld [vmem:[%s3578_s16 + $0x54] ss:$100 sps:$4 sm:$0xff]   ;;  %v3436_v22 = vmov 0.0  }
  0x8b   : > { %3064 = vmatpush3.bf16.msra.mxu0 %v3346_v21  ;;  %v3413_v21 = vld [vmem:[%s4141_s1 + $0x5b8] sm:$0xff]  }
  0x8c   : > { %3065 = vmatprep.subr.bf16.mxu0 %v3349_v24  ;;  %v3416_v24 = vld [vmem:[%s3578_s16 + $0x5c] ss:$100 sps:$4 sm:$0xff]  }
  0x8d   : > { %3086 = vmatpush3.bf16.msra.mxu1 %v3348_v23  ;;  %v3414_v23 = vld [vmem:[%s3578_s16 + $0x58] ss:$100 sps:$4 sm:$0xff]  }
  0x8e   : > { %3087 = vmatprep.subr.bf16.mxu1 %v3351_v26  ;;  %v3418_v26 = vld [vmem:[%s4141_s1 + $0x608] sm:$0xff]  }
  0x8f   : > { %3066 = vmatpush3.bf16.msra.mxu0 %v3350_v25  ;;  %v3417_v25 = vld [vmem:[%s4141_s1 + $0x600] sm:$0xff]  }
  0x90   : > { %3067 = vmatprep.subr.bf16.mxu0 %v3353_v28  ;;  %v3420_v28 = vld [vmem:[%s4141_s1 + $0x618] sm:$0xff]  }
  0x91   : > { %3088 = vmatpush3.bf16.msra.mxu1 %v3352_v27  ;;  %v3419_v27 = vld [vmem:[%s4141_s1 + $0x610] sm:$0xff]  }
  0x92   : > { %3089 = vmatprep.subr.bf16.mxu1 %v3355_v30  ;;  %v3422_v30 = vld [vmem:[%s4141_s1 + $0x628] sm:$0xff]  }
  0x93   : > { %3068 = vmatpush3.bf16.msra.mxu0 %v3354_v29  ;;  %v3421_v29 = vld [vmem:[%s4141_s1 + $0x620] sm:$0xff]  }
  0x94   : > { %3069 = vmatprep.subr.bf16.mxu0 %v3357_v32  ;;  %v3424_v32 = vld [vmem:[%s4141_s1 + $0x638] sm:$0xff]  }
  0x95   : > { %3090 = vmatpush3.bf16.msra.mxu1 %v3356_v31  ;;  %v3423_v31 = vld [vmem:[%s4141_s1 + $0x630] sm:$0xff]  }
  0x96   : > { %3091 = vmatprep.subr.bf16.mxu1 %v3359_v34 }
  0x97   : > { %3070 = vmatpush3.bf16.msra.mxu0 %v3358_v33  ;;  %v3425_v33 = vld [vmem:[%s3578_s16 + $0x60] ss:$100 sps:$4 sm:$0xff]  }
  0x98   : > { %3071 = vmatprep.subr.bf16.mxu0 %v3361_v36 }
  0x99   : > { %3092 = vmatpush3.bf16.msra.mxu1 %v3360_v35  ;;  %v2655_v35 = vld [vmem:[%s4142_s2] ss:$0 sm:$0xff] }
  0x9a   : > { %3093 = vmatprep.subr.bf16.mxu1 %v3363_v38 }
  0x9b   : > { %3072 = vmatpush3.bf16.msra.mxu0 %v3362_v37 }
  0x9c   : > { %3073 = vmatprep.subr.bf16.mxu0 %v3365_v40 }
  0x9d   : > { %3094 = vmatpush3.bf16.msra.mxu1 %v3364_v39 }
  0x9e   : > { %3095 = vmatprep.subr.bf16.mxu1 %v3367_v42 }
  0x9f   : > { %3074 = vmatpush3.bf16.msra.mxu0 %v3366_v41 }
  0xa0   : > { %3075 = vmatprep.subr.bf16.mxu0 %v3369_v44 }
  0xa1   : > { %3096 = vmatpush3.bf16.msra.mxu1 %v3368_v43 }
  0xa2   : > { %3097 = vmatprep.subr.bf16.mxu1 %v3371_v46 }
  0xa3   : > { %3076 = vmatpush3.bf16.msra.mxu0 %v3370_v45 }
  0xa4   : > { %3105 = vmatprep.subr.bf16.mxu0 %v3376_v50 }
  0xa5   : > { %3098 = vmatpush3.bf16.msra.mxu1 %v3375_v49 }
  0xa6   : > { %2369 = vmatmul.mubr.bf16.vlgmr.msra.gmra.mrb[16].mxu0 %v3372_v47  ;;  %3127 = vmatprep.subr.bf16.mxu1 %v3381_v54 }
  0xa7   : > { %3106 = vmatpush3.bf16.msra.mxu0 %v3380_v53  ;;  %2450 = vmatprep.mubr.bf16.mxu0 %v3412_v20 }
  0xa8   : > { %2410 = vmatmul.mubr.bf16.vlgmr.msra.gmra.mrb[16].mxu1 %v3377_v51  ;;  %3107 = vmatprep.subr.bf16.mxu0 %v3383_v56 }
  0xa9   : > { %3128 = vmatpush3.bf16.msra.mxu1 %v3382_v55  ;;  %2491 = vmatprep.mubr.bf16.mxu1 %v3416_v24 }
  0xaa   : > { %3129 = vmatprep.subr.bf16.mxu1 %v3385_v58 }
  0xab   : > { %3108 = vmatpush3.bf16.msra.mxu0 %v3384_v57 }
  0xac   : > { %3109 = vmatprep.subr.bf16.mxu0 %v3387_v60 }
  0xad   : > { %3130 = vmatpush3.bf16.msra.mxu1 %v3386_v59 }
  0xae   : > { %3131 = vmatprep.subr.bf16.mxu1 %v3389_v62 }
  0xaf   : > { %3110 = vmatpush3.bf16.msra.mxu0 %v3388_v61 }
  0xb0   : > { %3111 = vmatprep.subr.bf16.mxu0 %v3391_v0 }
  0xb1   : > { %3132 = vmatpush3.bf16.msra.mxu1 %v3390_v63 }
  0xb2   : > { %3133 = vmatprep.subr.bf16.mxu1 %v3393_v2 }
  0xb3   : > { %3112 = vmatpush3.bf16.msra.mxu0 %v3392_v1 }
  0xb4   : > { %3113 = vmatprep.subr.bf16.mxu0 %v3395_v4 }
  0xb5   : > { %3134 = vmatpush3.bf16.msra.mxu1 %v3394_v3 }
  0xb6   : > { %3135 = vmatprep.subr.bf16.mxu1 %v3397_v6 }
  0xb7   : > { %3114 = vmatpush3.bf16.msra.mxu0 %v3396_v5 }
  0xb8   : > { %3115 = vmatprep.subr.bf16.mxu0 %v3399_v8 }
  0xb9   : > { %3136 = vmatpush3.bf16.msra.mxu1 %v3398_v7 }
  0xba   : > { %3137 = vmatprep.subr.bf16.mxu1 %v3401_v10 }
  0xbb   : > { %3116 = vmatpush3.bf16.msra.mxu0 %v3400_v9 }
  0xbc   : > { %3117 = vmatprep.subr.bf16.mxu0 %v3403_v12 }
  0xbd   : > { %3138 = vmatpush3.bf16.msra.mxu1 %v3402_v11 }
  0xbe   : > { %3139 = vmatprep.subr.bf16.mxu1 %v3405_v14 }
  0xbf   : > { %3118 = vmatpush3.bf16.msra.mxu0 %v3404_v13 }
  0xc0   : > { %3119 = vmatprep.subr.bf16.mxu0 %v3407_v16 }
  0xc1   : > { %3140 = vmatpush3.bf16.msra.mxu1 %v3406_v15 }
  0xc2   : > { %3141 = vmatprep.subr.bf16.mxu1 %v3409_v18 }
  0xc3   : > { %3120 = vmatpush3.bf16.msra.mxu0 %v3408_v17 }
  0xc4   : > { %3158 = vmatprep.subr.bf16.mxu0 %v3436_v22 }
  0xc5   : > { %3142 = vmatpush3.bf16.msra.mxu1 %v3413_v21 }
  0xc6   : > { %2451 = vmatmul.mubr.bf16.vlgmr.msra.gmra.mrb[20].mxu0 %v3410_v19 }
  0xc7   : > { %3174 = vmatprep.mubr.msk.bf16.mxu0 %vm3437_vm0, %v3436_v22  ;;  %3159 = vmatpush3.bf16.msra.mxu0 %v3417_v25 }
  0xc8   : > { %2492 = vmatmul.mubr.bf16.vlgmr.msra.gmra.mrb[20].mxu1 %v3414_v23  ;;  %3160 = vmatprep.subr.bf16.mxu0 %v3436_v22 }
  0xcb   : > { %3161 = vmatpush3.bf16.msra.mxu0 %v3418_v26 }
  0xcc   : > { %3162 = vmatprep.subr.bf16.mxu0 %v3436_v22 }
  0xcf   : > { %3163 = vmatpush3.bf16.msra.mxu0 %v3419_v27 }
  0xd0   : > { %3164 = vmatprep.subr.bf16.mxu0 %v3436_v22 }
  0xd3   : > { %3165 = vmatpush3.bf16.msra.mxu0 %v3420_v28 }
  0xd4   : > { %3166 = vmatprep.subr.bf16.mxu0 %v3436_v22 }
  0xd7   : > { %3167 = vmatpush3.bf16.msra.mxu0 %v3421_v29 }
  0xd8   : > { %3168 = vmatprep.subr.bf16.mxu0 %v3436_v22 }
  0xdb   : > { %3169 = vmatpush3.bf16.msra.mxu0 %v3422_v30 }
  0xdc   : > { %3170 = vmatprep.subr.bf16.mxu0 %v3436_v22 }
  0xdf   : > { %3171 = vmatpush3.bf16.msra.mxu0 %v3423_v31 }
  0xe0   : > { %3172 = vmatprep.subr.bf16.mxu0 %v3436_v22 }
  0xe3   : > { %3173 = vmatpush3.bf16.msra.mxu0 %v3424_v32 }
  0xe6   : > { %3175 = vmatmul.mubr.bf16.vlgmr.msra.gmra.mrb[24].mxu0 %v3425_v33 }
  0xf9   : > { %v2901_v34 = vpop.f32.mrb[0].mxu0 }
  0xfa   : > { %v2902_v36 = vpop.f32.mrb[1].mxu0 }
  0xfb   : > { %v2903_v37 = vadd.f32 %v2902_v36, %v2901_v34  ;;  %v2904_v38 = vpop.f32.mrb[2].mxu0  ;;  %v2923_v39 = vpop.f32.mrb[0].mxu1 }
  0xfc   : > { %v2905_v40 = vpop.f32.mrb[3].mxu0  ;;  %v2924_v43 = vpop.f32.mrb[1].mxu1 }
  0xfd   : > { %v2043_v41 = vadd.f32 %v2903_v37, %v2655_v35  ;;  %v2906_v42 = vadd.f32 %v2905_v40, %v2904_v38  ;;  %v2925_v44 = vadd.f32 %v2924_v43, %v2923_v39  ;;  %v2926_v45 = vpop.f32.mrb[2].mxu1 }
  0xfe   : > { %v2927_v47 = vpop.f32.mrb[3].mxu1 }
  0xff   : > { %v2046_v46 = vadd.f32 %v2906_v42, %v2655_v35  ;;  %v2084_v48 = vadd.f32 %v2925_v44, %v2043_v41  ;;  %v2928_v49 = vadd.f32 %v2927_v47, %v2926_v45 }
 0x101   : > { %v2087_v50 = vadd.f32 %v2928_v49, %v2046_v46 }
 0x119   : > { %v2945_v51 = vpop.f32.mrb[4].mxu0 }
 0x11a   : > { %v2946_v52 = vpop.f32.mrb[5].mxu0 }
 0x11b   : > { %v2947_v53 = vadd.f32 %v2946_v52, %v2945_v51  ;;  %v2948_v54 = vpop.f32.mrb[6].mxu0  ;;  %v2967_v57 = vpop.f32.mrb[4].mxu1 }
 0x11c   : > { %v2949_v55 = vpop.f32.mrb[7].mxu0  ;;  %v2968_v59 = vpop.f32.mrb[5].mxu1 }
 0x11d   : > { %v2125_v56 = vadd.f32 %v2947_v53, %v2084_v48  ;;  %v2950_v58 = vadd.f32 %v2949_v55, %v2948_v54  ;;  %v2969_v61 = vadd.f32 %v2968_v59, %v2967_v57  ;;  %v2970_v62 = vpop.f32.mrb[6].mxu1 }
 0x11e   : > { %v2971_v63 = vpop.f32.mrb[7].mxu1 }
 0x11f   : > { %v2128_v60 = vadd.f32 %v2950_v58, %v2087_v50  ;;  %v2166_v0 = vadd.f32 %v2969_v61, %v2125_v56  ;;  %v2972_v1 = vadd.f32 %v2971_v63, %v2970_v62 }
 0x121   : > { %v2169_v2 = vadd.f32 %v2972_v1, %v2128_v60 }
 0x139   : > { %v2989_v3 = vpop.f32.mrb[8].mxu0 }
 0x13a   : > { %v2990_v4 = vpop.f32.mrb[9].mxu0 }
 0x13b   : > { %v2991_v5 = vadd.f32 %v2990_v4, %v2989_v3  ;;  %v2992_v6 = vpop.f32.mrb[10].mxu0  ;;  %v3011_v7 = vpop.f32.mrb[8].mxu1 }
 0x13c   : > { %v2993_v8 = vpop.f32.mrb[11].mxu0  ;;  %v3012_v11 = vpop.f32.mrb[9].mxu1 }
 0x13d   : > { %v2207_v9 = vadd.f32 %v2991_v5, %v2166_v0  ;;  %v2994_v10 = vadd.f32 %v2993_v8, %v2992_v6  ;;  %v3013_v12 = vadd.f32 %v3012_v11, %v3011_v7  ;;  %v3014_v13 = vpop.f32.mrb[10].mxu1 }
 0x13e   : > { %v3015_v15 = vpop.f32.mrb[11].mxu1 }
 0x13f   : > { %v2210_v14 = vadd.f32 %v2994_v10, %v2169_v2  ;;  %v2248_v16 = vadd.f32 %v3013_v12, %v2207_v9  ;;  %v3016_v17 = vadd.f32 %v3015_v15, %v3014_v13 }
 0x141   : > { %v2251_v18 = vadd.f32 %v3016_v17, %v2210_v14 }
 0x159   : > { %v3033_v19 = vpop.f32.mrb[12].mxu0 }
 0x15a   : > { %v3034_v20 = vpop.f32.mrb[13].mxu0 }
 0x15b   : > { %v3035_v21 = vadd.f32 %v3034_v20, %v3033_v19  ;;  %v3036_v22 = vpop.f32.mrb[14].mxu0  ;;  %v3055_v23 = vpop.f32.mrb[12].mxu1 }
 0x15c   : > { %v3037_v24 = vpop.f32.mrb[15].mxu0  ;;  %v3056_v27 = vpop.f32.mrb[13].mxu1 }
 0x15d   : > { %v2289_v25 = vadd.f32 %v3035_v21, %v2248_v16  ;;  %v3038_v26 = vadd.f32 %v3037_v24, %v3036_v22  ;;  %v3057_v28 = vadd.f32 %v3056_v27, %v3055_v23  ;;  %v3058_v29 = vpop.f32.mrb[14].mxu1 }
 0x15e   : > { %v3059_v31 = vpop.f32.mrb[15].mxu1 }
 0x15f   : > { %v2292_v30 = vadd.f32 %v3038_v26, %v2251_v18  ;;  %v2330_v32 = vadd.f32 %v3057_v28, %v2289_v25  ;;  %v3060_v33 = vadd.f32 %v3059_v31, %v3058_v29  ;;  %v2881_v31 = vld [vmem:[%s4143_s3] ss:$0 sm:$0xff] }
 0x161   : > { %v2333_v34 = vadd.f32 %v3060_v33, %v2292_v30 }
 0x179   : > { %v3077_v35 = vpop.f32.mrb[16].mxu0 }
 0x17a   : > { %v3078_v36 = vpop.f32.mrb[17].mxu0 }
 0x17b   : > { %v3079_v37 = vadd.f32 %v3078_v36, %v3077_v35  ;;  %v3080_v38 = vpop.f32.mrb[18].mxu0  ;;  %v3099_v41 = vpop.f32.mrb[16].mxu1 }
 0x17c   : > { %v3081_v39 = vpop.f32.mrb[19].mxu0  ;;  %v3100_v43 = vpop.f32.mrb[17].mxu1 }
 0x17d   : > { %v2371_v40 = vadd.f32 %v3079_v37, %v2330_v32  ;;  %v3082_v42 = vadd.f32 %v3081_v39, %v3080_v38  ;;  %v3101_v45 = vadd.f32 %v3100_v43, %v3099_v41  ;;  %v3102_v46 = vpop.f32.mrb[18].mxu1  ;;  %v2590_v39 = vld [vmem:[%s4145_s5] sm:$0xff] }
 0x17e   : > { %v3103_v47 = vpop.f32.mrb[19].mxu1 }
 0x17f   : > { %v2374_v44 = vadd.f32 %v3082_v42, %v2333_v34  ;;  %v2412_v48 = vadd.f32 %v3101_v45, %v2371_v40  ;;  %v3104_v49 = vadd.f32 %v3103_v47, %v3102_v46  ;;  %v2882_v34 = vld [vmem:[%s4144_s4] ss:$0 sm:$0xff]  ;;  %v2591_v40 = vld [vmem:[%s4145_s5 + $0x8] sm:$0xff] }
 0x181   : > { %v2415_v50 = vadd.f32 %v3104_v49, %v2374_v44 }
 0x199   : > { %v3121_v51 = vpop.f32.mrb[20].mxu0 }
 0x19a   : > { %v3122_v52 = vpop.f32.mrb[21].mxu0 }
 0x19b   : > { %v3123_v53 = vadd.f32 %v3122_v52, %v3121_v51  ;;  %v3124_v54 = vpop.f32.mrb[22].mxu0  ;;  %v3143_v55 = vpop.f32.mrb[20].mxu1 }
 0x19c   : > { %v3125_v56 = vpop.f32.mrb[23].mxu0  ;;  %v3144_v59 = vpop.f32.mrb[21].mxu1 }
 0x19d   : > { %v2453_v57 = vadd.f32 %v3123_v53, %v2412_v48  ;;  %v3126_v58 = vadd.f32 %v3125_v56, %v3124_v54  ;;  %v3145_v60 = vadd.f32 %v3144_v59, %v3143_v55  ;;  %v3146_v61 = vpop.f32.mrb[22].mxu1 }
 0x19e   : > { %v3147_v63 = vpop.f32.mrb[23].mxu1 }
 0x19f   : > { %v2456_v62 = vadd.f32 %v3126_v58, %v2415_v50  ;;  %v3148_v0 = vadd.f32 %v3147_v63, %v3146_v61  ;;  %v2494_v1 = vadd.f32 %v3145_v60, %v2453_v57 }
 0x1a1   : > { %v2497_v2 = vadd.f32 %v3148_v0, %v2456_v62 }
 0x1b9   : > { %v2534_v3 = vpop.f32.mrb[24].mxu0 }
 0x1ba   : > { %v2535_v4 = vadd.f32 %v2534_v3, %v2494_v1  ;;  %v3176_v5 = vpop.f32.mrb[25].mxu0 }
 0x1bb   : > { %v2537_v6 = vpop.f32.mrb[26].mxu0 }
 0x1bc   : > { %v2538_v7 = vadd.f32 %v2537_v6, %v2497_v2  ;;  %v3177_v8 = vpop.f32.mrb[27].mxu0 }
 0x1be   : > { %v2541_v9 = vadd.f32 %v2538_v7, %v2535_v4 }
 0x1c0   : > { %v2542_v10 = vrot.slane %v2541_v9, 4 }
 0x1c2   : > { %v2543_v11 = vadd.f32 %v2542_v10, %v2541_v9 }
 0x1c4   : > { %v2544_v12 = vrot.slane %v2543_v11, 2 }
 0x1c6   : > { %v2545_v13 = vadd.f32 %v2544_v12, %v2543_v11 }
 0x1c8   : > { %v2546_v14 = vrot.slane %v2545_v13, 1 }
 0x1ca   : > { %v2547_v15 = vadd.f32 %v2546_v14, %v2545_v13 }
 0x1cc   : > { %v2549_v16 = vmul.f32 0.0625, %v2547_v15 }
 0x1ce   : > { %v2550_v17 = vsub.f32 %v2535_v4, %v2549_v16  ;;  %v2551_v18 = vsub.f32 %v2538_v7, %v2549_v16 }
 0x1d0   : > { %v2552_v19 = vmul.f32 %v2550_v17, %v2550_v17  ;;  %v2553_v20 = vmul.f32 %v2551_v18, %v2551_v18 }
 0x1d2   : > { %v2554_v21 = vadd.f32 %v2553_v20, %v2552_v19 }
 0x1d4   : > { %v2555_v22 = vrot.slane %v2554_v21, 4 }
 0x1d6   : > { %v2556_v23 = vadd.f32 %v2555_v22, %v2554_v21 }
 0x1d8   : > { %v2557_v24 = vrot.slane %v2556_v23, 2 }
 0x1da   : > { %v2558_v25 = vadd.f32 %v2557_v24, %v2556_v23 }
 0x1dc   : > { %v2559_v26 = vrot.slane %v2558_v25, 1 }
 0x1de   : > { %v2560_v27 = vadd.f32 %v2559_v26, %v2558_v25 }
 0x1e0   : > { %v2561_v28 = vmul.f32 0.0625, %v2560_v27 }
 0x1e2   : > { %v2562_v29 = vadd.f32 1e-05, %v2561_v28 }
 0x1e4   : > { %3426 = vrsqrt.f32 %v2562_v29 }
 0x1ee   : > { %v3427_v30 = vpop.eup %3426 }
 0x1ef   : > { %v2564_v32 = vmul.f32 %v3427_v30, %v2550_v17  ;;  %v2565_v33 = vmul.f32 %v3427_v30, %v2551_v18 }
 0x1f1   : > { %v2573_v35 = vmul.f32 %v2881_v31, %v2564_v32  ;;  %v2574_v36 = vmul.f32 %v2881_v31, %v2565_v33 }
 0x1f3   : > { %v2582_v37 = vadd.f32 %v2882_v34, %v2573_v35  ;;  %v2583_v38 = vadd.f32 %v2882_v34, %v2574_v36 }
 0x1f5   : > { %vm2584_vm1 = vcmp.ge.f32.partialorder %v2582_v37, 0.0  ;;  %vm2585_vm2 = vcmp.ge.f32.partialorder %v2583_v38, 0.0  ;;  %v2586_v41 = vmul.f32 0.2, %v2582_v37  ;;  %v2587_v42 = vmul.f32 0.2, %v2583_v38 }
 0x1f7   : > { %v2588_v43 = vsel %vm2584_vm1, %v2582_v37, %v2586_v41  ;;  %v2589_v44 = vsel %vm2585_vm2, %v2583_v38, %v2587_v42 }
 0x1f8   : > { %v2592_v45 = vmul.f32 %v2590_v39, %v2588_v43  ;;  %v2593_v46 = vmul.f32 %v2591_v40, %v2589_v44 }
 0x1fa   : > { %v2594_v47 = vadd.f32 %v2593_v46, %v2592_v45 }
 0x1fc   : > { %v2595_v48 = vrot.slane %v2594_v47, 4 }
 0x1fe   : > { %v2596_v49 = vadd.f32 %v2595_v48, %v2594_v47 }
 0x200   : > { %v2597_v50 = vrot.slane %v2596_v49, 2 }
 0x202   : > { %v2598_v51 = vadd.f32 %v2597_v50, %v2596_v49 }
 0x204   : > { %v2599_v52 = vrot.slane %v2598_v51, 1 }
 0x206   : > { %v2600_v53 = vadd.f32 %v2599_v52, %v2598_v51 }
 0x208   : > { %2601 = vst [vmem:[%s247_s12] sm:$0x1] %v2600_v53 }
 0x209 PF: > { %s16_s21 = sadd.s32 1, %s3434_s21  }
 0x20a   : > { %p13_p4 = scmp.ge.s32.totalorder %s16_s21, 4  }
 0x20c   :  { %15 = sbr.rel (!%p13_p4) target bundleno = 1 (0x1), region = 74 }

</bundles_post_ra>
